<compile_context>
chip_gen: v6e
topology: v6e:2x2x1
jax: 0.10.0
libtpu: 0.0.40
codegen_flags: <defaults>
</compile_context>

<pallas_src>
import functools

import jax
import jax.numpy as jnp
import numpy as np
from jax.experimental import pallas as pl
from jax.experimental.pallas import tpu as pltpu


def _attention_kernel(x_ref, wqkv_ref, w12_ref, b12_ref, out_ref, *,
                      heads, embed_size, batch_block, seq_len):
    e = embed_size
    he = heads * e
    bt = batch_block
    n = seq_len

    # Fused QKV projection: one lane-dense (bt*n, din) @ (din, 3*he) matmul.
    # Q and K columns were pre-scaled by e**-0.25 in the wrapper.
    qkv = jnp.dot(x_ref[...], wqkv_ref[...],
                  preferred_element_type=jnp.float32)          # (bt*n, 3*he)
    qkv = qkv.reshape(bt, n, 3 * he)                           # layout-preserving split

    w12 = w12_ref[...]                                         # (1, he) collapsed reward weight

    acc = jnp.zeros((bt, n, 1), jnp.float32)
    for hd in range(heads):                                    # static, heads is tiny
        q_h = qkv[:, :, hd * e:(hd + 1) * e]                   # (bt, n, e)
        k_h = qkv[:, :, he + hd * e:he + (hd + 1) * e]         # (bt, n, e)
        v_h = qkv[:, :, 2 * he + hd * e:2 * he + (hd + 1) * e]

        # scores: contract shared e axis, batched over bt (no explicit transpose)
        s = jnp.einsum('bqe,bke->bqk', q_h, k_h,
                       preferred_element_type=jnp.float32)     # (bt, n, n)

        # softmax over keys (== F.softmax(dot, dim=2) on the (b*h, n, n) tensor)
        m = jnp.max(s, axis=-1, keepdims=True)
        p = jnp.exp(s - m)
        attn = p * pl.reciprocal(jnp.sum(p, axis=-1, keepdims=True), approx=True)

        ctx = jnp.einsum('bqk,bke->bqe', attn, v_h,
                         preferred_element_type=jnp.float32)   # (bt, n, e)

        # head contribution to the collapsed reward head: <ctx_h, w12[h]>
        w12_h = w12[:, hd * e:(hd + 1) * e]                    # (1, e)
        acc = acc + jnp.sum(ctx * w12_h[None, :, :], axis=-1, keepdims=True)

    out_ref[...] = acc + b12_ref[...]                          # broadcast (1, 1) bias


def modified_self_attention(x, params, *, heads, embed_size, batch_block=None):
    b, n, din = x.shape
    e = embed_size
    he = heads * e

    if batch_block is None:
        # Fill the MXU M dimension (target ~128 rows per grid step) while
        # keeping b % batch_block == 0.
        batch_block = min(b, max(1, 128 // max(n, 1)))
        while b % batch_block:
            batch_block -= 1
    bt = batch_block
    assert b % bt == 0

    # ---- offline param packing (outside the hot path) ----------------------
    scale = float(e) ** -0.25
    wqkv = jnp.concatenate([params["wq"] * scale,
                            params["wk"] * scale,
                            params["wv"]], axis=1)             # (din, 3*he)
    # No nonlinearity between the two reward linears in the module, so collapse:
    #   rewards = out @ (w1 @ w2) + (b1 @ w2 + b2)
    w12 = (params["w1"] @ params["w2"]).reshape(1, he)         # (1, he)
    b12 = (params["b1"] @ params["w2"] + params["b2"]).reshape(1, 1)

    x2d = x.reshape(b * n, din)

    kernel = functools.partial(_attention_kernel, heads=heads, embed_size=e,
                               batch_block=bt, seq_len=n)

    return pl.pallas_call(
        kernel,
        out_shape=jax.ShapeDtypeStruct((b, n, 1), jnp.float32),
        grid=(b // bt,),
        in_specs=[
            pl.BlockSpec((bt * n, din), lambda i: (i, 0)),     # x rows for this block
            pl.BlockSpec((din, 3 * he), lambda i: (0, 0)),     # fused Wqkv (resident)
            pl.BlockSpec((1, he), lambda i: (0, 0)),           # collapsed reward weight
            pl.BlockSpec((1, 1), lambda i: (0, 0)),            # collapsed reward bias
        ],
        out_specs=pl.BlockSpec((bt, n, 1), lambda i: (i, 0, 0)),
        compiler_params=pltpu.CompilerParams(
            dimension_semantics=("parallel",)),
    )(x2d, wqkv, w12, b12)


def _reference(x, params, *, heads, embed_size):
    """Pure-JAX reference mirroring the PyTorch forward (un-collapsed)."""
    b, n, din = x.shape
    h, e = heads, embed_size
    q = (x @ params["wq"]).reshape(b, n, h, e).transpose(0, 2, 1, 3)
    k = (x @ params["wk"]).reshape(b, n, h, e).transpose(0, 2, 1, 3)
    v = (x @ params["wv"]).reshape(b, n, h, e).transpose(0, 2, 1, 3)
    q = q / e ** 0.25
    k = k / e ** 0.25
    dot = jnp.einsum("bhqe,bhke->bhqk", q, k)
    dot = jax.nn.softmax(dot, axis=-1)
    out = jnp.einsum("bhqk,bhke->bhqe", dot, v)
    out = out.transpose(0, 2, 1, 3).reshape(b, n, h * e)
    out2 = out @ params["w1"] + params["b1"][0]
    return out2 @ params["w2"] + params["b2"][0]


def _init_params(key, input_size, heads, embed_size, hidden=512):
    """Deterministic Linear-style init; weights stored as (in, out)."""
    he = heads * embed_size
    ks = jax.random.split(key, 8)

    def lin_w(k, fan_in, fan_out):
        bound = 1.0 / np.sqrt(fan_in)
        return jax.random.uniform(k, (fan_in, fan_out), jnp.float32, -bound, bound)

    def lin_b(k, fan_in, fan_out):
        bound = 1.0 / np.sqrt(fan_in)
        return jax.random.uniform(k, (1, fan_out), jnp.float32, -bound, bound)

    return {
        "wq": lin_w(ks[0], input_size, he),
        "wk": lin_w(ks[1], input_size, he),
        "wv": lin_w(ks[2], input_size, he),
        "w1": lin_w(ks[3], he, hidden),
        "b1": lin_b(ks[4], he, hidden),
        "w2": lin_w(ks[5], hidden, 1),
        "b2": lin_b(ks[6], hidden, 1),
    }


if __name__ == "__main__":
    # Shapes consistent with the module; batch bumped to 32 so that each grid
    # step packs 16 batch elements (16*8 = 128 MXU rows) and the grid has 2
    # parallel steps (feeds both v7x TensorCores).
    B, N, INPUT_SIZE, HEADS, EMBED = 32, 8, 16, 4, 8

    key = jax.random.PRNGKey(0)
    kx, kp = jax.random.split(key)
    x = jax.random.normal(kx, (B, N, INPUT_SIZE), jnp.float32)
    params = _init_params(kp, INPUT_SIZE, HEADS, EMBED)

    rewards = modified_self_attention(x, params, heads=HEADS, embed_size=EMBED)
    rewards = jax.block_until_ready(rewards)

    ref = _reference(x, params, heads=HEADS, embed_size=EMBED)
    # Tolerance covers the EUP approx-reciprocal softmax and the f32
    # reassociation from collapsing the two reward linears.
    np.testing.assert_allclose(np.asarray(rewards), np.asarray(ref),
                               rtol=2e-3, atol=2e-3)
    assert rewards.shape == (B, N, 1)
    print("KERNEL_OK")
</pallas_src>

<mosaic_0001>
module attributes {stable_mosaic.version = 11 : i64} {
  func.func @_attention_kernel(%arg0: i32, %arg1: memref<128x16xf32, #tpu.memory_space<vmem>>, %arg2: memref<16x96xf32, #tpu.memory_space<vmem>>, %arg3: memref<1x32xf32, #tpu.memory_space<vmem>>, %arg4: memref<1x1xf32, #tpu.memory_space<vmem>>, %arg5: memref<16x8x1xf32, #tpu.memory_space<vmem>>) attributes {dimension_semantics = [#tpu.dimension_semantics<parallel>], iteration_bounds = array<i64: 2>, scalar_prefetch = 0 : i64, scratch_operands = 0 : i64, tpu.core_type = #tpu.core_type<tc>, window_params = [{transform_indices = @transform_0, window_bounds = array<i64: 128, 16>}, {pipeline_mode = #tpu.pipeline_mode<synchronous>, transform_indices = @transform_1, window_bounds = array<i64: 16, 96>}, {pipeline_mode = #tpu.pipeline_mode<synchronous>, transform_indices = @transform_2, window_bounds = array<i64: 1, 32>}, {pipeline_mode = #tpu.pipeline_mode<synchronous>, transform_indices = @transform_3, window_bounds = array<i64: 1, 1>}, {transform_indices = @transform_4, window_bounds = array<i64: 16, 8, 1>}]} {
    %c0 = arith.constant 0 : index
    %c0_0 = arith.constant 0 : index
    %0 = vector.load %arg1[%c0, %c0_0] : memref<128x16xf32, #tpu.memory_space<vmem>>, vector<128x16xf32>
    %c0_1 = arith.constant 0 : index
    %c0_2 = arith.constant 0 : index
    %1 = vector.load %arg2[%c0_1, %c0_2] : memref<16x96xf32, #tpu.memory_space<vmem>>, vector<16x96xf32>
    %cst = arith.constant dense<0.000000e+00> : vector<128x96xf32>
    %2 = tpu.matmul %0, %1, %cst {dimension_numbers = #tpu.dot_dimension_numbers<[1], [0], [0], [1], [0, 0, 1, 1], [], []>} : vector<128x16xf32>, vector<16x96xf32>, vector<128x96xf32> -> vector<128x96xf32>
    %3 = vector.shape_cast %2 : vector<128x96xf32> to vector<16x8x96xf32>
    %c0_3 = arith.constant 0 : index
    %c0_4 = arith.constant 0 : index
    %4 = vector.load %arg3[%c0_3, %c0_4] : memref<1x32xf32, #tpu.memory_space<vmem>>, vector<1x32xf32>
    %cst_5 = arith.constant 0.000000e+00 : f32
    %5 = vector.broadcast %cst_5 : f32 to vector<16x8x1xf32>
    %6 = vector.extract_strided_slice %3 {offsets = [0, 0, 0], sizes = [16, 8, 8], strides = [1, 1, 1]} : vector<16x8x96xf32> to vector<16x8x8xf32>
    %7 = vector.extract_strided_slice %3 {offsets = [0, 0, 32], sizes = [16, 8, 8], strides = [1, 1, 1]} : vector<16x8x96xf32> to vector<16x8x8xf32>
    %8 = vector.extract_strided_slice %3 {offsets = [0, 0, 64], sizes = [16, 8, 8], strides = [1, 1, 1]} : vector<16x8x96xf32> to vector<16x8x8xf32>
    "tpu.trace_start"() <{level = 10 : i32, message = "bqe,bke->bqk"}> : () -> ()
    %cst_6 = arith.constant dense<0.000000e+00> : vector<16x8x8xf32>
    %9 = tpu.matmul %6, %7, %cst_6 {dimension_numbers = #tpu.dot_dimension_numbers<[2], [2], [1], [1], [0, 0, 0, 1, 1, 1], [0], [0]>} : vector<16x8x8xf32>, vector<16x8x8xf32>, vector<16x8x8xf32> -> vector<16x8x8xf32>
    "tpu.trace_stop"() : () -> ()
    %cst_7 = arith.constant dense<0xFF800000> : vector<16x8xf32>
    %10 = vector.multi_reduction <maximumf>, %9, %cst_7 [2] : vector<16x8x8xf32> to vector<16x8xf32>
    %11 = vector.shape_cast %10 : vector<16x8xf32> to vector<16x8x1xf32>
    %12 = vector.broadcast %11 : vector<16x8x1xf32> to vector<16x8x8xf32>
    %13 = arith.subf %9, %12 : vector<16x8x8xf32>
    %14 = math.exp %13 : vector<16x8x8xf32>
    %cst_8 = arith.constant dense<0.000000e+00> : vector<16x8xf32>
    %15 = vector.multi_reduction <add>, %14, %cst_8 [2] : vector<16x8x8xf32> to vector<16x8xf32>
    %16 = vector.shape_cast %15 : vector<16x8xf32> to vector<16x8x1xf32>
    %17 = tpu.reciprocal %16 {approx = true} : vector<16x8x1xf32> -> vector<16x8x1xf32>
    %18 = vector.broadcast %17 : vector<16x8x1xf32> to vector<16x8x8xf32>
    %19 = arith.mulf %14, %18 : vector<16x8x8xf32>
    "tpu.trace_start"() <{level = 10 : i32, message = "bqk,bke->bqe"}> : () -> ()
    %cst_9 = arith.constant dense<0.000000e+00> : vector<16x8x8xf32>
    %20 = tpu.matmul %19, %8, %cst_9 {dimension_numbers = #tpu.dot_dimension_numbers<[2], [1], [1], [2], [0, 0, 0, 1, 1, 2], [0], [0]>} : vector<16x8x8xf32>, vector<16x8x8xf32>, vector<16x8x8xf32> -> vector<16x8x8xf32>
    "tpu.trace_stop"() : () -> ()
    %21 = vector.extract_strided_slice %4 {offsets = [0, 0], sizes = [1, 8], strides = [1, 1]} : vector<1x32xf32> to vector<1x8xf32>
    %22 = vector.shape_cast %21 : vector<1x8xf32> to vector<1x1x8xf32>
    %23 = vector.broadcast %22 : vector<1x1x8xf32> to vector<16x8x8xf32>
    %24 = arith.mulf %20, %23 : vector<16x8x8xf32>
    %cst_10 = arith.constant dense<0.000000e+00> : vector<16x8xf32>
    %25 = vector.multi_reduction <add>, %24, %cst_10 [2] : vector<16x8x8xf32> to vector<16x8xf32>
    %26 = vector.shape_cast %25 : vector<16x8xf32> to vector<16x8x1xf32>
    %27 = arith.addf %5, %26 : vector<16x8x1xf32>
    %28 = vector.extract_strided_slice %3 {offsets = [0, 0, 8], sizes = [16, 8, 8], strides = [1, 1, 1]} : vector<16x8x96xf32> to vector<16x8x8xf32>
    %29 = vector.extract_strided_slice %3 {offsets = [0, 0, 40], sizes = [16, 8, 8], strides = [1, 1, 1]} : vector<16x8x96xf32> to vector<16x8x8xf32>
    %30 = vector.extract_strided_slice %3 {offsets = [0, 0, 72], sizes = [16, 8, 8], strides = [1, 1, 1]} : vector<16x8x96xf32> to vector<16x8x8xf32>
    "tpu.trace_start"() <{level = 10 : i32, message = "bqe,bke->bqk"}> : () -> ()
    %cst_11 = arith.constant dense<0.000000e+00> : vector<16x8x8xf32>
    %31 = tpu.matmul %28, %29, %cst_11 {dimension_numbers = #tpu.dot_dimension_numbers<[2], [2], [1], [1], [0, 0, 0, 1, 1, 1], [0], [0]>} : vector<16x8x8xf32>, vector<16x8x8xf32>, vector<16x8x8xf32> -> vector<16x8x8xf32>
    "tpu.trace_stop"() : () -> ()
    %cst_12 = arith.constant dense<0xFF800000> : vector<16x8xf32>
    %32 = vector.multi_reduction <maximumf>, %31, %cst_12 [2] : vector<16x8x8xf32> to vector<16x8xf32>
    %33 = vector.shape_cast %32 : vector<16x8xf32> to vector<16x8x1xf32>
    %34 = vector.broadcast %33 : vector<16x8x1xf32> to vector<16x8x8xf32>
    %35 = arith.subf %31, %34 : vector<16x8x8xf32>
    %36 = math.exp %35 : vector<16x8x8xf32>
    %cst_13 = arith.constant dense<0.000000e+00> : vector<16x8xf32>
    %37 = vector.multi_reduction <add>, %36, %cst_13 [2] : vector<16x8x8xf32> to vector<16x8xf32>
    %38 = vector.shape_cast %37 : vector<16x8xf32> to vector<16x8x1xf32>
    %39 = tpu.reciprocal %38 {approx = true} : vector<16x8x1xf32> -> vector<16x8x1xf32>
    %40 = vector.broadcast %39 : vector<16x8x1xf32> to vector<16x8x8xf32>
    %41 = arith.mulf %36, %40 : vector<16x8x8xf32>
    "tpu.trace_start"() <{level = 10 : i32, message = "bqk,bke->bqe"}> : () -> ()
    %cst_14 = arith.constant dense<0.000000e+00> : vector<16x8x8xf32>
    %42 = tpu.matmul %41, %30, %cst_14 {dimension_numbers = #tpu.dot_dimension_numbers<[2], [1], [1], [2], [0, 0, 0, 1, 1, 2], [0], [0]>} : vector<16x8x8xf32>, vector<16x8x8xf32>, vector<16x8x8xf32> -> vector<16x8x8xf32>
    "tpu.trace_stop"() : () -> ()
    %43 = vector.extract_strided_slice %4 {offsets = [0, 8], sizes = [1, 8], strides = [1, 1]} : vector<1x32xf32> to vector<1x8xf32>
    %44 = vector.shape_cast %43 : vector<1x8xf32> to vector<1x1x8xf32>
    %45 = vector.broadcast %44 : vector<1x1x8xf32> to vector<16x8x8xf32>
    %46 = arith.mulf %42, %45 : vector<16x8x8xf32>
    %cst_15 = arith.constant dense<0.000000e+00> : vector<16x8xf32>
    %47 = vector.multi_reduction <add>, %46, %cst_15 [2] : vector<16x8x8xf32> to vector<16x8xf32>
    %48 = vector.shape_cast %47 : vector<16x8xf32> to vector<16x8x1xf32>
    %49 = arith.addf %27, %48 : vector<16x8x1xf32>
    %50 = vector.extract_strided_slice %3 {offsets = [0, 0, 16], sizes = [16, 8, 8], strides = [1, 1, 1]} : vector<16x8x96xf32> to vector<16x8x8xf32>
    %51 = vector.extract_strided_slice %3 {offsets = [0, 0, 48], sizes = [16, 8, 8], strides = [1, 1, 1]} : vector<16x8x96xf32> to vector<16x8x8xf32>
    %52 = vector.extract_strided_slice %3 {offsets = [0, 0, 80], sizes = [16, 8, 8], strides = [1, 1, 1]} : vector<16x8x96xf32> to vector<16x8x8xf32>
    "tpu.trace_start"() <{level = 10 : i32, message = "bqe,bke->bqk"}> : () -> ()
    %cst_16 = arith.constant dense<0.000000e+00> : vector<16x8x8xf32>
    %53 = tpu.matmul %50, %51, %cst_16 {dimension_numbers = #tpu.dot_dimension_numbers<[2], [2], [1], [1], [0, 0, 0, 1, 1, 1], [0], [0]>} : vector<16x8x8xf32>, vector<16x8x8xf32>, vector<16x8x8xf32> -> vector<16x8x8xf32>
    "tpu.trace_stop"() : () -> ()
    %cst_17 = arith.constant dense<0xFF800000> : vector<16x8xf32>
    %54 = vector.multi_reduction <maximumf>, %53, %cst_17 [2] : vector<16x8x8xf32> to vector<16x8xf32>
    %55 = vector.shape_cast %54 : vector<16x8xf32> to vector<16x8x1xf32>
    %56 = vector.broadcast %55 : vector<16x8x1xf32> to vector<16x8x8xf32>
    %57 = arith.subf %53, %56 : vector<16x8x8xf32>
    %58 = math.exp %57 : vector<16x8x8xf32>
    %cst_18 = arith.constant dense<0.000000e+00> : vector<16x8xf32>
    %59 = vector.multi_reduction <add>, %58, %cst_18 [2] : vector<16x8x8xf32> to vector<16x8xf32>
    %60 = vector.shape_cast %59 : vector<16x8xf32> to vector<16x8x1xf32>
    %61 = tpu.reciprocal %60 {approx = true} : vector<16x8x1xf32> -> vector<16x8x1xf32>
    %62 = vector.broadcast %61 : vector<16x8x1xf32> to vector<16x8x8xf32>
    %63 = arith.mulf %58, %62 : vector<16x8x8xf32>
    "tpu.trace_start"() <{level = 10 : i32, message = "bqk,bke->bqe"}> : () -> ()
    %cst_19 = arith.constant dense<0.000000e+00> : vector<16x8x8xf32>
    %64 = tpu.matmul %63, %52, %cst_19 {dimension_numbers = #tpu.dot_dimension_numbers<[2], [1], [1], [2], [0, 0, 0, 1, 1, 2], [0], [0]>} : vector<16x8x8xf32>, vector<16x8x8xf32>, vector<16x8x8xf32> -> vector<16x8x8xf32>
    "tpu.trace_stop"() : () -> ()
    %65 = vector.extract_strided_slice %4 {offsets = [0, 16], sizes = [1, 8], strides = [1, 1]} : vector<1x32xf32> to vector<1x8xf32>
    %66 = vector.shape_cast %65 : vector<1x8xf32> to vector<1x1x8xf32>
    %67 = vector.broadcast %66 : vector<1x1x8xf32> to vector<16x8x8xf32>
    %68 = arith.mulf %64, %67 : vector<16x8x8xf32>
    %cst_20 = arith.constant dense<0.000000e+00> : vector<16x8xf32>
    %69 = vector.multi_reduction <add>, %68, %cst_20 [2] : vector<16x8x8xf32> to vector<16x8xf32>
    %70 = vector.shape_cast %69 : vector<16x8xf32> to vector<16x8x1xf32>
    %71 = arith.addf %49, %70 : vector<16x8x1xf32>
    %72 = vector.extract_strided_slice %3 {offsets = [0, 0, 24], sizes = [16, 8, 8], strides = [1, 1, 1]} : vector<16x8x96xf32> to vector<16x8x8xf32>
    %73 = vector.extract_strided_slice %3 {offsets = [0, 0, 56], sizes = [16, 8, 8], strides = [1, 1, 1]} : vector<16x8x96xf32> to vector<16x8x8xf32>
    %74 = vector.extract_strided_slice %3 {offsets = [0, 0, 88], sizes = [16, 8, 8], strides = [1, 1, 1]} : vector<16x8x96xf32> to vector<16x8x8xf32>
    "tpu.trace_start"() <{level = 10 : i32, message = "bqe,bke->bqk"}> : () -> ()
    %cst_21 = arith.constant dense<0.000000e+00> : vector<16x8x8xf32>
    %75 = tpu.matmul %72, %73, %cst_21 {dimension_numbers = #tpu.dot_dimension_numbers<[2], [2], [1], [1], [0, 0, 0, 1, 1, 1], [0], [0]>} : vector<16x8x8xf32>, vector<16x8x8xf32>, vector<16x8x8xf32> -> vector<16x8x8xf32>
    "tpu.trace_stop"() : () -> ()
    %cst_22 = arith.constant dense<0xFF800000> : vector<16x8xf32>
    %76 = vector.multi_reduction <maximumf>, %75, %cst_22 [2] : vector<16x8x8xf32> to vector<16x8xf32>
    %77 = vector.shape_cast %76 : vector<16x8xf32> to vector<16x8x1xf32>
    %78 = vector.broadcast %77 : vector<16x8x1xf32> to vector<16x8x8xf32>
    %79 = arith.subf %75, %78 : vector<16x8x8xf32>
    %80 = math.exp %79 : vector<16x8x8xf32>
    %cst_23 = arith.constant dense<0.000000e+00> : vector<16x8xf32>
    %81 = vector.multi_reduction <add>, %80, %cst_23 [2] : vector<16x8x8xf32> to vector<16x8xf32>
    %82 = vector.shape_cast %81 : vector<16x8xf32> to vector<16x8x1xf32>
    %83 = tpu.reciprocal %82 {approx = true} : vector<16x8x1xf32> -> vector<16x8x1xf32>
    %84 = vector.broadcast %83 : vector<16x8x1xf32> to vector<16x8x8xf32>
    %85 = arith.mulf %80, %84 : vector<16x8x8xf32>
    "tpu.trace_start"() <{level = 10 : i32, message = "bqk,bke->bqe"}> : () -> ()
    %cst_24 = arith.constant dense<0.000000e+00> : vector<16x8x8xf32>
    %86 = tpu.matmul %85, %74, %cst_24 {dimension_numbers = #tpu.dot_dimension_numbers<[2], [1], [1], [2], [0, 0, 0, 1, 1, 2], [0], [0]>} : vector<16x8x8xf32>, vector<16x8x8xf32>, vector<16x8x8xf32> -> vector<16x8x8xf32>
    "tpu.trace_stop"() : () -> ()
    %87 = vector.extract_strided_slice %4 {offsets = [0, 24], sizes = [1, 8], strides = [1, 1]} : vector<1x32xf32> to vector<1x8xf32>
    %88 = vector.shape_cast %87 : vector<1x8xf32> to vector<1x1x8xf32>
    %89 = vector.broadcast %88 : vector<1x1x8xf32> to vector<16x8x8xf32>
    %90 = arith.mulf %86, %89 : vector<16x8x8xf32>
    %cst_25 = arith.constant dense<0.000000e+00> : vector<16x8xf32>
    %91 = vector.multi_reduction <add>, %90, %cst_25 [2] : vector<16x8x8xf32> to vector<16x8xf32>
    %92 = vector.shape_cast %91 : vector<16x8xf32> to vector<16x8x1xf32>
    %93 = arith.addf %71, %92 : vector<16x8x1xf32>
    %c0_26 = arith.constant 0 : index
    %c0_27 = arith.constant 0 : index
    %94 = vector.load %arg4[%c0_26, %c0_27] : memref<1x1xf32, #tpu.memory_space<vmem>>, vector<1x1xf32>
    %95 = vector.shape_cast %94 : vector<1x1xf32> to vector<1x1x1xf32>
    %96 = vector.broadcast %95 : vector<1x1x1xf32> to vector<16x8x1xf32>
    %97 = arith.addf %93, %96 : vector<16x8x1xf32>
    %c0_28 = arith.constant 0 : index
    %c0_29 = arith.constant 0 : index
    %c0_30 = arith.constant 0 : index
    %98 = vector.load %arg5[%c0_28, %c0_29, %c0_30] : memref<16x8x1xf32, #tpu.memory_space<vmem>>, vector<16x8x1xf32>
    tpu.vector_store %arg5[%c0_28, %c0_29, %c0_30], %97 {strides = array<i32>} : memref<16x8x1xf32, #tpu.memory_space<vmem>>, vector<16x8x1xf32>,
    return
  }
  func.func @transform_0(%arg0: i32) -> (i32, i32) {
    %c0_i32 = arith.constant 0 : i32
    %c0_i32_0 = arith.constant 0 : i32
    return %arg0, %c0_i32 : i32, i32
  }
  func.func @transform_1(%arg0: i32) -> (i32, i32) {
    %c0_i32 = arith.constant 0 : i32
    %c0_i32_0 = arith.constant 0 : i32
    %c0_i32_1 = arith.constant 0 : i32
    return %c0_i32, %c0_i32_0 : i32, i32
  }
  func.func @transform_2(%arg0: i32) -> (i32, i32) {
    %c0_i32 = arith.constant 0 : i32
    %c0_i32_0 = arith.constant 0 : i32
    %c0_i32_1 = arith.constant 0 : i32
    return %c0_i32, %c0_i32_0 : i32, i32
  }
  func.func @transform_3(%arg0: i32) -> (i32, i32) {
    %c0_i32 = arith.constant 0 : i32
    %c0_i32_0 = arith.constant 0 : i32
    %c0_i32_1 = arith.constant 0 : i32
    return %c0_i32, %c0_i32_0 : i32, i32
  }
  func.func @transform_4(%arg0: i32) -> (i32, i32, i32) {
    %c0_i32 = arith.constant 0 : i32
    %c0_i32_0 = arith.constant 0 : i32
    %c0_i32_1 = arith.constant 0 : i32
    return %arg0, %c0_i32, %c0_i32_0 : i32, i32, i32
  }
}

</mosaic_0001>

<bundles_post_ra>
// kernel: tpu_custom_call.1
= control target key start
LH: loop header
LB: loop body
LE: loop exit
PB: predicated region body
PF: predicated region fallthrough
CT: control target
= control target key end

     0   :  { %s12881_s17 = smov 0   ;;  %s15225_s0 = inlined_call_operand.vmem [shape: f32[256,16], index: 0, kind: input, shape index: {}]   ;;  %s15226_s1 = inlined_call_operand.vmem [shape: f32[16,96], index: 1, kind: input, shape index: {}]   ;;  %s15227_s2 = inlined_call_operand.vmem [shape: f32[1,32], index: 2, kind: input, shape index: {}]   ;;  %s15228_s3 = inlined_call_operand.<no memory space> [shape: f32[1,1], index: 3, kind: input, shape index: {}]   ;;  %s15229_s4 = inlined_call_operand.vmem [shape: f32[32,8,1], index: 4, kind: output, shape index: {}]  }
   0x1   :  { %v9_v0 = vstv %s15228_s3 }
   0x2   :  { %10 = vst [vmem:[#allocation2] sm:$0x1] %v9_v0 }
   0x3 LB: > { %s11392_s18 = sadd.s32 4294967295, %s12838_s17   ;;  %p11396_p0 = scmp.ge.s32.totalorder %s12838_s17, 1  ;;  %s12838_s17 = sphi %s12881_s17, %s16_s17  }
   0x4   : > { %p165_p1 = scmp.lt.s32.totalorder %s12838_s17, 3 }
   0x6   : > { %p166_p2 = pnand %p11396_p0, %p165_p1 }
   0x8   : > { %169 = sbr.rel (%p166_p2) target bundleno = 2841 (0xb19), region = 36 }
   0xd   : > { %v220_v1 = vld [vmem:[%s15226_s1 + $0x8] sm:$0xff]  ;;  %v219_v2 = vld [vmem:[%s15226_s1] sm:$0xff]  ;;  %s11397_s22 = sshll.u32 %s11392_s18, 4  ;;  %vm221_vm0 = vcmask 130048   ;;  %v15230_v19 = vmov 0.0   ;;  %vm12841_vm1 = vmmov 0  }
   0xe   : > { %11887 = vmatprep.subr.mxu0 %v220_v1  ;;  %p192_p3 = scmp.lt.s32.totalorder %s11397_s22, 31  ;;  %11915 = vmatprep.subr.mxu1 %v15230_v19  ;;  %s12842_s27 = smov 96   ;;  %vm419_vm2 = vcmask 64512   ;;  %vm11319_vm3 = vcmask 7168  }
   0xf   : > { %11888 = vmatpush3.msra.mxu0 %v220_v1  ;;  %11917 = vmatprep.mubr.msk.f32.mxu1 %vm12841_vm1, %v15230_v19  ;;  %s12843_s28 = smov 64   ;;  %s12844_s29 = smov 88  }
  0x10   : > { %11889 = vmatprep.subr.mxu0 %v219_v2  ;;  %s15332_s22 = smov (!%p192_p3, %s11397_s22), 31  ;;  %s12845_s30 = smov 120  }
  0x11   : > { %11890 = vmatpush3.msra.mxu0 %v219_v2  ;;  %s11398_s23 = sshll.u32 %s15332_s22, 3  ;;  %s12846_s5 = smov 56  }
  0x12   : > { %s12903_s26 = scalar_lea.vmem %s15225_s0, %s11398_s23  ;;  %11955 = vmatprep.subr.mxu0 %v15230_v19  ;;  %s12847_s6 = smov 80  }
  0x13   : > { %v203_v3 = vld [vmem:[%s12903_s26] sm:$0xff]  ;;  %v204_v4 = vld [vmem:[%s12903_s26 + $0x8] sm:$0xff]  ;;  %v205_v5 = vld [vmem:[%s12903_s26 + $0x10] sm:$0xff]  ;;  %s12848_s7 = smov 112   ;;  %s12849_s8 = smov 48  }
  0x14   : > { %11891 = vmatprep.mubr.msk.f32.mxu0 %vm221_vm0, %v203_v3  ;;  %v206_v6 = vld [vmem:[%s12903_s26 + $0x18] sm:$0xff]  ;;  %v207_v7 = vld [vmem:[%s12903_s26 + $0x20] sm:$0xff]  ;;  %v208_v8 = vld [vmem:[%s12903_s26 + $0x28] sm:$0xff]  ;;  %s12850_s9 = smov 72   ;;  %s12851_s10 = smov 104  }
  0x15   : > { %11892 = vmatmul.mubr.msk.f32.vlgmr.msra.gmra.mxu0 %vm221_vm0, %v204_v4  ;;  %v209_v9 = vld [vmem:[%s12903_s26 + $0x30] sm:$0xff]  ;;  %v210_v10 = vld [vmem:[%s12903_s26 + $0x38] sm:$0xff]  ;;  %v211_v11 = vld [vmem:[%s12903_s26 + $0x40] sm:$0xff]  ;;  %s12852_s11 = smov 40   ;;  %s15145_s16 = scalar_lea.vmem %s15229_s4, %s11398_s23 }
  0x16   : > { %11894 = vmatprep.mubr.msk.f32.mxu0 %vm221_vm0, %v205_v5  ;;  %v212_v12 = vld [vmem:[%s12903_s26 + $0x48] sm:$0xff]  ;;  %v213_v13 = vld [vmem:[%s12903_s26 + $0x50] sm:$0xff]  ;;  %v214_v14 = vld [vmem:[%s12903_s26 + $0x58] sm:$0xff] }
  0x17   : > { %v215_v15 = vld [vmem:[%s12903_s26 + $0x60] sm:$0xff]  ;;  %v216_v16 = vld [vmem:[%s12903_s26 + $0x68] sm:$0xff]  ;;  %v217_v17 = vld [vmem:[%s12903_s26 + $0x70] sm:$0xff] }
  0x18   : > { %v218_v18 = vld [vmem:[%s12903_s26 + $0x78] sm:$0xff] }
  0x19   : > { %11895 = vmatmul.mubr.msk.f32.gmra.mxu0 %vm221_vm0, %v206_v6 }
  0x1a   : > { %11897 = vmatprep.mubr.msk.f32.mxu0 %vm221_vm0, %v207_v7 }
  0x1d   : > { %11898 = vmatmul.mubr.msk.f32.gmra.mxu0 %vm221_vm0, %v208_v8 }
  0x1e   : > { %11900 = vmatprep.mubr.msk.f32.mxu0 %vm221_vm0, %v209_v9 }
  0x21   : > { %11901 = vmatmul.mubr.msk.f32.gmra.mxu0 %vm221_vm0, %v210_v10 }
  0x22   : > { %11903 = vmatprep.mubr.msk.f32.mxu0 %vm221_vm0, %v211_v11 }
  0x25   : > { %11904 = vmatmul.mubr.msk.f32.gmra.mxu0 %vm221_vm0, %v212_v12 }
  0x26   : > { %11906 = vmatprep.mubr.msk.f32.mxu0 %vm221_vm0, %v213_v13 }
  0x29   : > { %11907 = vmatmul.mubr.msk.f32.gmra.mxu0 %vm221_vm0, %v214_v14 }
  0x2a   : > { %11909 = vmatprep.mubr.msk.f32.mxu0 %vm221_vm0, %v215_v15 }
  0x2d   : > { %11910 = vmatmul.mubr.msk.f32.gmra.mxu0 %vm221_vm0, %v216_v16 }
  0x2e   : > { %11912 = vmatprep.mubr.msk.f32.mxu0 %vm221_vm0, %v217_v17 }
  0x31   : > { %11913 = vmatmul.mubr.msk.f32.gmra.mxu0 %vm221_vm0, %v218_v18 }
  0x32   : > { %11957 = vmatprep.mubr.msk.f32.mxu0 %vm12841_vm1, %v15230_v19 }
  0xd5   : > { %v12943_v20 = vpop.f32.mrf.mxu0 }
  0xd6   : > { %15239 = vst [vmem:[#allocation3_spill] sm:$0xff] %v12943_v20 }
  0xd7   : > { %v12945_v21 = vpop.f32.mrf.mxu0 }
  0xd8   : > { %417 = vrot.lane.b32.xlu0 %v12945_v21, %s12842_s27 }
  0xd9   : > { %v12948_v22 = vpop.f32.mrf.mxu0 }
  0xda   : > { %15240 = vst [vmem:[#allocation4_spill] sm:$0xff] %v12948_v22 }
  0xdb   : > { %v12950_v23 = vpop.f32.mrf.mxu0 }
  0xdc   : > { %15241 = vst [vmem:[#allocation5_spill] sm:$0xff] %v12950_v23  ;;  %495 = vrot.lane.b32.xlu0 %v12943_v20, %s12842_s27  ;;  %572 = vrot.lane.b32.xlu1 %v12950_v23, %s12842_s27 }
  0xdd   : > { %v12954_v24 = vpop.f32.mrf.mxu0 }
  0xdf   : > { %v12956_v25 = vpop.f32.mrf.mxu0 }
  0xe0   : > { %649 = vrot.lane.b32.xlu1 %v12948_v22, %s12842_s27  ;;  %726 = vrot.lane.b32.xlu0 %v12956_v25, %s12842_s27 }
  0xe1   : > { %v12960_v26 = vpop.f32.mrf.mxu0 }
  0xe3   : > { %v12962_v27 = vpop.f32.mrf.mxu0 }
  0xe4   : > { %803 = vrot.lane.b32.xlu1 %v12954_v24, %s12842_s27  ;;  %880 = vrot.lane.b32.xlu0 %v12962_v27, %s12842_s27 }
  0xe5   : > { %v12966_v28 = vpop.f32.mrf.mxu0 }
  0xe7   : > { %v12968_v29 = vpop.f32.mrf.mxu0 }
  0xe8   : > { %957 = vrot.lane.b32.xlu1 %v12960_v26, %s12842_s27  ;;  %1034 = vrot.lane.b32.xlu0 %v12968_v29, %s12842_s27 }
  0xe9   : > { %v12972_v30 = vpop.f32.mrf.mxu0 }
  0xeb   : > { %v12974_v31 = vpop.f32.mrf.mxu0 }
  0xec   : > { %1111 = vrot.lane.b32.xlu1 %v12966_v28, %s12842_s27  ;;  %1188 = vrot.lane.b32.xlu0 %v12974_v31, %s12842_s27 }
  0xed   : > { %v12978_v32 = vpop.f32.mrf.mxu0 }
  0xef   : > { %v12980_v33 = vpop.f32.mrf.mxu0 }
  0xf0   : > { %1265 = vrot.lane.b32.xlu1 %v12972_v30, %s12842_s27  ;;  %1342 = vrot.lane.b32.xlu0 %v12980_v33, %s12842_s27 }
  0xf1   : > { %v12984_v34 = vpop.f32.mrf.mxu0 }
  0xf3   : > { %v12986_v35 = vpop.f32.mrf.mxu0 }
  0xf4   : > { %15242 = vst [vmem:[#allocation6_spill] sm:$0xff] %v12986_v35  ;;  %1419 = vrot.lane.b32.xlu1 %v12978_v32, %s12842_s27  ;;  %1496 = vrot.lane.b32.xlu0 %v12986_v35, %s12842_s27 }
  0xf8   : > { %1573 = vrot.lane.b32.xlu1 %v12984_v34, %s12842_s27  ;;  %1901 = vrot.lane.b32.xlu0 %v12943_v20, %s12843_s28 }
  0xfc   : > { %1825 = vrot.lane.b32.xlu1 %v12945_v21, %s12843_s28  ;;  %2053 = vrot.lane.b32.xlu0 %v12948_v22, %s12843_s28 }
 0x100   : > { %1977 = vrot.lane.b32.xlu1 %v12950_v23, %s12843_s28  ;;  %2281 = vrot.lane.b32.xlu0 %v12962_v27, %s12843_s28 }
 0x104   : > { %2129 = vrot.lane.b32.xlu1 %v12956_v25, %s12843_s28  ;;  %2433 = vrot.lane.b32.xlu0 %v12968_v29, %s12843_s28 }
 0x108   : > { %2205 = vrot.lane.b32.xlu1 %v12954_v24, %s12843_s28  ;;  %2585 = vrot.lane.b32.xlu0 %v12974_v31, %s12843_s28 }
 0x10c   : > { %2357 = vrot.lane.b32.xlu1 %v12960_v26, %s12843_s28  ;;  %2737 = vrot.lane.b32.xlu0 %v12980_v33, %s12843_s28 }
 0x110   : > { %2509 = vrot.lane.b32.xlu1 %v12966_v28, %s12843_s28  ;;  %3129 = vrot.lane.b32.xlu0 %v12945_v21, %s12844_s29 }
 0x114   : > { %2661 = vrot.lane.b32.xlu1 %v12972_v30, %s12843_s28  ;;  %3127 = vrot.lane.b32.xlu0 %v12945_v21, %s12845_s30 }
 0x118   : > { %2813 = vrot.lane.b32.xlu1 %v12978_v32, %s12843_s28  ;;  %3285 = vrot.lane.b32.xlu0 %v12950_v23, %s12844_s29 }
 0x11c   : > { %2965 = vrot.lane.b32.xlu1 %v12984_v34, %s12843_s28  ;;  %3283 = vrot.lane.b32.xlu0 %v12950_v23, %s12845_s30 }
 0x120   : > { %3207 = vrot.lane.b32.xlu1 %v12943_v20, %s12844_s29  ;;  %2889 = vrot.lane.b32.xlu0 %v12986_v35, %s12843_s28 }
 0x124   : > { %3205 = vrot.lane.b32.xlu1 %v12943_v20, %s12845_s30 }
 0x128   : > { %3363 = vrot.lane.b32.xlu1 %v12948_v22, %s12844_s29 }
 0x12c   : > { %3361 = vrot.lane.b32.xlu1 %v12948_v22, %s12845_s30 }
 0x14a   : > { %v418_v36 = vpop.permute.xlu0 %417 }
 0x14b   : > { %11916 = vmatpush3.xpose.msk.msra.mxu1 %vm419_vm2, %v418_v36 }
 0x14c   : > { %11920 = vmatprep.subr.mxu1 %v15230_v19 }
 0x14e   : > { %11918 = vmatmul.mubr.msk.f32.vlgmr.msra.gmra.mxu1 %vm419_vm2, %v12945_v21  ;;  %v496_v37 = vpop.permute.xlu0 %495  ;;  %v573_v38 = vpop.permute.xlu1 %572 }
 0x14f   : > { %11921 = vmatpush3.xpose.msk.msra.mxu1 %vm419_vm2, %v496_v37  ;;  %11922 = vmatprep.mubr.msk.f32.mxu1 %vm12841_vm1, %v15230_v19 }
 0x150   : > { %11925 = vmatprep.subr.mxu1 %v15230_v19 }
 0x152   : > { %11923 = vmatmul.mubr.msk.f32.vlgmr.msra.gmra.mxu1 %vm419_vm2, %v12943_v20  ;;  %v650_v39 = vpop.permute.xlu1 %649  ;;  %v727_v40 = vpop.permute.xlu0 %726 }
 0x153   : > { %11926 = vmatpush3.xpose.msk.msra.mxu1 %vm419_vm2, %v573_v38  ;;  %11927 = vmatprep.mubr.msk.f32.mxu1 %vm12841_vm1, %v15230_v19 }
 0x154   : > { %11930 = vmatprep.subr.mxu1 %v15230_v19 }
 0x156   : > { %11928 = vmatmul.mubr.msk.f32.vlgmr.msra.gmra.mxu1 %vm419_vm2, %v12950_v23  ;;  %v804_v41 = vpop.permute.xlu1 %803  ;;  %v881_v42 = vpop.permute.xlu0 %880 }
 0x157   : > { %11931 = vmatpush3.xpose.msk.msra.mxu1 %vm419_vm2, %v650_v39  ;;  %11932 = vmatprep.mubr.msk.f32.mxu1 %vm12841_vm1, %v15230_v19 }
 0x158   : > { %11935 = vmatprep.subr.mxu1 %v15230_v19 }
 0x15a   : > { %11933 = vmatmul.mubr.msk.f32.vlgmr.msra.gmra.mxu1 %vm419_vm2, %v12948_v22  ;;  %v958_v43 = vpop.permute.xlu1 %957  ;;  %v1035_v44 = vpop.permute.xlu0 %1034 }
 0x15b   : > { %11936 = vmatpush3.xpose.msk.msra.mxu1 %vm419_vm2, %v727_v40  ;;  %11956 = vmatpush3.xpose.msk.msra.mxu0 %vm419_vm2, %v1035_v44 }
 0x15c   : > { %11937 = vmatprep.mubr.msk.f32.mxu1 %vm12841_vm1, %v15230_v19  ;;  %11940 = vmatprep.subr.mxu1 %v15230_v19 }
 0x15d   : > { %11965 = vmatprep.subr.mxu0 %v15230_v19 }
 0x15e   : > { %11938 = vmatmul.mubr.msk.f32.vlgmr.msra.gmra.mxu1 %vm419_vm2, %v12956_v25  ;;  %v1112_v45 = vpop.permute.xlu1 %1111  ;;  %11958 = vmatmul.mubr.msk.f32.vlgmr.msra.gmra.mxu0 %vm419_vm2, %v12968_v29  ;;  %v1189_v46 = vpop.permute.xlu0 %1188 }
 0x15f   : > { %11941 = vmatpush3.xpose.msk.msra.mxu1 %vm419_vm2, %v804_v41  ;;  %11966 = vmatpush3.xpose.msk.msra.mxu0 %vm419_vm2, %v1189_v46 }
 0x160   : > { %11942 = vmatprep.mubr.msk.f32.mxu1 %vm12841_vm1, %v15230_v19  ;;  %11967 = vmatprep.mubr.msk.f32.mxu0 %vm12841_vm1, %v15230_v19 }
 0x161   : > { %11945 = vmatprep.subr.mxu1 %v15230_v19  ;;  %11975 = vmatprep.subr.mxu0 %v15230_v19 }
 0x162   : > { %11943 = vmatmul.mubr.msk.f32.vlgmr.msra.gmra.mxu1 %vm419_vm2, %v12954_v24  ;;  %v1266_v47 = vpop.permute.xlu1 %1265  ;;  %11968 = vmatmul.mubr.msk.f32.vlgmr.msra.gmra.mxu0 %vm419_vm2, %v12974_v31  ;;  %v1343_v48 = vpop.permute.xlu0 %1342 }
 0x163   : > { %11946 = vmatpush3.xpose.msk.msra.mxu1 %vm419_vm2, %v881_v42  ;;  %11976 = vmatpush3.xpose.msk.msra.mxu0 %vm419_vm2, %v1343_v48 }
 0x164   : > { %11947 = vmatprep.mubr.msk.f32.mxu1 %vm12841_vm1, %v15230_v19  ;;  %11977 = vmatprep.mubr.msk.f32.mxu0 %vm12841_vm1, %v15230_v19 }
 0x165   : > { %11950 = vmatprep.subr.mxu1 %v15230_v19  ;;  %11985 = vmatprep.subr.mxu0 %v15230_v19 }
 0x166   : > { %11948 = vmatmul.mubr.msk.f32.vlgmr.msra.gmra.mxu1 %vm419_vm2, %v12962_v27  ;;  %v1420_v49 = vpop.permute.xlu1 %1419  ;;  %11978 = vmatmul.mubr.msk.f32.vlgmr.msra.gmra.mxu0 %vm419_vm2, %v12980_v33  ;;  %v1497_v50 = vpop.permute.xlu0 %1496 }
 0x167   : > { %11951 = vmatpush3.xpose.msk.msra.mxu1 %vm419_vm2, %v958_v43  ;;  %11986 = vmatpush3.xpose.msk.msra.mxu0 %vm419_vm2, %v1497_v50 }
 0x168   : > { %11952 = vmatprep.mubr.msk.f32.mxu1 %vm12841_vm1, %v15230_v19  ;;  %11987 = vmatprep.mubr.msk.f32.mxu0 %vm12841_vm1, %v15230_v19 }
 0x169   : > { %11960 = vmatprep.subr.mxu1 %v15230_v19  ;;  %11995 = vmatprep.subr.mxu0 %v15230_v19 }
 0x16a   : > { %11953 = vmatmul.mubr.msk.f32.vlgmr.msra.gmra.mxu1 %vm419_vm2, %v12960_v26  ;;  %v1574_v51 = vpop.permute.xlu1 %1573  ;;  %11988 = vmatmul.mubr.msk.f32.vlgmr.msra.gmra.mxu0 %vm419_vm2, %v12986_v35  ;;  %v1902_v53 = vpop.permute.xlu0 %1901 }
 0x16b   : > { %11961 = vmatpush3.xpose.msk.msra.mxu1 %vm419_vm2, %v1112_v45  ;;  %11962 = vmatprep.mubr.msk.f32.mxu1 %vm12841_vm1, %v15230_v19 }
 0x16c   : > { %11970 = vmatprep.subr.mxu1 %v15230_v19  ;;  %11997 = vmatprep.mubr.msk.f32.mxu0 %vm12841_vm1, %v15230_v19 }
 0x16e   : > { %11963 = vmatmul.mubr.msk.f32.vlgmr.msra.gmra.mxu1 %vm419_vm2, %v12966_v28  ;;  %v1826_v52 = vpop.permute.xlu1 %1825 }
 0x16f   : > { %11971 = vmatpush3.xpose.msk.msra.mxu1 %vm419_vm2, %v1266_v47  ;;  %11996 = vmatpush3.msra.mxu0 %v1826_v52 }
 0x170   : > { %11972 = vmatprep.mubr.msk.f32.mxu1 %vm12841_vm1, %v15230_v19  ;;  %11980 = vmatprep.subr.mxu1 %v15230_v19 }
 0x171   : > { %12005 = vmatprep.subr.mxu0 %v15230_v19 }
 0x172   : > { %11973 = vmatmul.mubr.msk.f32.vlgmr.msra.gmra.mxu1 %vm419_vm2, %v12972_v30 }
 0x173   : > { %11981 = vmatpush3.xpose.msk.msra.mxu1 %vm419_vm2, %v1420_v49  ;;  %11982 = vmatprep.mubr.msk.f32.mxu1 %vm12841_vm1, %v15230_v19 }
 0x174   : > { %11990 = vmatprep.subr.mxu1 %v15230_v19 }
 0x176   : > { %11983 = vmatmul.mubr.msk.f32.vlgmr.msra.gmra.mxu1 %vm419_vm2, %v12978_v32 }
 0x177   : > { %11991 = vmatpush3.xpose.msk.msra.mxu1 %vm419_vm2, %v1574_v51  ;;  %11992 = vmatprep.mubr.msk.f32.mxu1 %vm12841_vm1, %v15230_v19 }
 0x178   : > { %12000 = vmatprep.subr.mxu1 %v15230_v19 }
 0x17a   : > { %11993 = vmatmul.mubr.msk.f32.vlgmr.msra.gmra.mxu1 %vm419_vm2, %v12984_v34 }
 0x17b   : > { %12001 = vmatpush3.msra.mxu1 %v1902_v53  ;;  %12002 = vmatprep.mubr.msk.f32.mxu1 %vm12841_vm1, %v15230_v19 }
 0x17c   : > { %12010 = vmatprep.subr.mxu1 %v15230_v19 }
 0x20e   : > { %v13121_v54 = vpop.f32.mrf.mxu1 }
 0x20f   : > { %v1649_v55 = vsel %vm419_vm2, %v13121_v54, -inf }
 0x210   : > { %v11919_v56 = vpop.f32.mrf.mxu1  ;;  %1650 = vmax.xlane.f32.xlu0 %v1649_v55 }
 0x211   : > { %v13195_v56 = vpop.permute.xlu1 %1977 }
 0x212   : > { %v13125_v57 = vpop.f32.mrf.mxu1 }
 0x213   : > { %v1652_v58 = vsel %vm419_vm2, %v13125_v57, -inf }
 0x214   : > { %v11924_v59 = vpop.f32.mrf.mxu1  ;;  %1653 = vmax.xlane.f32.xlu1 %v1652_v58 }
 0x215   : > { %v13199_v58 = vpop.permute.xlu1 %2129  ;;  %v13201_v59 = vpop.permute.xlu0 %2053 }
 0x216   : > { %v13129_v60 = vpop.f32.mrf.mxu1 }
 0x217   : > { %v1655_v61 = vsel %vm419_vm2, %v13129_v60, -inf }
 0x218   : > { %v11929_v62 = vpop.f32.mrf.mxu1  ;;  %1656 = vmax.xlane.f32.xlu0 %v1655_v61 }
 0x219   : > { %v13203_v61 = vpop.permute.xlu1 %2205  ;;  %v13205_v62 = vpop.permute.xlu0 %2281 }
 0x21a   : > { %v13133_v63 = vpop.f32.mrf.mxu1 }
 0x21b   : > { %v1658_v0 = vsel %vm419_vm2, %v13133_v63, -inf }
 0x21c   : > { %v11934_v1 = vpop.f32.mrf.mxu1  ;;  %1659 = vmax.xlane.f32.xlu0 %v1658_v0 }
 0x21d   : > { %v13207_v0 = vpop.permute.xlu1 %2357  ;;  %v13209_v1 = vpop.permute.xlu0 %2433 }
 0x21e   : > { %v13137_v2 = vpop.f32.mrf.mxu1  ;;  %v13139_v3 = vpop.f32.mrf.mxu0 }
 0x21f   : > { %v1661_v4 = vsel %vm419_vm2, %v13137_v2, -inf  ;;  %v1673_v10 = vsel %vm419_vm2, %v13139_v3, -inf }
 0x220   : > { %v11939_v5 = vpop.f32.mrf.mxu1  ;;  %1662 = vmax.xlane.f32.xlu1 %v1661_v4  ;;  %v11959_v6 = vpop.f32.mrf.mxu0 }
 0x221   : > { %v13211_v4 = vpop.permute.xlu1 %2509  ;;  %v13213_v5 = vpop.permute.xlu0 %2585 }
 0x222   : > { %v13143_v7 = vpop.f32.mrf.mxu1  ;;  %v13145_v8 = vpop.f32.mrf.mxu0 }
 0x223   : > { %v1664_v9 = vsel %vm419_vm2, %v13143_v7, -inf  ;;  %v1679_v15 = vsel %vm419_vm2, %v13145_v8, -inf }
 0x224   : > { %v11944_v11 = vpop.f32.mrf.mxu1  ;;  %1665 = vmax.xlane.f32.xlu0 %v1664_v9  ;;  %1674 = vmax.xlane.f32.xlu1 %v1673_v10  ;;  %v11969_v12 = vpop.f32.mrf.mxu0 }
 0x225   : > { %v13215_v6 = vpop.permute.xlu1 %2661  ;;  %v13217_v9 = vpop.permute.xlu0 %2737 }
 0x226   : > { %v13151_v13 = vpop.f32.mrf.mxu1  ;;  %v13153_v14 = vpop.f32.mrf.mxu0 }
 0x227   : > { %v1667_v38 = vsel %vm419_vm2, %v13151_v13, -inf  ;;  %v1685_v43 = vsel %vm419_vm2, %v13153_v14, -inf }
 0x228   : > { %v11949_v16 = vpop.f32.mrf.mxu1  ;;  %1680 = vmax.xlane.f32.xlu1 %v1679_v15  ;;  %v11979_v17 = vpop.f32.mrf.mxu0 }
 0x229   : > { %v13219_v10 = vpop.permute.xlu1 %2813  ;;  %v13221_v11 = vpop.permute.xlu0 %3129 }
 0x22a   : > { %v13157_v18 = vpop.f32.mrf.mxu1  ;;  %v13159_v36 = vpop.f32.mrf.mxu0 }
 0x22b   : > { %v1670_v37 = vsel %vm419_vm2, %v13157_v18, -inf  ;;  %v1691_v47 = vsel %vm419_vm2, %v13159_v36, -inf }
 0x22c   : > { %v11954_v39 = vpop.f32.mrf.mxu1  ;;  %1671 = vmax.xlane.f32.xlu0 %v1670_v37  ;;  %1668 = vmax.xlane.f32.xlu1 %v1667_v38  ;;  %v11989_v40 = vpop.f32.mrf.mxu0 }
 0x22d   : > { %v13223_v12 = vpop.permute.xlu1 %2965  ;;  %v13225_v15 = vpop.permute.xlu0 %3127 }
 0x22e   : > { %v13165_v41 = vpop.f32.mrf.mxu1 }
 0x22f   : > { %v1676_v42 = vsel %vm419_vm2, %v13165_v41, -inf }
 0x230   : > { %v11964_v44 = vpop.f32.mrf.mxu1  ;;  %1677 = vmax.xlane.f32.xlu0 %v1676_v42  ;;  %1686 = vmax.xlane.f32.xlu1 %v1685_v43 }
 0x231   : > { %v13227_v16 = vpop.permute.xlu1 %3207  ;;  %v13229_v17 = vpop.permute.xlu0 %3285 }
 0x232   : > { %v13171_v45 = vpop.f32.mrf.mxu1  ;;  %15243 = vst [vmem:[#allocation7_spill] sm:$0xff] %v13229_v17 }
 0x233   : > { %v1682_v46 = vsel %vm419_vm2, %v13171_v45, -inf }
 0x234   : > { %v11974_v48 = vpop.f32.mrf.mxu1  ;;  %1683 = vmax.xlane.f32.xlu0 %v1682_v46  ;;  %1692 = vmax.xlane.f32.xlu1 %v1691_v47 }
 0x235   : > { %v13231_v37 = vpop.permute.xlu1 %3205  ;;  %v13233_v38 = vpop.permute.xlu0 %3283 }
 0x236   : > { %v13177_v49 = vpop.f32.mrf.mxu1  ;;  %15244 = vst [vmem:[#allocation8_spill] sm:$0xff] %v13233_v38 }
 0x237   : > { %v1688_v50 = vsel %vm419_vm2, %v13177_v49, -inf }
 0x238   : > { %v11984_v51 = vpop.f32.mrf.mxu1  ;;  %1689 = vmax.xlane.f32.xlu0 %v1688_v50 }
 0x239   : > { %v13235_v39 = vpop.permute.xlu1 %3363  ;;  %v13237_v40 = vpop.permute.xlu0 %2889 }
 0x23a   : > { %v13181_v52 = vpop.f32.mrf.mxu1 }
 0x23b   : > { %v1694_v53 = vsel %vm419_vm2, %v13181_v52, -inf }
 0x23c   : > { %v11994_v55 = vpop.f32.mrf.mxu1  ;;  %1695 = vmax.xlane.f32.xlu0 %v1694_v53 }
 0x23d   : > { %v13239_v42 = vpop.permute.xlu1 %3361 }
 0x23e   : > { %15245 = vst [vmem:[#allocation9_spill] sm:$0xff] %v13239_v42 }
 0x245   : > { %3519 = vrot.lane.b32.xlu1 %v12954_v24, %s12844_s29 }
 0x249   : > { %3517 = vrot.lane.b32.xlu1 %v12954_v24, %s12845_s30 }
 0x24d   : > { %3675 = vrot.lane.b32.xlu1 %v12960_v26, %s12844_s29 }
 0x252   : > { %3441 = vrot.lane.b32.xlu0 %v12956_v25, %s12844_s29 }
 0x256   : > { %3439 = vrot.lane.b32.xlu0 %v12956_v25, %s12845_s30 }
 0x25a   : > { %3597 = vrot.lane.b32.xlu0 %v12962_v27, %s12844_s29 }
 0x299   : > { %v1651_v43 = vpop.xlane.xlu0 %1650 }
 0x29a   : > { %v1697_v44 = vsub.f32 %v13121_v54, %v1651_v43 }
 0x29c   : > { %v1713_v46 = vmul.f32 1.442695, %v1697_v44 }
 0x29d   : > { %v1654_v47 = vpop.xlane.xlu1 %1653 }
 0x29e   : > { %12576 = vpow2.f32 %v1713_v46  ;;  %v1698_v48 = vsub.f32 %v13125_v57, %v1654_v47 }
 0x2a0   : > { %v1715_v50 = vmul.f32 1.442695, %v1698_v48 }
 0x2a1   : > { %v1657_v51 = vpop.xlane.xlu0 %1656 }
 0x2a2   : > { %12578 = vpow2.f32 %v1715_v50  ;;  %v1699_v53 = vsub.f32 %v13129_v60, %v1657_v51 }
 0x2a4   : > { %v1717_v55 = vmul.f32 1.442695, %v1699_v53 }
 0x2a5   : > { %v1660_v19 = vpop.xlane.xlu0 %1659 }
 0x2a6   : > { %12580 = vpow2.f32 %v1717_v55  ;;  %v1700_v38 = vsub.f32 %v13133_v63, %v1660_v19 }
 0x2a8   : > { %v1719_v17 = vmul.f32 1.442695, %v1700_v38 }
 0x2a9   : > { %v1663_v42 = vpop.xlane.xlu1 %1662 }
 0x2aa   : > { %12582 = vpow2.f32 %v1719_v17  ;;  %v1701_v54 = vsub.f32 %v13137_v2, %v1663_v42 }
 0x2ab   : > { %v13246_v43 = vpop.eup %12576 }
 0x2ac   : > { %v1721_v44 = vmul.f32 1.442695, %v1701_v54  ;;  %v1745_v57 = vsel %vm419_vm2, %v13246_v43, 0.0 }
 0x2ad   : > { %v1666_v46 = vpop.xlane.xlu0 %1665  ;;  %v1675_v47 = vpop.xlane.xlu1 %1674  ;;  %1746 = vadd.xlane.f32.xlu1 %v1745_v57 }
 0x2ae   : > { %12584 = vpow2.f32 %v1721_v44  ;;  %v1702_v60 = vsub.f32 %v13143_v7, %v1666_v46  ;;  %v1705_v48 = vsub.f32 %v13139_v3, %v1675_v47 }
 0x2af   : > { %v13252_v19 = vpop.eup %12578 }
 0x2b0   : > { %v1723_v63 = vmul.f32 1.442695, %v1702_v60  ;;  %v1729_v17 = vmul.f32 1.442695, %v1705_v48  ;;  %v1748_v2 = vsel %vm419_vm2, %v13252_v19, 0.0 }
 0x2b1   : > { %1749 = vadd.xlane.f32.xlu0 %v1748_v2  ;;  %v1681_v38 = vpop.xlane.xlu1 %1680 }
 0x2b2   : > { %12586 = vpow2.f32 %v1723_v63  ;;  %v1707_v42 = vsub.f32 %v13145_v8, %v1681_v38 }
 0x2b3   : > { %v13257_v50 = vpop.eup %12580  ;;  %12588 = vpow2.f32 %v1729_v17 }
 0x2b4   : > { %v1733_v51 = vmul.f32 1.442695, %v1707_v42  ;;  %v1751_v7 = vsel %vm419_vm2, %v13257_v50, 0.0 }
 0x2b5   : > { %v1672_v3 = vpop.xlane.xlu0 %1671  ;;  %v1669_v53 = vpop.xlane.xlu1 %1668  ;;  %1752 = vadd.xlane.f32.xlu1 %v1751_v7 }
 0x2b6   : > { %12590 = vpow2.f32 %v1733_v51  ;;  %v1704_v55 = vsub.f32 %v13157_v18, %v1672_v3  ;;  %v1703_v54 = vsub.f32 %v13151_v13, %v1669_v53 }
 0x2b7   : > { %v13263_v44 = vpop.eup %12582 }
 0x2b8   : > { %v1727_v57 = vmul.f32 1.442695, %v1704_v55  ;;  %v1725_v46 = vmul.f32 1.442695, %v1703_v54  ;;  %v1754_v8 = vsel %vm419_vm2, %v13263_v44, 0.0 }
 0x2b9   : > { %1755 = vadd.xlane.f32.xlu0 %v1754_v8  ;;  %v1678_v47 = vpop.xlane.xlu0 %1677  ;;  %v1687_v60 = vpop.xlane.xlu1 %1686 }
 0x2ba   : > { %12592 = vpow2.f32 %v1727_v57  ;;  %v1706_v48 = vsub.f32 %v13165_v41, %v1678_v47  ;;  %v1709_v63 = vsub.f32 %v13153_v14, %v1687_v60 }
 0x2bb   : > { %v13269_v17 = vpop.eup %12584  ;;  %12594 = vpow2.f32 %v1725_v46 }
 0x2bc   : > { %v1731_v18 = vmul.f32 1.442695, %v1706_v48  ;;  %v1737_v13 = vmul.f32 1.442695, %v1709_v63  ;;  %v1757_v2 = vsel %vm419_vm2, %v13269_v17, 0.0 }
 0x2bd   : > { %v1684_v38 = vpop.xlane.xlu0 %1683  ;;  %1758 = vadd.xlane.f32.xlu1 %v1757_v2  ;;  %v1693_v42 = vpop.xlane.xlu1 %1692 }
 0x2be   : > { %12596 = vpow2.f32 %v1731_v18  ;;  %v1708_v51 = vsub.f32 %v13171_v45, %v1684_v38  ;;  %v1711_v7 = vsub.f32 %v13159_v36, %v1693_v42 }
 0x2bf   : > { %v13275_v3 = vpop.eup %12586  ;;  %12598 = vpow2.f32 %v1737_v13 }
 0x2c0   : > { %v13277_v14 = vpop.eup %12588  ;;  %v1735_v41 = vmul.f32 1.442695, %v1708_v51  ;;  %v1741_v53 = vmul.f32 1.442695, %v1711_v7  ;;  %v1760_v55 = vsel %vm419_vm2, %v13275_v3, 0.0 }
 0x2c1   : > { %1761 = vadd.xlane.f32.xlu0 %v1760_v55  ;;  %v1690_v54 = vpop.xlane.xlu0 %1689  ;;  %v1769_v57 = vsel %vm419_vm2, %v13277_v14, 0.0 }
 0x2c2   : > { %12600 = vpow2.f32 %v1735_v41  ;;  %v1710_v45 = vsub.f32 %v13177_v49, %v1690_v54  ;;  %1770 = vadd.xlane.f32.xlu1 %v1769_v57 }
 0x2c3   : > { %v13284_v36 = vpop.eup %12590  ;;  %12602 = vpow2.f32 %v1741_v53 }
 0x2c4   : > { %v1739_v46 = vmul.f32 1.442695, %v1710_v45  ;;  %v1775_v8 = vsel %vm419_vm2, %v13284_v36, 0.0 }
 0x2c5   : > { %v1696_v47 = vpop.xlane.xlu0 %1695 }
 0x2c6   : > { %12604 = vpow2.f32 %v1739_v46  ;;  %v1712_v60 = vsub.f32 %v13181_v52, %v1696_v47  ;;  %1776 = vadd.xlane.f32.xlu1 %v1775_v8  ;;  %v13370_v46 = vpop.permute.xlu1 %3519 }
 0x2c7   : > { %v13289_v48 = vpop.eup %12592 }
 0x2c8   : > { %v13291_v63 = vpop.eup %12594  ;;  %v1743_v18 = vmul.f32 1.442695, %v1712_v60  ;;  %v1766_v49 = vsel %vm419_vm2, %v13289_v48, 0.0 }
 0x2c9   : > { %1767 = vadd.xlane.f32.xlu0 %v1766_v49  ;;  %v1763_v13 = vsel %vm419_vm2, %v13291_v63, 0.0  ;;  %v13374_v8 = vpop.permute.xlu0 %3441 }
 0x2ca   : > { %12606 = vpow2.f32 %v1743_v18  ;;  %1764 = vadd.xlane.f32.xlu1 %v1763_v13  ;;  %v13379_v47 = vpop.permute.xlu1 %3517 }
 0x2cb   : > { %v13297_v2 = vpop.eup %12596 }
 0x2cc   : > { %v13299_v38 = vpop.eup %12598  ;;  %v1772_v52 = vsel %vm419_vm2, %v13297_v2, 0.0 }
 0x2cd   : > { %1773 = vadd.xlane.f32.xlu0 %v1772_v52  ;;  %v1781_v42 = vsel %vm419_vm2, %v13299_v38, 0.0  ;;  %v13385_v60 = vpop.permute.xlu0 %3439 }
 0x2ce   : > { %1782 = vadd.xlane.f32.xlu1 %v1781_v42  ;;  %v13387_v18 = vpop.permute.xlu1 %3675 }
 0x2cf   : > { %v13305_v51 = vpop.eup %12600 }
 0x2d0   : > { %v13307_v7 = vpop.eup %12602  ;;  %v1778_v41 = vsel %vm419_vm2, %v13305_v51, 0.0 }
 0x2d1   : > { %1779 = vadd.xlane.f32.xlu0 %v1778_v41  ;;  %v1787_v53 = vsel %vm419_vm2, %v13307_v7, 0.0  ;;  %v13393_v49 = vpop.permute.xlu0 %3597 }
 0x2d2   : > { %1788 = vadd.xlane.f32.xlu1 %v1787_v53 }
 0x2d3   : > { %v13313_v55 = vpop.eup %12604 }
 0x2d4   : > { %v1784_v54 = vsel %vm419_vm2, %v13313_v55, 0.0 }
 0x2d5   : > { %1785 = vadd.xlane.f32.xlu0 %v1784_v54 }
 0x2d7   : > { %v13317_v57 = vpop.eup %12606 }
 0x2d8   : > { %v1790_v45 = vsel %vm419_vm2, %v13317_v57, 0.0 }
 0x2d9   : > { %1791 = vadd.xlane.f32.xlu0 %v1790_v45 }
 0x2e3   : > { %3673 = vrot.lane.b32.xlu1 %v12960_v26, %s12845_s30 }
 0x2e7   : > { %3831 = vrot.lane.b32.xlu1 %v12966_v28, %s12844_s29 }
 0x2eb   : > { %3829 = vrot.lane.b32.xlu1 %v12966_v28, %s12845_s30 }
 0x2ef   : > { %3987 = vrot.lane.b32.xlu1 %v12972_v30, %s12844_s29  ;;  %3595 = vrot.lane.b32.xlu0 %v12962_v27, %s12845_s30 }
 0x2f3   : > { %3985 = vrot.lane.b32.xlu1 %v12972_v30, %s12845_s30  ;;  %3753 = vrot.lane.b32.xlu0 %v12968_v29, %s12844_s29 }
 0x2f7   : > { %4143 = vrot.lane.b32.xlu1 %v12978_v32, %s12844_s29  ;;  %3751 = vrot.lane.b32.xlu0 %v12968_v29, %s12845_s30 }
 0x2fb   : > { %4141 = vrot.lane.b32.xlu1 %v12978_v32, %s12845_s30  ;;  %3909 = vrot.lane.b32.xlu0 %v12974_v31, %s12844_s29 }
 0x2ff   : > { %4299 = vrot.lane.b32.xlu1 %v12984_v34, %s12844_s29  ;;  %3907 = vrot.lane.b32.xlu0 %v12974_v31, %s12845_s30 }
 0x303   : > { %4297 = vrot.lane.b32.xlu1 %v12984_v34, %s12845_s30  ;;  %4065 = vrot.lane.b32.xlu0 %v12980_v33, %s12844_s29 }
 0x307   : > { %4551 = vrot.lane.b32.xlu1 %v12945_v21, %s12846_s5  ;;  %4063 = vrot.lane.b32.xlu0 %v12980_v33, %s12845_s30 }
 0x30b   : > { %4703 = vrot.lane.b32.xlu1 %v12950_v23, %s12846_s5  ;;  %4221 = vrot.lane.b32.xlu0 %v12986_v35, %s12844_s29 }
 0x30f   : > { %4855 = vrot.lane.b32.xlu1 %v12956_v25, %s12846_s5  ;;  %4219 = vrot.lane.b32.xlu0 %v12986_v35, %s12845_s30 }
 0x313   : > { %4931 = vrot.lane.b32.xlu1 %v12954_v24, %s12846_s5  ;;  %4627 = vrot.lane.b32.xlu0 %v12943_v20, %s12846_s5 }
 0x317   : > { %5083 = vrot.lane.b32.xlu1 %v12960_v26, %s12846_s5  ;;  %4779 = vrot.lane.b32.xlu0 %v12948_v22, %s12846_s5 }
 0x31b   : > { %5235 = vrot.lane.b32.xlu1 %v12966_v28, %s12846_s5  ;;  %5007 = vrot.lane.b32.xlu0 %v12962_v27, %s12846_s5 }
 0x31f   : > { %5387 = vrot.lane.b32.xlu1 %v12972_v30, %s12846_s5  ;;  %5159 = vrot.lane.b32.xlu0 %v12968_v29, %s12846_s5 }
 0x323   : > { %5539 = vrot.lane.b32.xlu1 %v12978_v32, %s12846_s5  ;;  %5311 = vrot.lane.b32.xlu0 %v12974_v31, %s12846_s5 }
 0x327   : > { %5691 = vrot.lane.b32.xlu1 %v12984_v34, %s12846_s5  ;;  %5463 = vrot.lane.b32.xlu0 %v12980_v33, %s12846_s5 }
 0x32b   : > { %5930 = vrot.lane.b32.xlu1 %v12943_v20, %s12847_s6  ;;  %5615 = vrot.lane.b32.xlu0 %v12986_v35, %s12846_s5 }
 0x32f   : > { %5928 = vrot.lane.b32.xlu1 %v12943_v20, %s12848_s7  ;;  %5852 = vrot.lane.b32.xlu0 %v12945_v21, %s12847_s6 }
 0x333   : > { %6086 = vrot.lane.b32.xlu1 %v12948_v22, %s12847_s6  ;;  %5850 = vrot.lane.b32.xlu0 %v12945_v21, %s12848_s7 }
 0x336   : > { %v1747_v13 = vpop.xlane.xlu1 %1746 }
 0x337   : > { %6084 = vrot.lane.b32.xlu1 %v12948_v22, %s12848_s7  ;;  %12608 = vrcp.f32 %v1747_v13  ;;  %6008 = vrot.lane.b32.xlu0 %v12950_v23, %s12847_s6  ;;  %v15246_v22 = vmov 0.0  }
 0x33a   : > { %v1750_v52 = vpop.xlane.xlu0 %1749 }
 0x33b   : > { %12610 = vrcp.f32 %v1750_v52  ;;  %6006 = vrot.lane.b32.xlu0 %v12950_v23, %s12848_s7 }
 0x33e   : > { %v1753_v42 = vpop.xlane.xlu1 %1752 }
 0x33f   : > { %12612 = vrcp.f32 %v1753_v42 }
 0x342   : > { %v1756_v41 = vpop.xlane.xlu0 %1755 }
 0x343   : > { %12614 = vrcp.f32 %v1756_v41 }
 0x344   : > { %v12609_v53 = vpop.eup %12608 }
 0x345   : > { %v1809_v54 = vmul.f32 %v12609_v53, %v13246_v43 }
 0x346   : > { %v1759_v45 = vpop.xlane.xlu1 %1758 }
 0x347   : > { %12616 = vrcp.f32 %v1759_v45  ;;  %11998 = vmatmul.mubr.msk.f32.vlgmr.msra.gmra.mxu0 %vm419_vm2, %v1809_v54 }
 0x348   : > { %v12611_v13 = vpop.eup %12610  ;;  %12006 = vmatpush3.msra.mxu0 %v13195_v56  ;;  %12007 = vmatprep.mubr.msk.f32.mxu0 %vm12841_vm1, %v15246_v22 }
 0x349   : > { %v1810_v52 = vmul.f32 %v12611_v13, %v13252_v19  ;;  %12015 = vmatprep.subr.mxu0 %v15246_v22 }
 0x34a   : > { %v1762_v42 = vpop.xlane.xlu0 %1761 }
 0x34b   : > { %12618 = vrcp.f32 %v1762_v42  ;;  %v1771_v41 = vpop.xlane.xlu1 %1770  ;;  %12003 = vmatmul.mubr.msk.f32.vlgmr.msra.gmra.mxu1 %vm419_vm2, %v1810_v52 }
 0x34c   : > { %v12613_v43 = vpop.eup %12612  ;;  %12011 = vmatpush3.msra.mxu1 %v13201_v59  ;;  %12012 = vmatprep.mubr.msk.f32.mxu1 %vm12841_vm1, %v15246_v22 }
 0x34d   : > { %v1811_v56 = vmul.f32 %v12613_v43, %v13257_v50  ;;  %12020 = vmatprep.subr.mxu1 %v15246_v22 }
 0x34f   : > { %v1777_v53 = vpop.xlane.xlu1 %1776  ;;  %12008 = vmatmul.mubr.msk.f32.vlgmr.msra.gmra.mxu0 %vm419_vm2, %v1811_v56 }
 0x350   : > { %v12615_v19 = vpop.eup %12614  ;;  %12016 = vmatpush3.msra.mxu0 %v13199_v58  ;;  %12017 = vmatprep.mubr.msk.f32.mxu0 %vm12841_vm1, %v15246_v22 }
 0x351   : > { %v1812_v54 = vmul.f32 %v12615_v19, %v13263_v44  ;;  %12025 = vmatprep.subr.mxu0 %v15246_v22 }
 0x352   : > { %v1768_v59 = vpop.xlane.xlu0 %1767 }
 0x353   : > { %12620 = vrcp.f32 %v1768_v59  ;;  %v1765_v45 = vpop.xlane.xlu1 %1764  ;;  %12013 = vmatmul.mubr.msk.f32.vlgmr.msra.gmra.mxu1 %vm419_vm2, %v1812_v54 }
 0x354   : > { %v12617_v50 = vpop.eup %12616  ;;  %12622 = vrcp.f32 %v1765_v45  ;;  %12021 = vmatpush3.msra.mxu1 %v13203_v61  ;;  %12022 = vmatprep.mubr.msk.f32.mxu1 %vm12841_vm1, %v15246_v22 }
 0x355   : > { %v1813_v58 = vmul.f32 %v12617_v50, %v13269_v17  ;;  %12030 = vmatprep.subr.mxu1 %v15246_v22  ;;  %12624 = vrcp.f32 %v1771_v41 }
 0x356   : > { %v1774_v44 = vpop.xlane.xlu0 %1773 }
 0x357   : > { %12626 = vrcp.f32 %v1774_v44  ;;  %v1783_v13 = vpop.xlane.xlu1 %1782  ;;  %12018 = vmatmul.mubr.msk.f32.vlgmr.msra.gmra.mxu0 %vm419_vm2, %v1813_v58 }
 0x358   : > { %v12619_v52 = vpop.eup %12618  ;;  %12026 = vmatpush3.msra.mxu0 %v13205_v62  ;;  %12027 = vmatprep.mubr.msk.f32.mxu0 %vm12841_vm1, %v15246_v22  ;;  %12628 = vrcp.f32 %v1777_v53 }
 0x359   : > { %v1814_v61 = vmul.f32 %v12619_v52, %v13275_v3  ;;  %12035 = vmatprep.subr.mxu0 %v15246_v22 }
 0x35a   : > { %v1780_v17 = vpop.xlane.xlu0 %1779 }
 0x35b   : > { %12630 = vrcp.f32 %v1780_v17  ;;  %v1789_v42 = vpop.xlane.xlu1 %1788  ;;  %12023 = vmatmul.mubr.msk.f32.vlgmr.msra.gmra.mxu1 %vm419_vm2, %v1814_v61 }
 0x35c   : > { %12031 = vmatpush3.msra.mxu1 %v13207_v0  ;;  %12032 = vmatprep.mubr.msk.f32.mxu1 %vm12841_vm1, %v15246_v22  ;;  %12632 = vrcp.f32 %v1783_v13 }
 0x35d   : > { %12040 = vmatprep.subr.mxu1 %v15246_v22 }
 0x35e   : > { %v1786_v62 = vpop.xlane.xlu0 %1785 }
 0x35f   : > { %12634 = vrcp.f32 %v1786_v62  ;;  %v13437_v41 = vpop.permute.xlu1 %3673 }
 0x360   : > { %v12621_v3 = vpop.eup %12620  ;;  %12636 = vrcp.f32 %v1789_v42 }
 0x361   : > { %v12623_v43 = vpop.eup %12622  ;;  %v1816_v56 = vmul.f32 %v12621_v3, %v13289_v48 }
 0x362   : > { %v1792_v53 = vpop.xlane.xlu0 %1791  ;;  %v1815_v19 = vmul.f32 %v12623_v43, %v13291_v63  ;;  %v12625_v54 = vpop.eup %12624 }
 0x363   : > { %12638 = vrcp.f32 %v1792_v53  ;;  %12033 = vmatmul.mubr.msk.f32.vlgmr.msra.gmra.mxu1 %vm419_vm2, %v1816_v56  ;;  %v13442_v59 = vpop.permute.xlu1 %3831  ;;  %v1817_v45 = vmul.f32 %v12625_v54, %v13277_v14 }
 0x364   : > { %v12627_v0 = vpop.eup %12626  ;;  %12028 = vmatmul.mubr.msk.f32.vlgmr.msra.gmra.mxu0 %vm419_vm2, %v1815_v19  ;;  %12041 = vmatpush3.msra.mxu1 %v13211_v4 }
 0x365   : > { %12036 = vmatpush3.msra.mxu0 %v13209_v1  ;;  %12042 = vmatprep.mubr.msk.f32.mxu1 %vm12841_vm1, %v15246_v22  ;;  %v1818_v48 = vmul.f32 %v12627_v0, %v13297_v2  ;;  %v12629_v50 = vpop.eup %12628 }
 0x366   : > { %12050 = vmatprep.subr.mxu1 %v15246_v22  ;;  %v13451_v63 = vpop.permute.xlu0 %3595  ;;  %12037 = vmatprep.mubr.msk.f32.mxu0 %vm12841_vm1, %v15246_v22  ;;  %v1819_v58 = vmul.f32 %v12629_v50, %v13284_v36 }
 0x367   : > { %12045 = vmatprep.subr.mxu0 %v15246_v22  ;;  %12043 = vmatmul.mubr.msk.f32.vlgmr.msra.gmra.mxu1 %vm419_vm2, %v1818_v48  ;;  %v13464_v2 = vpop.permute.xlu1 %3829 }
 0x368   : > { %v12631_v1 = vpop.eup %12630  ;;  %12038 = vmatmul.mubr.msk.f32.vlgmr.msra.gmra.mxu0 %vm419_vm2, %v1817_v45  ;;  %12051 = vmatpush3.msra.mxu1 %v13215_v6 }
 0x369   : > { %12046 = vmatpush3.msra.mxu0 %v13213_v5  ;;  %12052 = vmatprep.mubr.msk.f32.mxu1 %vm12841_vm1, %v15246_v22  ;;  %v1820_v4 = vmul.f32 %v12631_v1, %v13305_v51  ;;  %v12633_v44 = vpop.eup %12632 }
 0x36a   : > { %12060 = vmatprep.subr.mxu1 %v15246_v22  ;;  %v13467_v14 = vpop.permute.xlu0 %3753  ;;  %12047 = vmatprep.mubr.msk.f32.mxu0 %vm12841_vm1, %v15246_v22  ;;  %v1821_v51 = vmul.f32 %v12633_v44, %v13299_v38 }
 0x36b   : > { %12055 = vmatprep.subr.mxu0 %v15246_v22  ;;  %12053 = vmatmul.mubr.msk.f32.vlgmr.msra.gmra.mxu1 %vm419_vm2, %v1820_v4 }
 0x36c   : > { %v12635_v5 = vpop.eup %12634  ;;  %12048 = vmatmul.mubr.msk.f32.vlgmr.msra.gmra.mxu0 %vm419_vm2, %v1819_v58  ;;  %12061 = vmatpush3.msra.mxu1 %v13219_v10  ;;  %v3988_v10 = vpop.permute.xlu1 %3987 }
 0x36d   : > { %12056 = vmatpush3.msra.mxu0 %v13217_v9  ;;  %12062 = vmatprep.mubr.msk.f32.mxu1 %vm12841_vm1, %v15246_v22  ;;  %v1822_v6 = vmul.f32 %v12635_v5, %v13313_v55  ;;  %v12637_v13 = vpop.eup %12636 }
 0x36e   : > { %12070 = vmatprep.subr.mxu1 %v15246_v22  ;;  %v13481_v36 = vpop.permute.xlu0 %3751  ;;  %12057 = vmatprep.mubr.msk.f32.mxu0 %vm12841_vm1, %v15246_v22  ;;  %v1823_v52 = vmul.f32 %v12637_v13, %v13307_v7  ;;  %v15249_v7 = vld [vmem:[#allocation8_spill] sm:$0xff] }
 0x36f   : > { %12065 = vmatprep.subr.mxu0 %v15246_v22  ;;  %12063 = vmatmul.mubr.msk.f32.vlgmr.msra.gmra.mxu1 %vm419_vm2, %v1822_v6 }
 0x370   : > { %v12639_v9 = vpop.eup %12638  ;;  %12058 = vmatmul.mubr.msk.f32.vlgmr.msra.gmra.mxu0 %vm419_vm2, %v1821_v51  ;;  %12071 = vmatpush3.msra.mxu1 %v13223_v12  ;;  %v3986_v12 = vpop.permute.xlu1 %3985 }
 0x371   : > { %12066 = vmatpush3.msra.mxu0 %v13237_v40  ;;  %12072 = vmatprep.mubr.msk.f32.mxu1 %vm12841_vm1, %v15246_v22  ;;  %v1824_v55 = vmul.f32 %v12639_v9, %v13317_v57 }
 0x372   : > { %12080 = vmatprep.subr.mxu1 %v15246_v22  ;;  %v3910_v38 = vpop.permute.xlu0 %3909  ;;  %12067 = vmatprep.mubr.msk.f32.mxu0 %vm12841_vm1, %v15246_v22 }
 0x373   : > { %12075 = vmatprep.subr.mxu0 %v15246_v22  ;;  %12073 = vmatmul.mubr.msk.f32.vlgmr.msra.gmra.mxu1 %vm419_vm2, %v1824_v55 }
 0x374   : > { %12068 = vmatmul.mubr.msk.f32.vlgmr.msra.gmra.mxu0 %vm419_vm2, %v1823_v52  ;;  %12081 = vmatpush3.xpose.msk.msra.mxu1 %vm419_vm2, %v13227_v16 }
 0x375   : > { %12076 = vmatpush3.xpose.msk.msra.mxu0 %vm419_vm2, %v13221_v11  ;;  %12082 = vmatprep.mubr.msk.f32.mxu1 %vm12841_vm1, %v15246_v22  ;;  %v15247_v11 = vld [vmem:[#allocation7_spill] sm:$0xff] }
 0x376   : > { %12090 = vmatprep.subr.mxu1 %v15246_v22  ;;  %v3908_v40 = vpop.permute.xlu0 %3907  ;;  %12077 = vmatprep.mubr.msk.f32.mxu0 %vm12841_vm1, %v15246_v22 }
 0x377   : > { %12085 = vmatprep.subr.mxu0 %v15246_v22  ;;  %12083 = vmatmul.mubr.msk.f32.vlgmr.msra.gmra.mxu1 %vm419_vm2, %v13231_v37  ;;  %v15248_v37 = vld [vmem:[#allocation9_spill] sm:$0xff] }
 0x378   : > { %12078 = vmatmul.mubr.msk.f32.vlgmr.msra.gmra.mxu0 %vm419_vm2, %v13225_v15  ;;  %12091 = vmatpush3.xpose.msk.msra.mxu1 %vm419_vm2, %v13235_v39  ;;  %v4144_v15 = vpop.permute.xlu1 %4143 }
 0x379   : > { %12086 = vmatpush3.xpose.msk.msra.mxu0 %vm419_vm2, %v15247_v11  ;;  %12092 = vmatprep.mubr.msk.f32.mxu1 %vm12841_vm1, %v15246_v22 }
 0x37a   : > { %12100 = vmatprep.subr.mxu1 %v15246_v22  ;;  %12087 = vmatprep.mubr.msk.f32.mxu0 %vm12841_vm1, %v15246_v22  ;;  %v4066_v16 = vpop.permute.xlu0 %4065 }
 0x37b   : > { %12095 = vmatprep.subr.mxu0 %v15246_v22  ;;  %12093 = vmatmul.mubr.msk.f32.vlgmr.msra.gmra.mxu1 %vm419_vm2, %v15248_v37 }
 0x37c   : > { %12088 = vmatmul.mubr.msk.f32.vlgmr.msra.gmra.mxu0 %vm419_vm2, %v15249_v7  ;;  %12101 = vmatpush3.xpose.msk.msra.mxu1 %vm419_vm2, %v13370_v46  ;;  %v4142_v57 = vpop.permute.xlu1 %4141 }
 0x37d   : > { %12096 = vmatpush3.xpose.msk.msra.mxu0 %vm419_vm2, %v13374_v8  ;;  %12102 = vmatprep.mubr.msk.f32.mxu1 %vm12841_vm1, %v15246_v22 }
 0x37e   : > { %12097 = vmatprep.mubr.msk.f32.mxu0 %vm12841_vm1, %v15246_v22  ;;  %12105 = vmatprep.subr.mxu0 %v15246_v22  ;;  %v4064_v39 = vpop.permute.xlu0 %4063 }
 0x37f   : > { %12110 = vmatprep.subr.mxu1 %v15246_v22  ;;  %12103 = vmatmul.mubr.msk.f32.vlgmr.msra.gmra.mxu1 %vm419_vm2, %v13379_v47 }
 0x380   : > { %12098 = vmatmul.mubr.msk.f32.vlgmr.msra.gmra.mxu0 %vm419_vm2, %v13385_v60  ;;  %12111 = vmatpush3.xpose.msk.msra.mxu1 %vm419_vm2, %v13387_v18  ;;  %v4300_v8 = vpop.permute.xlu1 %4299 }
 0x381   : > { %12106 = vmatpush3.xpose.msk.msra.mxu0 %vm419_vm2, %v13393_v49  ;;  %12107 = vmatprep.mubr.msk.f32.mxu0 %vm12841_vm1, %v15246_v22 }
 0x382   : > { %12112 = vmatprep.mubr.msk.f32.mxu1 %vm12841_vm1, %v15246_v22  ;;  %12115 = vmatprep.subr.mxu0 %v15246_v22  ;;  %v4222_v46 = vpop.permute.xlu0 %4221 }
 0x383   : > { %12120 = vmatprep.subr.mxu1 %v15246_v22  ;;  %12113 = vmatmul.mubr.msk.f32.vlgmr.msra.gmra.mxu1 %vm419_vm2, %v13437_v41 }
 0x384   : > { %12108 = vmatmul.mubr.msk.f32.vlgmr.msra.gmra.mxu0 %vm419_vm2, %v13451_v63  ;;  %12121 = vmatpush3.xpose.msk.msra.mxu1 %vm419_vm2, %v13442_v59  ;;  %v4298_v60 = vpop.permute.xlu1 %4297 }
 0x385   : > { %12116 = vmatpush3.xpose.msk.msra.mxu0 %vm419_vm2, %v13467_v14  ;;  %12117 = vmatprep.mubr.msk.f32.mxu0 %vm12841_vm1, %v15246_v22 }
 0x386   : > { %12122 = vmatprep.mubr.msk.f32.mxu1 %vm12841_vm1, %v15246_v22  ;;  %12125 = vmatprep.subr.mxu0 %v15246_v22  ;;  %v4220_v47 = vpop.permute.xlu0 %4219 }
 0x387   : > { %12130 = vmatprep.subr.mxu1 %v15246_v22  ;;  %12123 = vmatmul.mubr.msk.f32.vlgmr.msra.gmra.mxu1 %vm419_vm2, %v13464_v2 }
 0x388   : > { %12118 = vmatmul.mubr.msk.f32.vlgmr.msra.gmra.mxu0 %vm419_vm2, %v13481_v36  ;;  %12131 = vmatpush3.xpose.msk.msra.mxu1 %vm419_vm2, %v3988_v10  ;;  %v4552_v49 = vpop.permute.xlu1 %4551 }
 0x389   : > { %12126 = vmatpush3.xpose.msk.msra.mxu0 %vm419_vm2, %v3910_v38  ;;  %12127 = vmatprep.mubr.msk.f32.mxu0 %vm12841_vm1, %v15246_v22 }
 0x38a   : > { %12132 = vmatprep.mubr.msk.f32.mxu1 %vm12841_vm1, %v15246_v22  ;;  %12135 = vmatprep.subr.mxu0 %v15246_v22  ;;  %v4628_v18 = vpop.permute.xlu0 %4627 }
 0x38b   : > { %12140 = vmatprep.subr.mxu1 %v15246_v22  ;;  %12133 = vmatmul.mubr.msk.f32.vlgmr.msra.gmra.mxu1 %vm419_vm2, %v3986_v12 }
 0x38c   : > { %12128 = vmatmul.mubr.msk.f32.vlgmr.msra.gmra.mxu0 %vm419_vm2, %v3908_v40  ;;  %12141 = vmatpush3.xpose.msk.msra.mxu1 %vm419_vm2, %v4144_v15 }
 0x38d   : > { %12136 = vmatpush3.xpose.msk.msra.mxu0 %vm419_vm2, %v4066_v16  ;;  %12137 = vmatprep.mubr.msk.f32.mxu0 %vm12841_vm1, %v15246_v22 }
 0x38e   : > { %12142 = vmatprep.mubr.msk.f32.mxu1 %vm12841_vm1, %v15246_v22  ;;  %12145 = vmatprep.subr.mxu0 %v15246_v22 }
 0x38f   : > { %12150 = vmatprep.subr.mxu1 %v15246_v22  ;;  %12143 = vmatmul.mubr.msk.f32.vlgmr.msra.gmra.mxu1 %vm419_vm2, %v4142_v57 }
 0x390   : > { %12138 = vmatmul.mubr.msk.f32.vlgmr.msra.gmra.mxu0 %vm419_vm2, %v4064_v39  ;;  %12151 = vmatpush3.xpose.msk.msra.mxu1 %vm419_vm2, %v4300_v8 }
 0x391   : > { %12146 = vmatpush3.xpose.msk.msra.mxu0 %vm419_vm2, %v4222_v46  ;;  %12147 = vmatprep.mubr.msk.f32.mxu0 %vm12841_vm1, %v15246_v22 }
 0x392   : > { %12152 = vmatprep.mubr.msk.f32.mxu1 %vm12841_vm1, %v15246_v22  ;;  %12155 = vmatprep.subr.mxu0 %v15246_v22 }
 0x393   : > { %12160 = vmatprep.subr.mxu1 %v15246_v22  ;;  %12153 = vmatmul.mubr.msk.f32.vlgmr.msra.gmra.mxu1 %vm419_vm2, %v4298_v60 }
 0x394   : > { %12148 = vmatmul.mubr.msk.f32.vlgmr.msra.gmra.mxu0 %vm419_vm2, %v4220_v47  ;;  %12161 = vmatpush3.msra.mxu1 %v4628_v18 }
 0x395   : > { %12156 = vmatpush3.msra.mxu0 %v4552_v49  ;;  %12157 = vmatprep.mubr.msk.f32.mxu0 %vm12841_vm1, %v15246_v22 }
 0x396   : > { %12162 = vmatprep.mubr.msk.f32.mxu1 %vm12841_vm1, %v15246_v22  ;;  %12165 = vmatprep.subr.mxu0 %v15246_v22 }
 0x397   : > { %12170 = vmatprep.subr.mxu1 %v15246_v22 }
 0x407   : > { %v13607_v61 = vpop.f32.mrf.mxu0 }
 0x408   : > { %15250 = vst [vmem:[#allocation7_spill] sm:$0xff] %v13607_v61 }
 0x409   : > { %v11999_v17 = vpop.f32.mrf.mxu0 }
 0x40b   : > { %v13609_v42 = vpop.f32.mrf.mxu1 }
 0x40c   : > { %15251 = vst [vmem:[#allocation9_spill] sm:$0xff] %v13609_v42 }
 0x40d   : > { %v12004_v62 = vpop.f32.mrf.mxu1 }
 0x40f   : > { %v13611_v41 = vpop.f32.mrf.mxu0 }
 0x410   : > { %15252 = vst [vmem:[#allocation8_spill] sm:$0xff] %v13611_v41 }
 0x411   : > { %v12009_v3 = vpop.f32.mrf.mxu0 }
 0x413   : > { %v13613_v43 = vpop.f32.mrf.mxu1 }
 0x414   : > { %15253 = vst [vmem:[#allocation10_spill] sm:$0xff] %v13613_v43 }
 0x415   : > { %v12014_v56 = vpop.f32.mrf.mxu1 }
 0x417   : > { %v13615_v53 = vpop.f32.mrf.mxu0 }
 0x418   : > { %15254 = vst [vmem:[#allocation11_spill] sm:$0xff] %v13615_v53 }
 0x419   : > { %v12019_v19 = vpop.f32.mrf.mxu0 }
 0x41b   : > { %v13617_v54 = vpop.f32.mrf.mxu1 }
 0x41c   : > { %15255 = vst [vmem:[#allocation12_spill] sm:$0xff] %v13617_v54 }
 0x41d   : > { %v12024_v0 = vpop.f32.mrf.mxu1 }
 0x423   : > { %v13619_v59 = vpop.f32.mrf.mxu1 }
 0x424   : > { %15256 = vst [vmem:[#allocation13_spill] sm:$0xff] %v13619_v59  ;;  %v13621_v48 = vpop.f32.mrf.mxu0 }
 0x425   : > { %15257 = vst [vmem:[#allocation14_spill] sm:$0xff] %v13621_v48  ;;  %v12034_v63 = vpop.f32.mrf.mxu1 }
 0x426   : > { %v12029_v45 = vpop.f32.mrf.mxu0 }
 0x427   : > { %v13623_v50 = vpop.f32.mrf.mxu1 }
 0x428   : > { %15258 = vst [vmem:[#allocation15_spill] sm:$0xff] %v13623_v50  ;;  %v13625_v1 = vpop.f32.mrf.mxu0 }
 0x429   : > { %15259 = vst [vmem:[#allocation16_spill] sm:$0xff] %v13625_v1  ;;  %v12044_v4 = vpop.f32.mrf.mxu1 }
 0x42a   : > { %v12039_v2 = vpop.f32.mrf.mxu0 }
 0x42b   : > { %v13627_v14 = vpop.f32.mrf.mxu1 }
 0x42c   : > { %15260 = vst [vmem:[#allocation17_spill] sm:$0xff] %v13627_v14  ;;  %v13629_v58 = vpop.f32.mrf.mxu0 }
 0x42d   : > { %15261 = vst [vmem:[#allocation18_spill] sm:$0xff] %v13629_v58  ;;  %v12054_v44 = vpop.f32.mrf.mxu1 }
 0x42e   : > { %v12049_v5 = vpop.f32.mrf.mxu0 }
 0x42f   : > { %v13631_v6 = vpop.f32.mrf.mxu1 }
 0x430   : > { %15262 = vst [vmem:[#allocation19_spill] sm:$0xff] %v13631_v6  ;;  %v13633_v36 = vpop.f32.mrf.mxu0 }
 0x431   : > { %15263 = vst [vmem:[#allocation20_spill] sm:$0xff] %v13633_v36  ;;  %v12064_v51 = vpop.f32.mrf.mxu1 }
 0x432   : > { %v12059_v13 = vpop.f32.mrf.mxu0 }
 0x433   : > { %v13635_v9 = vpop.f32.mrf.mxu1 }
 0x434   : > { %15264 = vst [vmem:[#allocation21_spill] sm:$0xff] %v13635_v9  ;;  %v13637_v10 = vpop.f32.mrf.mxu0 }
 0x435   : > { %15265 = vst [vmem:[#allocation22_spill] sm:$0xff] %v13637_v10  ;;  %v12074_v55 = vpop.f32.mrf.mxu1 }
 0x436   : > { %v12069_v38 = vpop.f32.mrf.mxu0 }
 0x437   : > { %v13639_v52 = vpop.f32.mrf.mxu1 }
 0x438   : > { %v13641_v12 = vpop.f32.mrf.mxu0  ;;  %v4378_v40 = vsel %vm419_vm2, %v13639_v52, -inf }
 0x439   : > { %v12084_v11 = vpop.f32.mrf.mxu1  ;;  %4379 = vmax.xlane.f32.xlu1 %v4378_v40  ;;  %v4375_v16 = vsel %vm419_vm2, %v13641_v12, -inf }
 0x43a   : > { %4376 = vmax.xlane.f32.xlu0 %v4375_v16  ;;  %v12079_v37 = vpop.f32.mrf.mxu0 }
 0x43b   : > { %v13647_v15 = vpop.f32.mrf.mxu1 }
 0x43c   : > { %v13649_v7 = vpop.f32.mrf.mxu0  ;;  %v4384_v18 = vsel %vm419_vm2, %v13647_v15, -inf }
 0x43d   : > { %v12094_v39 = vpop.f32.mrf.mxu1  ;;  %v4381_v57 = vsel %vm419_vm2, %v13649_v7, -inf }
 0x43e   : > { %4382 = vmax.xlane.f32.xlu0 %v4381_v57  ;;  %v12089_v46 = vpop.f32.mrf.mxu0 }
 0x43f   : > { %v13653_v8 = vpop.f32.mrf.mxu1 }
 0x440   : > { %v13655_v47 = vpop.f32.mrf.mxu0  ;;  %v4390_v19 = vsel %vm419_vm2, %v13653_v8, -inf }
 0x441   : > { %v12104_v60 = vpop.f32.mrf.mxu1  ;;  %v4387_v49 = vsel %vm419_vm2, %v13655_v47, -inf }
 0x442   : > { %4385 = vmax.xlane.f32.xlu0 %v4384_v18  ;;  %4388 = vmax.xlane.f32.xlu1 %v4387_v49  ;;  %v12099_v17 = vpop.f32.mrf.mxu0 }
 0x443   : > { %v13661_v62 = vpop.f32.mrf.mxu1 }
 0x444   : > { %v13663_v3 = vpop.f32.mrf.mxu0  ;;  %v4396_v44 = vsel %vm419_vm2, %v13661_v62, -inf }
 0x445   : > { %v12114_v56 = vpop.f32.mrf.mxu1  ;;  %v4393_v0 = vsel %vm419_vm2, %v13663_v3, -inf }
 0x446   : > { %4391 = vmax.xlane.f32.xlu0 %v4390_v19  ;;  %4394 = vmax.xlane.f32.xlu1 %v4393_v0  ;;  %v12109_v63 = vpop.f32.mrf.mxu0 }
 0x447   : > { %v13669_v45 = vpop.f32.mrf.mxu1 }
 0x448   : > { %v13671_v4 = vpop.f32.mrf.mxu0  ;;  %v4402_v40 = vsel %vm419_vm2, %v13669_v45, -inf }
 0x449   : > { %v12124_v2 = vpop.f32.mrf.mxu1  ;;  %v4399_v5 = vsel %vm419_vm2, %v13671_v4, -inf }
 0x44a   : > { %4397 = vmax.xlane.f32.xlu0 %v4396_v44  ;;  %4400 = vmax.xlane.f32.xlu1 %v4399_v5  ;;  %v12119_v51 = vpop.f32.mrf.mxu0  ;;  %v13715_v44 = vpop.permute.xlu1 %4703 }
 0x44b   : > { %v13677_v13 = vpop.f32.mrf.mxu1 }
 0x44c   : > { %v13679_v55 = vpop.f32.mrf.mxu0  ;;  %v4408_v46 = vsel %vm419_vm2, %v13677_v13, -inf }
 0x44d   : > { %v12134_v38 = vpop.f32.mrf.mxu1  ;;  %v4405_v11 = vsel %vm419_vm2, %v13679_v55, -inf }
 0x44e   : > { %4403 = vmax.xlane.f32.xlu0 %v4402_v40  ;;  %4406 = vmax.xlane.f32.xlu1 %v4405_v11  ;;  %v12129_v16 = vpop.f32.mrf.mxu0  ;;  %v13717_v5 = vpop.permute.xlu1 %4855 }
 0x44f   : > { %v13685_v37 = vpop.f32.mrf.mxu1  ;;  %v13721_v38 = vpop.permute.xlu0 %4779 }
 0x450   : > { %v13687_v39 = vpop.f32.mrf.mxu0  ;;  %v4414_v19 = vsel %vm419_vm2, %v13685_v37, -inf }
 0x451   : > { %v12144_v57 = vpop.f32.mrf.mxu1  ;;  %v4411_v60 = vsel %vm419_vm2, %v13687_v39, -inf }
 0x452   : > { %4409 = vmax.xlane.f32.xlu0 %v4408_v46  ;;  %4412 = vmax.xlane.f32.xlu1 %v4411_v60  ;;  %v12139_v18 = vpop.f32.mrf.mxu0  ;;  %v13719_v51 = vpop.permute.xlu1 %4931 }
 0x453   : > { %v13693_v49 = vpop.f32.mrf.mxu1  ;;  %v13725_v11 = vpop.permute.xlu0 %5007 }
 0x454   : > { %v13695_v17 = vpop.f32.mrf.mxu0  ;;  %v4420_v2 = vsel %vm419_vm2, %v13693_v49, -inf }
 0x455   : > { %v12154_v56 = vpop.f32.mrf.mxu1  ;;  %v4417_v0 = vsel %vm419_vm2, %v13695_v17, -inf }
 0x456   : > { %4415 = vmax.xlane.f32.xlu0 %v4414_v19  ;;  %4418 = vmax.xlane.f32.xlu1 %v4417_v0  ;;  %v12149_v63 = vpop.f32.mrf.mxu0  ;;  %v13723_v40 = vpop.permute.xlu1 %5083 }
 0x457   : > { %v13729_v57 = vpop.permute.xlu0 %5159 }
 0x45a   : > { %4421 = vmax.xlane.f32.xlu0 %v4420_v2  ;;  %v13727_v16 = vpop.permute.xlu1 %5235 }
 0x45b   : > { %v13733_v60 = vpop.permute.xlu0 %5311 }
 0x45e   : > { %v13731_v46 = vpop.permute.xlu1 %5387 }
 0x45f   : > { %v13737_v56 = vpop.permute.xlu0 %5463 }
 0x462   : > { %v13735_v18 = vpop.permute.xlu1 %5539 }
 0x463   : > { %v13741_v0 = vpop.permute.xlu0 %5615 }
 0x466   : > { %v13739_v19 = vpop.permute.xlu1 %5691 }
 0x467   : > { %6242 = vrot.lane.b32.xlu1 %v12954_v24, %s12847_s6  ;;  %v13745_v2 = vpop.permute.xlu0 %5852 }
 0x46a   : > { %v13743_v63 = vpop.permute.xlu1 %5930 }
 0x46b   : > { %6240 = vrot.lane.b32.xlu1 %v12954_v24, %s12848_s7  ;;  %v13749_v36 = vpop.permute.xlu0 %5850 }
 0x46e   : > { %v13747_v10 = vpop.permute.xlu1 %5928 }
 0x46f   : > { %6398 = vrot.lane.b32.xlu1 %v12960_v26, %s12847_s6  ;;  %15266 = vst [vmem:[#allocation23_spill] sm:$0xff] %v13747_v10  ;;  %v13753_v58 = vpop.permute.xlu0 %6008 }
 0x470   : > { %6164 = vrot.lane.b32.xlu0 %v12956_v25, %s12847_s6  ;;  %15268 = vst [vmem:[#allocation25_spill] sm:$0xff] %v13753_v58 }
 0x472   : > { %v13751_v9 = vpop.permute.xlu1 %6086 }
 0x473   : > { %15267 = vst [vmem:[#allocation24_spill] sm:$0xff] %v13751_v9  ;;  %v13757_v1 = vpop.permute.xlu0 %6006 }
 0x474   : > { %6162 = vrot.lane.b32.xlu0 %v12956_v25, %s12848_s7  ;;  %15270 = vst [vmem:[#allocation27_spill] sm:$0xff] %v13757_v1 }
 0x476   : > { %v13755_v6 = vpop.permute.xlu1 %6084 }
 0x477   : > { %15269 = vst [vmem:[#allocation26_spill] sm:$0xff] %v13755_v6 }
 0x478   : > { %6320 = vrot.lane.b32.xlu0 %v12962_v27, %s12847_s6 }
 0x4c2   : > { %v4380_v14 = vpop.xlane.xlu1 %4379 }
 0x4c3   : > { %v4424_v48 = vsub.f32 %v13639_v52, %v4380_v14  ;;  %v4377_v50 = vpop.xlane.xlu0 %4376 }
 0x4c4   : > { %v4423_v53 = vsub.f32 %v13641_v12, %v4377_v50 }
 0x4c5   : > { %v4441_v59 = vmul.f32 1.442695, %v4424_v48 }
 0x4c6   : > { %v4439_v41 = vmul.f32 1.442695, %v4423_v53 }
 0x4c7   : > { %12640 = vpow2.f32 %v4441_v59  ;;  %v4383_v54 = vpop.xlane.xlu0 %4382 }
 0x4c8   : > { %12642 = vpow2.f32 %v4439_v41  ;;  %v4425_v42 = vsub.f32 %v13649_v7, %v4383_v54 }
 0x4ca   : > { %v4443_v43 = vmul.f32 1.442695, %v4425_v42 }
 0x4cb   : > { %v4386_v61 = vpop.xlane.xlu0 %4385  ;;  %v4389_v9 = vpop.xlane.xlu1 %4388 }
 0x4cc   : > { %12644 = vpow2.f32 %v4443_v43  ;;  %v4426_v6 = vsub.f32 %v13647_v15, %v4386_v61  ;;  %v4427_v1 = vsub.f32 %v13655_v47, %v4389_v9 }
 0x4ce   : > { %v4445_v10 = vmul.f32 1.442695, %v4426_v6  ;;  %v4447_v14 = vmul.f32 1.442695, %v4427_v1 }
 0x4cf   : > { %v4392_v52 = vpop.xlane.xlu0 %4391  ;;  %v4395_v58 = vpop.xlane.xlu1 %4394 }
 0x4d0   : > { %12646 = vpow2.f32 %v4445_v10  ;;  %v4428_v53 = vsub.f32 %v13653_v8, %v4392_v52  ;;  %v4429_v59 = vsub.f32 %v13663_v3, %v4395_v58 }
 0x4d1   : > { %12648 = vpow2.f32 %v4447_v14 }
 0x4d2   : > { %v4449_v41 = vmul.f32 1.442695, %v4428_v53  ;;  %v4451_v54 = vmul.f32 1.442695, %v4429_v59 }
 0x4d3   : > { %v4398_v42 = vpop.xlane.xlu0 %4397  ;;  %v4401_v48 = vpop.xlane.xlu1 %4400 }
 0x4d4   : > { %v13766_v50 = vpop.eup %12640  ;;  %12650 = vpow2.f32 %v4449_v41  ;;  %v4430_v61 = vsub.f32 %v13661_v62, %v4398_v42  ;;  %v4431_v43 = vsub.f32 %v13671_v4, %v4401_v48 }
 0x4d5   : > { %v13770_v1 = vpop.eup %12642  ;;  %12652 = vpow2.f32 %v4451_v54  ;;  %v4474_v6 = vsel %vm419_vm2, %v13766_v50, 0.0 }
 0x4d6   : > { %v4453_v9 = vmul.f32 1.442695, %v4430_v61  ;;  %v4455_v58 = vmul.f32 1.442695, %v4431_v43  ;;  %4475 = vadd.xlane.f32.xlu0 %v4474_v6  ;;  %v4471_v10 = vsel %vm419_vm2, %v13770_v1, 0.0 }
 0x4d7   : > { %v4404_v12 = vpop.xlane.xlu0 %4403  ;;  %v4407_v15 = vpop.xlane.xlu1 %4406  ;;  %4472 = vadd.xlane.f32.xlu1 %v4471_v10 }
 0x4d8   : > { %12654 = vpow2.f32 %v4453_v9  ;;  %v4432_v7 = vsub.f32 %v13669_v45, %v4404_v12  ;;  %v4433_v8 = vsub.f32 %v13679_v55, %v4407_v15 }
 0x4d9   : > { %v13778_v47 = vpop.eup %12644  ;;  %12656 = vpow2.f32 %v4455_v58 }
 0x4da   : > { %v4457_v62 = vmul.f32 1.442695, %v4432_v7  ;;  %v4459_v3 = vmul.f32 1.442695, %v4433_v8  ;;  %v4477_v4 = vsel %vm419_vm2, %v13778_v47, 0.0 }
 0x4db   : > { %v4410_v14 = vpop.xlane.xlu0 %4409  ;;  %v4413_v52 = vpop.xlane.xlu1 %4412  ;;  %4478 = vadd.xlane.f32.xlu1 %v4477_v4 }
 0x4dc   : > { %12658 = vpow2.f32 %v4457_v62  ;;  %v4434_v53 = vsub.f32 %v13677_v13, %v4410_v14  ;;  %v4435_v59 = vsub.f32 %v13687_v39, %v4413_v52 }
 0x4dd   : > { %v13784_v41 = vpop.eup %12646  ;;  %12660 = vpow2.f32 %v4459_v3 }
 0x4de   : > { %v13786_v45 = vpop.eup %12648  ;;  %v4461_v55 = vmul.f32 1.442695, %v4434_v53  ;;  %v4463_v54 = vmul.f32 1.442695, %v4435_v59  ;;  %v4480_v42 = vsel %vm419_vm2, %v13784_v41, 0.0 }
 0x4df   : > { %4481 = vadd.xlane.f32.xlu0 %v4480_v42  ;;  %v4416_v48 = vpop.xlane.xlu0 %4415  ;;  %v4483_v61 = vsel %vm419_vm2, %v13786_v45, 0.0  ;;  %v4419_v43 = vpop.xlane.xlu1 %4418 }
 0x4e0   : > { %12662 = vpow2.f32 %v4461_v55  ;;  %v4436_v13 = vsub.f32 %v13685_v37, %v4416_v48  ;;  %4484 = vadd.xlane.f32.xlu1 %v4483_v61  ;;  %v4437_v39 = vsub.f32 %v13695_v17, %v4419_v43 }
 0x4e1   : > { %v13794_v6 = vpop.eup %12650  ;;  %12664 = vpow2.f32 %v4463_v54 }
 0x4e2   : > { %v13796_v9 = vpop.eup %12652  ;;  %v4465_v58 = vmul.f32 1.442695, %v4436_v13  ;;  %v4467_v10 = vmul.f32 1.442695, %v4437_v39  ;;  %v4486_v12 = vsel %vm419_vm2, %v13794_v6, 0.0 }
 0x4e3   : > { %4487 = vadd.xlane.f32.xlu0 %v4486_v12  ;;  %v4422_v15 = vpop.xlane.xlu0 %4421  ;;  %v4489_v7 = vsel %vm419_vm2, %v13796_v9, 0.0 }
 0x4e4   : > { %12666 = vpow2.f32 %v4465_v58  ;;  %v4438_v37 = vsub.f32 %v13693_v49, %v4422_v15  ;;  %4490 = vadd.xlane.f32.xlu1 %v4489_v7  ;;  %v13897_v15 = vpop.permute.xlu1 %6242 }
 0x4e5   : > { %v13803_v17 = vpop.eup %12654  ;;  %12668 = vpow2.f32 %v4467_v10  ;;  %v15271_v10 = vld [vmem:[#allocation4_spill] sm:$0xff] }
 0x4e6   : > { %v13805_v8 = vpop.eup %12656  ;;  %v4469_v62 = vmul.f32 1.442695, %v4438_v37  ;;  %v4492_v3 = vsel %vm419_vm2, %v13803_v17, 0.0 }
 0x4e7   : > { %4493 = vadd.xlane.f32.xlu0 %v4492_v3  ;;  %v4495_v4 = vsel %vm419_vm2, %v13805_v8, 0.0  ;;  %v13895_v12 = vpop.permute.xlu0 %6164 }
 0x4e8   : > { %12670 = vpow2.f32 %v4469_v62  ;;  %4496 = vadd.xlane.f32.xlu1 %v4495_v4  ;;  %v13909_v37 = vpop.permute.xlu1 %6240 }
 0x4e9   : > { %v13811_v14 = vpop.eup %12658 }
 0x4ea   : > { %v13813_v52 = vpop.eup %12660  ;;  %v4498_v49 = vsel %vm419_vm2, %v13811_v14, 0.0 }
 0x4eb   : > { %4499 = vadd.xlane.f32.xlu0 %v4498_v49  ;;  %v4501_v53 = vsel %vm419_vm2, %v13813_v52, 0.0  ;;  %v13903_v7 = vpop.permute.xlu0 %6162 }
 0x4ec   : > { %4502 = vadd.xlane.f32.xlu1 %v4501_v53  ;;  %v13917_v3 = vpop.permute.xlu1 %6398 }
 0x4ed   : > { %v13819_v59 = vpop.eup %12662 }
 0x4ee   : > { %v13821_v55 = vpop.eup %12664  ;;  %v4504_v54 = vsel %vm419_vm2, %v13819_v59, 0.0 }
 0x4ef   : > { %4505 = vadd.xlane.f32.xlu0 %v4504_v54  ;;  %v4507_v42 = vsel %vm419_vm2, %v13821_v55, 0.0  ;;  %v13915_v62 = vpop.permute.xlu0 %6320 }
 0x4f0   : > { %4508 = vadd.xlane.f32.xlu1 %v4507_v42 }
 0x4f1   : > { %v13827_v48 = vpop.eup %12666 }
 0x4f2   : > { %v13829_v61 = vpop.eup %12668  ;;  %v4510_v43 = vsel %vm419_vm2, %v13827_v48, 0.0 }
 0x4f3   : > { %4511 = vadd.xlane.f32.xlu0 %v4510_v43  ;;  %v4513_v13 = vsel %vm419_vm2, %v13829_v61, 0.0 }
 0x4f4   : > { %4514 = vadd.xlane.f32.xlu1 %v4513_v13 }
 0x4f5   : > { %v13835_v39 = vpop.eup %12670 }
 0x4f6   : > { %v4516_v58 = vsel %vm419_vm2, %v13835_v39, 0.0 }
 0x4f7   : > { %4517 = vadd.xlane.f32.xlu0 %v4516_v58 }
 0x505   : > { %6396 = vrot.lane.b32.xlu1 %v12960_v26, %s12848_s7 }
 0x509   : > { %6554 = vrot.lane.b32.xlu1 %v12966_v28, %s12847_s6 }
 0x50d   : > { %6552 = vrot.lane.b32.xlu1 %v12966_v28, %s12848_s7  ;;  %6318 = vrot.lane.b32.xlu0 %v12962_v27, %s12848_s7 }
 0x511   : > { %6710 = vrot.lane.b32.xlu1 %v12972_v30, %s12847_s6  ;;  %6476 = vrot.lane.b32.xlu0 %v12968_v29, %s12847_s6 }
 0x515   : > { %6708 = vrot.lane.b32.xlu1 %v12972_v30, %s12848_s7  ;;  %6474 = vrot.lane.b32.xlu0 %v12968_v29, %s12848_s7 }
 0x519   : > { %6866 = vrot.lane.b32.xlu1 %v12978_v32, %s12847_s6  ;;  %6632 = vrot.lane.b32.xlu0 %v12974_v31, %s12847_s6 }
 0x51d   : > { %6864 = vrot.lane.b32.xlu1 %v12978_v32, %s12848_s7  ;;  %6630 = vrot.lane.b32.xlu0 %v12974_v31, %s12848_s7 }
 0x521   : > { %7022 = vrot.lane.b32.xlu1 %v12984_v34, %s12847_s6  ;;  %6788 = vrot.lane.b32.xlu0 %v12980_v33, %s12847_s6 }
 0x525   : > { %7020 = vrot.lane.b32.xlu1 %v12984_v34, %s12848_s7  ;;  %6786 = vrot.lane.b32.xlu0 %v12980_v33, %s12848_s7 }
 0x529   : > { %7274 = vrot.lane.b32.xlu1 %v12945_v21, %s12849_s8  ;;  %6944 = vrot.lane.b32.xlu0 %v12986_v35, %s12847_s6 }
 0x52d   : > { %7426 = vrot.lane.b32.xlu1 %v12950_v23, %s12849_s8  ;;  %6942 = vrot.lane.b32.xlu0 %v12986_v35, %s12848_s7 }
 0x531   : > { %7578 = vrot.lane.b32.xlu1 %v12956_v25, %s12849_s8  ;;  %7350 = vrot.lane.b32.xlu0 %v12943_v20, %s12849_s8 }
 0x535   : > { %7654 = vrot.lane.b32.xlu1 %v12954_v24, %s12849_s8  ;;  %7502 = vrot.lane.b32.xlu0 %v15271_v10, %s12849_s8 }
 0x539   : > { %7806 = vrot.lane.b32.xlu1 %v12960_v26, %s12849_s8  ;;  %7730 = vrot.lane.b32.xlu0 %v12962_v27, %s12849_s8 }
 0x53d   : > { %7958 = vrot.lane.b32.xlu1 %v12966_v28, %s12849_s8  ;;  %7882 = vrot.lane.b32.xlu0 %v12968_v29, %s12849_s8 }
 0x541   : > { %8110 = vrot.lane.b32.xlu1 %v12972_v30, %s12849_s8  ;;  %8034 = vrot.lane.b32.xlu0 %v12974_v31, %s12849_s8 }
 0x545   : > { %8262 = vrot.lane.b32.xlu1 %v12978_v32, %s12849_s8  ;;  %8186 = vrot.lane.b32.xlu0 %v12980_v33, %s12849_s8 }
 0x549   : > { %8414 = vrot.lane.b32.xlu1 %v12984_v34, %s12849_s8  ;;  %8338 = vrot.lane.b32.xlu0 %v12986_v35, %s12849_s8 }
 0x54d   : > { %8653 = vrot.lane.b32.xlu1 %v12943_v20, %s12850_s9  ;;  %8575 = vrot.lane.b32.xlu0 %v12945_v21, %s12850_s9 }
 0x551   : > { %8651 = vrot.lane.b32.xlu1 %v12943_v20, %s12851_s10  ;;  %8573 = vrot.lane.b32.xlu0 %v12945_v21, %s12851_s10 }
 0x555   : > { %8809 = vrot.lane.b32.xlu1 %v15271_v10, %s12850_s9  ;;  %8731 = vrot.lane.b32.xlu0 %v12950_v23, %s12850_s9 }
 0x559   : > { %8807 = vrot.lane.b32.xlu1 %v15271_v10, %s12851_s10  ;;  %8729 = vrot.lane.b32.xlu0 %v12950_v23, %s12851_s10 }
 0x55f   : > { %v4476_v4 = vpop.xlane.xlu0 %4475 }
 0x560   : > { %12672 = vrcp.f32 %v4476_v4  ;;  %v4473_v49 = vpop.xlane.xlu1 %4472 }
 0x561   : > { %12674 = vrcp.f32 %v4473_v49 }
 0x564   : > { %v4479_v53 = vpop.xlane.xlu1 %4478 }
 0x565   : > { %12676 = vrcp.f32 %v4479_v53 }
 0x568   : > { %v4482_v54 = vpop.xlane.xlu0 %4481 }
 0x569   : > { %12678 = vrcp.f32 %v4482_v54  ;;  %v4485_v42 = vpop.xlane.xlu1 %4484 }
 0x56a   : > { %12680 = vrcp.f32 %v4485_v42 }
 0x56c   : > { %v4488_v43 = vpop.xlane.xlu0 %4487 }
 0x56d   : > { %v12673_v13 = vpop.eup %12672  ;;  %12682 = vrcp.f32 %v4488_v43  ;;  %v4491_v58 = vpop.xlane.xlu1 %4490 }
 0x56e   : > { %v12675_v10 = vpop.eup %12674  ;;  %12684 = vrcp.f32 %v4491_v58  ;;  %v4536_v20 = vmul.f32 %v12673_v13, %v13766_v50 }
 0x56f   : > { %v4535_v23 = vmul.f32 %v12675_v10, %v13770_v1 }
 0x570   : > { %v4494_v35 = vpop.xlane.xlu0 %4493  ;;  %12163 = vmatmul.mubr.msk.f32.vlgmr.msra.gmra.mxu1 %vm419_vm2, %v4536_v20 }
 0x571   : > { %12686 = vrcp.f32 %v4494_v35  ;;  %v4497_v4 = vpop.xlane.xlu1 %4496  ;;  %12158 = vmatmul.mubr.msk.f32.vlgmr.msra.gmra.mxu0 %vm419_vm2, %v4535_v23  ;;  %12171 = vmatpush3.msra.mxu1 %v13721_v38 }
 0x572   : > { %v12677_v49 = vpop.eup %12676  ;;  %12688 = vrcp.f32 %v4497_v4  ;;  %12166 = vmatpush3.msra.mxu0 %v13715_v44  ;;  %12167 = vmatprep.mubr.msk.f32.mxu0 %vm12841_vm1, %v15246_v22 }
 0x573   : > { %12175 = vmatprep.subr.mxu0 %v15246_v22  ;;  %v4537_v50 = vmul.f32 %v12677_v49, %v13778_v47  ;;  %12172 = vmatprep.mubr.msk.f32.mxu1 %vm12841_vm1, %v15246_v22 }
 0x574   : > { %v4500_v20 = vpop.xlane.xlu0 %4499  ;;  %12180 = vmatprep.subr.mxu1 %v15246_v22 }
 0x575   : > { %12690 = vrcp.f32 %v4500_v20  ;;  %v4503_v23 = vpop.xlane.xlu1 %4502  ;;  %12168 = vmatmul.mubr.msk.f32.vlgmr.msra.gmra.mxu0 %vm419_vm2, %v4537_v50 }
 0x576   : > { %v12679_v35 = vpop.eup %12678  ;;  %12692 = vrcp.f32 %v4503_v23  ;;  %12176 = vmatpush3.msra.mxu0 %v13717_v5  ;;  %12177 = vmatprep.mubr.msk.f32.mxu0 %vm12841_vm1, %v15246_v22 }
 0x577   : > { %v12681_v44 = vpop.eup %12680  ;;  %12185 = vmatprep.subr.mxu0 %v15246_v22  ;;  %v4538_v38 = vmul.f32 %v12679_v35, %v13784_v41  ;;  %v15274_v35 = vld [vmem:[#allocation27_spill] sm:$0xff] }
 0x578   : > { %v4506_v1 = vpop.xlane.xlu0 %4505  ;;  %v4539_v47 = vmul.f32 %v12681_v44, %v13786_v45 }
 0x579   : > { %12694 = vrcp.f32 %v4506_v1  ;;  %v4509_v10 = vpop.xlane.xlu1 %4508  ;;  %12173 = vmatmul.mubr.msk.f32.vlgmr.msra.gmra.mxu1 %vm419_vm2, %v4538_v38  ;;  %v15276_v38 = vld [vmem:[#allocation26_spill] sm:$0xff] }
 0x57a   : > { %v12683_v53 = vpop.eup %12682  ;;  %12696 = vrcp.f32 %v4509_v10  ;;  %12178 = vmatmul.mubr.msk.f32.vlgmr.msra.gmra.mxu0 %vm419_vm2, %v4539_v47  ;;  %12181 = vmatpush3.msra.mxu1 %v13719_v51 }
 0x57b   : > { %v12685_v5 = vpop.eup %12684  ;;  %12186 = vmatpush3.msra.mxu0 %v13725_v11  ;;  %12182 = vmatprep.mubr.msk.f32.mxu1 %vm12841_vm1, %v15246_v22  ;;  %v4540_v41 = vmul.f32 %v12683_v53, %v13794_v6 }
 0x57c   : > { %12190 = vmatprep.subr.mxu1 %v15246_v22  ;;  %v4512_v45 = vpop.xlane.xlu0 %4511  ;;  %12187 = vmatprep.mubr.msk.f32.mxu0 %vm12841_vm1, %v15246_v22  ;;  %v4541_v54 = vmul.f32 %v12685_v5, %v13796_v9 }
 0x57d   : > { %12698 = vrcp.f32 %v4512_v45  ;;  %12195 = vmatprep.subr.mxu0 %v15246_v22  ;;  %v4515_v51 = vpop.xlane.xlu1 %4514  ;;  %12183 = vmatmul.mubr.msk.f32.vlgmr.msra.gmra.mxu1 %vm419_vm2, %v4540_v41 }
 0x57e   : > { %v12687_v11 = vpop.eup %12686  ;;  %12700 = vrcp.f32 %v4515_v51  ;;  %12188 = vmatmul.mubr.msk.f32.vlgmr.msra.gmra.mxu0 %vm419_vm2, %v4541_v54  ;;  %12191 = vmatpush3.msra.mxu1 %v13723_v40 }
 0x57f   : > { %v12689_v6 = vpop.eup %12688  ;;  %12196 = vmatpush3.msra.mxu0 %v13729_v57  ;;  %12192 = vmatprep.mubr.msk.f32.mxu1 %vm12841_vm1, %v15246_v22  ;;  %v4542_v9 = vmul.f32 %v12687_v11, %v13803_v17 }
 0x580   : > { %12200 = vmatprep.subr.mxu1 %v15246_v22  ;;  %v4518_v42 = vpop.xlane.xlu0 %4517  ;;  %12197 = vmatprep.mubr.msk.f32.mxu0 %vm12841_vm1, %v15246_v22  ;;  %v4543_v43 = vmul.f32 %v12689_v6, %v13805_v8 }
 0x581   : > { %12702 = vrcp.f32 %v4518_v42  ;;  %12205 = vmatprep.subr.mxu0 %v15246_v22  ;;  %v13963_v40 = vpop.permute.xlu1 %6396  ;;  %12193 = vmatmul.mubr.msk.f32.vlgmr.msra.gmra.mxu1 %vm419_vm2, %v4542_v9 }
 0x582   : > { %v12691_v57 = vpop.eup %12690  ;;  %12198 = vmatmul.mubr.msk.f32.vlgmr.msra.gmra.mxu0 %vm419_vm2, %v4543_v43  ;;  %12201 = vmatpush3.msra.mxu1 %v13727_v16 }
 0x583   : > { %v12693_v17 = vpop.eup %12692  ;;  %12206 = vmatpush3.msra.mxu0 %v13733_v60  ;;  %12202 = vmatprep.mubr.msk.f32.mxu1 %vm12841_vm1, %v15246_v22  ;;  %v4544_v8 = vmul.f32 %v12691_v57, %v13811_v14 }
 0x584   : > { %12210 = vmatprep.subr.mxu1 %v15246_v22  ;;  %v13973_v13 = vpop.permute.xlu0 %6318  ;;  %12207 = vmatprep.mubr.msk.f32.mxu0 %vm12841_vm1, %v15246_v22  ;;  %v4545_v58 = vmul.f32 %v12693_v17, %v13813_v52 }
 0x585   : > { %12215 = vmatprep.subr.mxu0 %v15246_v22  ;;  %v13979_v16 = vpop.permute.xlu1 %6554  ;;  %12203 = vmatmul.mubr.msk.f32.vlgmr.msra.gmra.mxu1 %vm419_vm2, %v4544_v8 }
 0x586   : > { %v12695_v60 = vpop.eup %12694  ;;  %12208 = vmatmul.mubr.msk.f32.vlgmr.msra.gmra.mxu0 %vm419_vm2, %v4545_v58  ;;  %12211 = vmatpush3.msra.mxu1 %v13731_v46 }
 0x587   : > { %v12697_v14 = vpop.eup %12696  ;;  %12216 = vmatpush3.msra.mxu0 %v13737_v56  ;;  %12212 = vmatprep.mubr.msk.f32.mxu1 %vm12841_vm1, %v15246_v22  ;;  %v4546_v4 = vmul.f32 %v12695_v60, %v13819_v59 }
 0x588   : > { %12220 = vmatprep.subr.mxu1 %v15246_v22  ;;  %v13989_v52 = vpop.permute.xlu0 %6476  ;;  %12217 = vmatprep.mubr.msk.f32.mxu0 %vm12841_vm1, %v15246_v22  ;;  %v4547_v49 = vmul.f32 %v12697_v14, %v13821_v55 }
 0x589   : > { %12225 = vmatprep.subr.mxu0 %v15246_v22  ;;  %v13995_v46 = vpop.permute.xlu1 %6552  ;;  %12213 = vmatmul.mubr.msk.f32.vlgmr.msra.gmra.mxu1 %vm419_vm2, %v4546_v4 }
 0x58a   : > { %v12699_v56 = vpop.eup %12698  ;;  %12218 = vmatmul.mubr.msk.f32.vlgmr.msra.gmra.mxu0 %vm419_vm2, %v4547_v49  ;;  %12221 = vmatpush3.msra.mxu1 %v13735_v18 }
 0x58b   : > { %v12701_v59 = vpop.eup %12700  ;;  %12226 = vmatpush3.msra.mxu0 %v13741_v0  ;;  %12222 = vmatprep.mubr.msk.f32.mxu1 %vm12841_vm1, %v15246_v22  ;;  %v4548_v50 = vmul.f32 %v12699_v56, %v13827_v48 }
 0x58c   : > { %12230 = vmatprep.subr.mxu1 %v15246_v22  ;;  %v6475_v55 = vpop.permute.xlu0 %6474  ;;  %12227 = vmatprep.mubr.msk.f32.mxu0 %vm12841_vm1, %v15246_v22  ;;  %v4549_v20 = vmul.f32 %v12701_v59, %v13829_v61 }
 0x58d   : > { %12235 = vmatprep.subr.mxu0 %v15246_v22  ;;  %v6711_v23 = vpop.permute.xlu1 %6710  ;;  %12223 = vmatmul.mubr.msk.f32.vlgmr.msra.gmra.mxu1 %vm419_vm2, %v4548_v50 }
 0x58e   : > { %v12703_v18 = vpop.eup %12702  ;;  %12228 = vmatmul.mubr.msk.f32.vlgmr.msra.gmra.mxu0 %vm419_vm2, %v4549_v20  ;;  %12231 = vmatpush3.msra.mxu1 %v13739_v19  ;;  %v15272_v19 = vld [vmem:[#allocation25_spill] sm:$0xff] }
 0x58f   : > { %12236 = vmatpush3.xpose.msk.msra.mxu0 %vm419_vm2, %v13745_v2  ;;  %12232 = vmatprep.mubr.msk.f32.mxu1 %vm12841_vm1, %v15246_v22  ;;  %v4550_v0 = vmul.f32 %v12703_v18, %v13835_v39  ;;  %v15273_v39 = vld [vmem:[#allocation23_spill] sm:$0xff] }
 0x590   : > { %12240 = vmatprep.subr.mxu1 %v15246_v22  ;;  %v6633_v48 = vpop.permute.xlu0 %6632  ;;  %12237 = vmatprep.mubr.msk.f32.mxu0 %vm12841_vm1, %v15246_v22 }
 0x591   : > { %12245 = vmatprep.subr.mxu0 %v15246_v22  ;;  %v6709_v61 = vpop.permute.xlu1 %6708  ;;  %12233 = vmatmul.mubr.msk.f32.vlgmr.msra.gmra.mxu1 %vm419_vm2, %v4550_v0 }
 0x592   : > { %12238 = vmatmul.mubr.msk.f32.vlgmr.msra.gmra.mxu0 %vm419_vm2, %v13749_v36  ;;  %12241 = vmatpush3.xpose.msk.msra.mxu1 %vm419_vm2, %v13743_v63  ;;  %v15275_v63 = vld [vmem:[#allocation24_spill] sm:$0xff] }
 0x593   : > { %12246 = vmatpush3.xpose.msk.msra.mxu0 %vm419_vm2, %v15272_v19  ;;  %12242 = vmatprep.mubr.msk.f32.mxu1 %vm12841_vm1, %v15246_v22 }
 0x594   : > { %12250 = vmatprep.subr.mxu1 %v15246_v22  ;;  %v6631_v2 = vpop.permute.xlu0 %6630  ;;  %12247 = vmatprep.mubr.msk.f32.mxu0 %vm12841_vm1, %v15246_v22 }
 0x595   : > { %12255 = vmatprep.subr.mxu0 %v15246_v22  ;;  %12243 = vmatmul.mubr.msk.f32.vlgmr.msra.gmra.mxu1 %vm419_vm2, %v15273_v39  ;;  %v6867_v36 = vpop.permute.xlu1 %6866 }
 0x596   : > { %12248 = vmatmul.mubr.msk.f32.vlgmr.msra.gmra.mxu0 %vm419_vm2, %v15274_v35  ;;  %12251 = vmatpush3.xpose.msk.msra.mxu1 %vm419_vm2, %v15275_v63 }
 0x597   : > { %12256 = vmatpush3.xpose.msk.msra.mxu0 %vm419_vm2, %v13895_v12  ;;  %12252 = vmatprep.mubr.msk.f32.mxu1 %vm12841_vm1, %v15246_v22 }
 0x598   : > { %12260 = vmatprep.subr.mxu1 %v15246_v22  ;;  %12257 = vmatprep.mubr.msk.f32.mxu0 %vm12841_vm1, %v15246_v22  ;;  %v6789_v44 = vpop.permute.xlu0 %6788 }
 0x599   : > { %12265 = vmatprep.subr.mxu0 %v15246_v22  ;;  %12253 = vmatmul.mubr.msk.f32.vlgmr.msra.gmra.mxu1 %vm419_vm2, %v15276_v38  ;;  %v6865_v12 = vpop.permute.xlu1 %6864 }
 0x59a   : > { %12258 = vmatmul.mubr.msk.f32.vlgmr.msra.gmra.mxu0 %vm419_vm2, %v13903_v7  ;;  %12261 = vmatpush3.xpose.msk.msra.mxu1 %vm419_vm2, %v13897_v15 }
 0x59b   : > { %12266 = vmatpush3.xpose.msk.msra.mxu0 %vm419_vm2, %v13915_v62  ;;  %12262 = vmatprep.mubr.msk.f32.mxu1 %vm12841_vm1, %v15246_v22 }
 0x59c   : > { %12267 = vmatprep.mubr.msk.f32.mxu0 %vm12841_vm1, %v15246_v22  ;;  %12270 = vmatprep.subr.mxu1 %v15246_v22  ;;  %v6787_v15 = vpop.permute.xlu0 %6786 }
 0x59d   : > { %12275 = vmatprep.subr.mxu0 %v15246_v22  ;;  %12263 = vmatmul.mubr.msk.f32.vlgmr.msra.gmra.mxu1 %vm419_vm2, %v13909_v37  ;;  %v7023_v7 = vpop.permute.xlu1 %7022 }
 0x59e   : > { %12268 = vmatmul.mubr.msk.f32.vlgmr.msra.gmra.mxu0 %vm419_vm2, %v13973_v13  ;;  %12271 = vmatpush3.xpose.msk.msra.mxu1 %vm419_vm2, %v13917_v3 }
 0x59f   : > { %12276 = vmatpush3.xpose.msk.msra.mxu0 %vm419_vm2, %v13989_v52  ;;  %12272 = vmatprep.mubr.msk.f32.mxu1 %vm12841_vm1, %v15246_v22 }
 0x5a0   : > { %12277 = vmatprep.mubr.msk.f32.mxu0 %vm12841_vm1, %v15246_v22  ;;  %12280 = vmatprep.subr.mxu1 %v15246_v22  ;;  %v6945_v37 = vpop.permute.xlu0 %6944 }
 0x5a1   : > { %12285 = vmatprep.subr.mxu0 %v15246_v22  ;;  %12273 = vmatmul.mubr.msk.f32.vlgmr.msra.gmra.mxu1 %vm419_vm2, %v13963_v40  ;;  %v7021_v62 = vpop.permute.xlu1 %7020 }
 0x5a2   : > { %12278 = vmatmul.mubr.msk.f32.vlgmr.msra.gmra.mxu0 %vm419_vm2, %v6475_v55  ;;  %12281 = vmatpush3.xpose.msk.msra.mxu1 %vm419_vm2, %v13979_v16 }
 0x5a3   : > { %12286 = vmatpush3.xpose.msk.msra.mxu0 %vm419_vm2, %v6633_v48  ;;  %12282 = vmatprep.mubr.msk.f32.mxu1 %vm12841_vm1, %v15246_v22 }
 0x5a4   : > { %12287 = vmatprep.mubr.msk.f32.mxu0 %vm12841_vm1, %v15246_v22  ;;  %12290 = vmatprep.subr.mxu1 %v15246_v22  ;;  %v6943_v3 = vpop.permute.xlu0 %6942 }
 0x5a5   : > { %12295 = vmatprep.subr.mxu0 %v15246_v22  ;;  %12283 = vmatmul.mubr.msk.f32.vlgmr.msra.gmra.mxu1 %vm419_vm2, %v13995_v46  ;;  %v7275_v1 = vpop.permute.xlu1 %7274 }
 0x5a6   : > { %12288 = vmatmul.mubr.msk.f32.vlgmr.msra.gmra.mxu0 %vm419_vm2, %v6631_v2  ;;  %12291 = vmatpush3.xpose.msk.msra.mxu1 %vm419_vm2, %v6711_v23 }
 0x5a7   : > { %12296 = vmatpush3.xpose.msk.msra.mxu0 %vm419_vm2, %v6789_v44  ;;  %12292 = vmatprep.mubr.msk.f32.mxu1 %vm12841_vm1, %v15246_v22 }
 0x5a8   : > { %12297 = vmatprep.mubr.msk.f32.mxu0 %vm12841_vm1, %v15246_v22  ;;  %12300 = vmatprep.subr.mxu1 %v15246_v22  ;;  %v7351_v47 = vpop.permute.xlu0 %7350 }
 0x5a9   : > { %12305 = vmatprep.subr.mxu0 %v15246_v22  ;;  %12293 = vmatmul.mubr.msk.f32.vlgmr.msra.gmra.mxu1 %vm419_vm2, %v6709_v61 }
 0x5aa   : > { %12298 = vmatmul.mubr.msk.f32.vlgmr.msra.gmra.mxu0 %vm419_vm2, %v6787_v15  ;;  %12301 = vmatpush3.xpose.msk.msra.mxu1 %vm419_vm2, %v6867_v36 }
 0x5ab   : > { %12306 = vmatpush3.xpose.msk.msra.mxu0 %vm419_vm2, %v6945_v37  ;;  %12302 = vmatprep.mubr.msk.f32.mxu1 %vm12841_vm1, %v15246_v22 }
 0x5ac   : > { %12307 = vmatprep.mubr.msk.f32.mxu0 %vm12841_vm1, %v15246_v22  ;;  %12310 = vmatprep.subr.mxu1 %v15246_v22 }
 0x5ad   : > { %12315 = vmatprep.subr.mxu0 %v15246_v22  ;;  %12303 = vmatmul.mubr.msk.f32.vlgmr.msra.gmra.mxu1 %vm419_vm2, %v6865_v12 }
 0x5ae   : > { %12308 = vmatmul.mubr.msk.f32.vlgmr.msra.gmra.mxu0 %vm419_vm2, %v6943_v3  ;;  %12311 = vmatpush3.xpose.msk.msra.mxu1 %vm419_vm2, %v7023_v7 }
 0x5af   : > { %12316 = vmatpush3.msra.mxu0 %v7275_v1  ;;  %12312 = vmatprep.mubr.msk.f32.mxu1 %vm12841_vm1, %v15246_v22 }
 0x5b0   : > { %12320 = vmatprep.subr.mxu1 %v15246_v22  ;;  %12317 = vmatprep.mubr.msk.f32.mxu0 %vm12841_vm1, %v15246_v22 }
 0x5b1   : > { %12313 = vmatmul.mubr.msk.f32.vlgmr.msra.gmra.mxu1 %vm419_vm2, %v7021_v62  ;;  %12325 = vmatprep.subr.mxu0 %v15246_v22 }
 0x5b2   : > { %12321 = vmatpush3.msra.mxu1 %v7351_v47  ;;  %12322 = vmatprep.mubr.msk.f32.mxu1 %vm12841_vm1, %v15246_v22 }
 0x5b3   : > { %12330 = vmatprep.subr.mxu1 %v15246_v22 }
 0x630   : > { %v14122_v10 = vpop.f32.mrf.mxu1 }
 0x631   : > { %15277 = vst [vmem:[#allocation25_spill] sm:$0xff] %v14122_v10  ;;  %v14124_v53 = vpop.f32.mrf.mxu0 }
 0x632   : > { %15278 = vst [vmem:[#allocation23_spill] sm:$0xff] %v14124_v53  ;;  %v12164_v5 = vpop.f32.mrf.mxu1 }
 0x633   : > { %v12159_v41 = vpop.f32.mrf.mxu0 }
 0x635   : > { %v14126_v45 = vpop.f32.mrf.mxu0 }
 0x636   : > { %15279 = vst [vmem:[#allocation27_spill] sm:$0xff] %v14126_v45 }
 0x637   : > { %v12169_v54 = vpop.f32.mrf.mxu0 }
 0x639   : > { %v14128_v51 = vpop.f32.mrf.mxu1 }
 0x63a   : > { %15280 = vst [vmem:[#allocation24_spill] sm:$0xff] %v14128_v51  ;;  %v14130_v11 = vpop.f32.mrf.mxu0 }
 0x63b   : > { %15281 = vst [vmem:[#allocation26_spill] sm:$0xff] %v14130_v11  ;;  %v12174_v6 = vpop.f32.mrf.mxu1 }
 0x63c   : > { %v12179_v9 = vpop.f32.mrf.mxu0 }
 0x63d   : > { %v14132_v42 = vpop.f32.mrf.mxu1 }
 0x63e   : > { %15282 = vst [vmem:[#allocation28_spill] sm:$0xff] %v14132_v42  ;;  %v14134_v43 = vpop.f32.mrf.mxu0 }
 0x63f   : > { %15283 = vst [vmem:[#allocation29_spill] sm:$0xff] %v14134_v43  ;;  %v12184_v40 = vpop.f32.mrf.mxu1 }
 0x640   : > { %v12189_v57 = vpop.f32.mrf.mxu0 }
 0x641   : > { %v14136_v17 = vpop.f32.mrf.mxu1 }
 0x642   : > { %15284 = vst [vmem:[#allocation30_spill] sm:$0xff] %v14136_v17  ;;  %v14138_v8 = vpop.f32.mrf.mxu0 }
 0x643   : > { %15285 = vst [vmem:[#allocation31_spill] sm:$0xff] %v14138_v8  ;;  %v12194_v13 = vpop.f32.mrf.mxu1 }
 0x644   : > { %v12199_v58 = vpop.f32.mrf.mxu0 }
 0x645   : > { %v14140_v16 = vpop.f32.mrf.mxu1 }
 0x646   : > { %15286 = vst [vmem:[#allocation32_spill] sm:$0xff] %v14140_v16  ;;  %v14142_v60 = vpop.f32.mrf.mxu0 }
 0x647   : > { %15287 = vst [vmem:[#allocation33_spill] sm:$0xff] %v14142_v60  ;;  %v12204_v14 = vpop.f32.mrf.mxu1 }
 0x648   : > { %v12209_v4 = vpop.f32.mrf.mxu0 }
 0x649   : > { %v14144_v52 = vpop.f32.mrf.mxu1 }
 0x64a   : > { %15288 = vst [vmem:[#allocation34_spill] sm:$0xff] %v14144_v52  ;;  %v14146_v49 = vpop.f32.mrf.mxu0 }
 0x64b   : > { %15289 = vst [vmem:[#allocation35_spill] sm:$0xff] %v14146_v49  ;;  %v12214_v46 = vpop.f32.mrf.mxu1 }
 0x64c   : > { %v12219_v56 = vpop.f32.mrf.mxu0 }
 0x64d   : > { %v14148_v59 = vpop.f32.mrf.mxu1 }
 0x64e   : > { %15290 = vst [vmem:[#allocation36_spill] sm:$0xff] %v14148_v59  ;;  %v14150_v50 = vpop.f32.mrf.mxu0 }
 0x64f   : > { %15291 = vst [vmem:[#allocation37_spill] sm:$0xff] %v14150_v50  ;;  %v12224_v55 = vpop.f32.mrf.mxu1 }
 0x650   : > { %v12229_v20 = vpop.f32.mrf.mxu0 }
 0x651   : > { %v14152_v23 = vpop.f32.mrf.mxu1 }
 0x652   : > { %15292 = vst [vmem:[#allocation38_spill] sm:$0xff] %v14152_v23  ;;  %v14154_v18 = vpop.f32.mrf.mxu0 }
 0x653   : > { %v12234_v0 = vpop.f32.mrf.mxu1  ;;  %v7098_v48 = vsel %vm419_vm2, %v14154_v18, -inf }
 0x654   : > { %7099 = vmax.xlane.f32.xlu0 %v7098_v48  ;;  %v12239_v61 = vpop.f32.mrf.mxu0 }
 0x655   : > { %v14158_v19 = vpop.f32.mrf.mxu1 }
 0x656   : > { %v14160_v2 = vpop.f32.mrf.mxu0  ;;  %v7101_v39 = vsel %vm419_vm2, %v14158_v19, -inf }
 0x657   : > { %v12244_v36 = vpop.f32.mrf.mxu1  ;;  %7102 = vmax.xlane.f32.xlu1 %v7101_v39  ;;  %v7104_v35 = vsel %vm419_vm2, %v14160_v2, -inf }
 0x658   : > { %7105 = vmax.xlane.f32.xlu0 %v7104_v35  ;;  %v12249_v63 = vpop.f32.mrf.mxu0 }
 0x659   : > { %v14166_v44 = vpop.f32.mrf.mxu1 }
 0x65a   : > { %v14168_v38 = vpop.f32.mrf.mxu0  ;;  %v7107_v12 = vsel %vm419_vm2, %v14166_v44, -inf }
 0x65b   : > { %v12254_v15 = vpop.f32.mrf.mxu1  ;;  %v7110_v7 = vsel %vm419_vm2, %v14168_v38, -inf }
 0x65c   : > { %7108 = vmax.xlane.f32.xlu0 %v7107_v12  ;;  %7111 = vmax.xlane.f32.xlu1 %v7110_v7  ;;  %v12259_v37 = vpop.f32.mrf.mxu0 }
 0x65d   : > { %v14174_v62 = vpop.f32.mrf.mxu1 }
 0x65e   : > { %v14176_v3 = vpop.f32.mrf.mxu0  ;;  %v7113_v1 = vsel %vm419_vm2, %v14174_v62, -inf }
 0x65f   : > { %v12264_v47 = vpop.f32.mrf.mxu1  ;;  %v7116_v5 = vsel %vm419_vm2, %v14176_v3, -inf }
 0x660   : > { %7114 = vmax.xlane.f32.xlu0 %v7113_v1  ;;  %7117 = vmax.xlane.f32.xlu1 %v7116_v5  ;;  %v12269_v41 = vpop.f32.mrf.mxu0 }
 0x661   : > { %v14182_v54 = vpop.f32.mrf.mxu1  ;;  %v14230_v41 = vpop.permute.xlu1 %7426 }
 0x662   : > { %v14184_v6 = vpop.f32.mrf.mxu0  ;;  %v7119_v9 = vsel %vm419_vm2, %v14182_v54, -inf }
 0x663   : > { %v12274_v40 = vpop.f32.mrf.mxu1  ;;  %v7122_v57 = vsel %vm419_vm2, %v14184_v6, -inf }
 0x664   : > { %7120 = vmax.xlane.f32.xlu0 %v7119_v9  ;;  %7123 = vmax.xlane.f32.xlu1 %v7122_v57  ;;  %v12279_v13 = vpop.f32.mrf.mxu0  ;;  %v14234_v40 = vpop.permute.xlu0 %7502 }
 0x665   : > { %v14190_v58 = vpop.f32.mrf.mxu1  ;;  %v14232_v9 = vpop.permute.xlu1 %7578 }
 0x666   : > { %v14192_v14 = vpop.f32.mrf.mxu0  ;;  %v7125_v4 = vsel %vm419_vm2, %v14190_v58, -inf }
 0x667   : > { %v12284_v46 = vpop.f32.mrf.mxu1  ;;  %v7128_v56 = vsel %vm419_vm2, %v14192_v14, -inf }
 0x668   : > { %7126 = vmax.xlane.f32.xlu0 %v7125_v4  ;;  %7129 = vmax.xlane.f32.xlu1 %v7128_v56  ;;  %v12289_v55 = vpop.f32.mrf.mxu0  ;;  %v14238_v13 = vpop.permute.xlu0 %7730 }
 0x669   : > { %v14198_v20 = vpop.f32.mrf.mxu1  ;;  %v14236_v57 = vpop.permute.xlu1 %7654 }
 0x66a   : > { %v14200_v0 = vpop.f32.mrf.mxu0  ;;  %v7131_v48 = vsel %vm419_vm2, %v14198_v20, -inf }
 0x66b   : > { %v12294_v61 = vpop.f32.mrf.mxu1  ;;  %v7134_v39 = vsel %vm419_vm2, %v14200_v0, -inf }
 0x66c   : > { %7132 = vmax.xlane.f32.xlu0 %v7131_v48  ;;  %7135 = vmax.xlane.f32.xlu1 %v7134_v39  ;;  %v12299_v36 = vpop.f32.mrf.mxu0  ;;  %v14242_v46 = vpop.permute.xlu0 %7882 }
 0x66d   : > { %v14206_v35 = vpop.f32.mrf.mxu1  ;;  %v14240_v4 = vpop.permute.xlu1 %7806 }
 0x66e   : > { %v14208_v63 = vpop.f32.mrf.mxu0  ;;  %v7137_v12 = vsel %vm419_vm2, %v14206_v35, -inf }
 0x66f   : > { %v12304_v15 = vpop.f32.mrf.mxu1  ;;  %v7140_v7 = vsel %vm419_vm2, %v14208_v63, -inf }
 0x670   : > { %7138 = vmax.xlane.f32.xlu0 %v7137_v12  ;;  %7141 = vmax.xlane.f32.xlu1 %v7140_v7  ;;  %v12309_v37 = vpop.f32.mrf.mxu0  ;;  %v14246_v55 = vpop.permute.xlu0 %8034 }
 0x671   : > { %v14214_v1 = vpop.f32.mrf.mxu1  ;;  %v14244_v56 = vpop.permute.xlu1 %7958 }
 0x672   : > { %v7143_v47 = vsel %vm419_vm2, %v14214_v1, -inf }
 0x673   : > { %v12314_v5 = vpop.f32.mrf.mxu1 }
 0x674   : > { %7144 = vmax.xlane.f32.xlu0 %v7143_v47  ;;  %v14250_v61 = vpop.permute.xlu0 %8186 }
 0x675   : > { %v14248_v48 = vpop.permute.xlu1 %8110 }
 0x678   : > { %v14254_v36 = vpop.permute.xlu0 %8338 }
 0x679   : > { %v14252_v39 = vpop.permute.xlu1 %8262 }
 0x67c   : > { %v14258_v15 = vpop.permute.xlu0 %8575 }
 0x67d   : > { %v14256_v12 = vpop.permute.xlu1 %8414 }
 0x680   : > { %v14262_v37 = vpop.permute.xlu0 %8573 }
 0x681   : > { %8965 = vrot.lane.b32.xlu1 %v12954_v24, %s12850_s9  ;;  %v14260_v7 = vpop.permute.xlu1 %8653 }
 0x684   : > { %v14266_v5 = vpop.permute.xlu0 %8731 }
 0x685   : > { %8963 = vrot.lane.b32.xlu1 %v12954_v24, %s12851_s10  ;;  %v14264_v47 = vpop.permute.xlu1 %8651 }
 0x688   : > { %v14270_v50 = vpop.permute.xlu0 %8729 }
 0x689   : > { %9121 = vrot.lane.b32.xlu1 %v12960_v26, %s12850_s9  ;;  %v14268_v23 = vpop.permute.xlu1 %8809 }
 0x68a   : > { %8887 = vrot.lane.b32.xlu0 %v12956_v25, %s12850_s9 }
 0x68d   : > { %v14272_v59 = vpop.permute.xlu1 %8807 }
 0x68e   : > { %8885 = vrot.lane.b32.xlu0 %v12956_v25, %s12851_s10  ;;  %15293 = vst [vmem:[#allocation39_spill] sm:$0xff] %v14272_v59 }
 0x692   : > { %9043 = vrot.lane.b32.xlu0 %v12962_v27, %s12850_s9 }
 0x6dd   : > { %v7100_v49 = vpop.xlane.xlu0 %7099 }
 0x6de   : > { %v7146_v52 = vsub.f32 %v14154_v18, %v7100_v49 }
 0x6e0   : > { %v7162_v60 = vmul.f32 1.442695, %v7146_v52  ;;  %v7103_v16 = vpop.xlane.xlu1 %7102 }
 0x6e1   : > { %v7147_v8 = vsub.f32 %v14158_v19, %v7103_v16  ;;  %v7106_v17 = vpop.xlane.xlu0 %7105 }
 0x6e2   : > { %12704 = vpow2.f32 %v7162_v60  ;;  %v7148_v43 = vsub.f32 %v14160_v2, %v7106_v17 }
 0x6e3   : > { %v7164_v42 = vmul.f32 1.442695, %v7147_v8 }
 0x6e4   : > { %v7166_v11 = vmul.f32 1.442695, %v7148_v43 }
 0x6e5   : > { %12706 = vpow2.f32 %v7164_v42  ;;  %v7109_v51 = vpop.xlane.xlu0 %7108  ;;  %v7112_v45 = vpop.xlane.xlu1 %7111 }
 0x6e6   : > { %12708 = vpow2.f32 %v7166_v11  ;;  %v7149_v10 = vsub.f32 %v14166_v44, %v7109_v51  ;;  %v7150_v53 = vsub.f32 %v14168_v38, %v7112_v45 }
 0x6e8   : > { %v7168_v59 = vmul.f32 1.442695, %v7149_v10  ;;  %v7170_v49 = vmul.f32 1.442695, %v7150_v53 }
 0x6e9   : > { %v7115_v52 = vpop.xlane.xlu0 %7114  ;;  %v7118_v18 = vpop.xlane.xlu1 %7117 }
 0x6ea   : > { %12710 = vpow2.f32 %v7168_v59  ;;  %v7151_v16 = vsub.f32 %v14174_v62, %v7115_v52  ;;  %v7152_v60 = vsub.f32 %v14176_v3, %v7118_v18 }
 0x6eb   : > { %12712 = vpow2.f32 %v7170_v49 }
 0x6ec   : > { %v7172_v17 = vmul.f32 1.442695, %v7151_v16  ;;  %v7174_v43 = vmul.f32 1.442695, %v7152_v60 }
 0x6ed   : > { %v7121_v42 = vpop.xlane.xlu0 %7120  ;;  %v7124_v8 = vpop.xlane.xlu1 %7123 }
 0x6ee   : > { %12714 = vpow2.f32 %v7172_v17  ;;  %v7153_v11 = vsub.f32 %v14182_v54, %v7121_v42  ;;  %v7154_v51 = vsub.f32 %v14184_v6, %v7124_v8 }
 0x6ef   : > { %v14283_v45 = vpop.eup %12704  ;;  %12716 = vpow2.f32 %v7174_v43 }
 0x6f0   : > { %v7176_v10 = vmul.f32 1.442695, %v7153_v11  ;;  %v7178_v53 = vmul.f32 1.442695, %v7154_v51  ;;  %v7194_v59 = vsel %vm419_vm2, %v14283_v45, 0.0 }
 0x6f1   : > { %v7127_v19 = vpop.xlane.xlu0 %7126  ;;  %v7130_v2 = vpop.xlane.xlu1 %7129  ;;  %7195 = vadd.xlane.f32.xlu1 %v7194_v59 }
 0x6f2   : > { %v14287_v44 = vpop.eup %12706  ;;  %12718 = vpow2.f32 %v7176_v10  ;;  %v7155_v38 = vsub.f32 %v14190_v58, %v7127_v19  ;;  %v7156_v62 = vsub.f32 %v14192_v14, %v7130_v2 }
 0x6f3   : > { %v14291_v3 = vpop.eup %12708  ;;  %12720 = vpow2.f32 %v7178_v53  ;;  %v7197_v54 = vsel %vm419_vm2, %v14287_v44, 0.0 }
 0x6f4   : > { %v7180_v6 = vmul.f32 1.442695, %v7155_v38  ;;  %v7182_v49 = vmul.f32 1.442695, %v7156_v62  ;;  %7198 = vadd.xlane.f32.xlu0 %v7197_v54  ;;  %v7200_v52 = vsel %vm419_vm2, %v14291_v3, 0.0 }
 0x6f5   : > { %v7133_v18 = vpop.xlane.xlu0 %7132  ;;  %v7136_v16 = vpop.xlane.xlu1 %7135  ;;  %7201 = vadd.xlane.f32.xlu1 %v7200_v52 }
 0x6f6   : > { %12722 = vpow2.f32 %v7180_v6  ;;  %v7157_v58 = vsub.f32 %v14198_v20, %v7133_v18  ;;  %v7158_v14 = vsub.f32 %v14200_v0, %v7136_v16 }
 0x6f7   : > { %v14299_v60 = vpop.eup %12710  ;;  %12724 = vpow2.f32 %v7182_v49 }
 0x6f8   : > { %v14301_v17 = vpop.eup %12712  ;;  %v7184_v43 = vmul.f32 1.442695, %v7157_v58  ;;  %v7186_v42 = vmul.f32 1.442695, %v7158_v14  ;;  %v7203_v8 = vsel %vm419_vm2, %v14299_v60, 0.0 }
 0x6f9   : > { %7204 = vadd.xlane.f32.xlu0 %v7203_v8  ;;  %v7139_v11 = vpop.xlane.xlu0 %7138  ;;  %v7206_v51 = vsel %vm419_vm2, %v14301_v17, 0.0  ;;  %v7142_v10 = vpop.xlane.xlu1 %7141 }
 0x6fa   : > { %12726 = vpow2.f32 %v7184_v43  ;;  %v7159_v20 = vsub.f32 %v14206_v35, %v7139_v11  ;;  %7207 = vadd.xlane.f32.xlu1 %v7206_v51  ;;  %v7160_v0 = vsub.f32 %v14208_v63, %v7142_v10 }
 0x6fb   : > { %v14309_v53 = vpop.eup %12714  ;;  %12728 = vpow2.f32 %v7186_v42 }
 0x6fc   : > { %v14311_v59 = vpop.eup %12716  ;;  %v7188_v19 = vmul.f32 1.442695, %v7159_v20  ;;  %v7190_v2 = vmul.f32 1.442695, %v7160_v0  ;;  %v7209_v38 = vsel %vm419_vm2, %v14309_v53, 0.0 }
 0x6fd   : > { %7210 = vadd.xlane.f32.xlu0 %v7209_v38  ;;  %v7145_v62 = vpop.xlane.xlu0 %7144  ;;  %v7212_v54 = vsel %vm419_vm2, %v14311_v59, 0.0  ;;  %v15294_v38 = vld [vmem:[#allocation6_spill] sm:$0xff] }
 0x6fe   : > { %12730 = vpow2.f32 %v7188_v19  ;;  %v7161_v35 = vsub.f32 %v14214_v1, %v7145_v62  ;;  %7213 = vadd.xlane.f32.xlu1 %v7212_v54  ;;  %v15295_v62 = vld [vmem:[#allocation5_spill] sm:$0xff]  ;;  %v15296_v54 = vld [vmem:[#allocation3_spill] sm:$0xff] }
 0x6ff   : > { %v14318_v63 = vpop.eup %12718  ;;  %12732 = vpow2.f32 %v7190_v2 }
 0x700   : > { %v14320_v6 = vpop.eup %12720  ;;  %v7192_v49 = vmul.f32 1.442695, %v7161_v35  ;;  %v7215_v52 = vsel %vm419_vm2, %v14318_v63, 0.0 }
 0x701   : > { %7216 = vadd.xlane.f32.xlu0 %v7215_v52  ;;  %v7218_v18 = vsel %vm419_vm2, %v14320_v6, 0.0  ;;  %v14412_v35 = vpop.permute.xlu0 %8887 }
 0x702   : > { %12734 = vpow2.f32 %v7192_v49  ;;  %7219 = vadd.xlane.f32.xlu1 %v7218_v18 }
 0x703   : > { %v14326_v16 = vpop.eup %12722 }
 0x704   : > { %v14328_v58 = vpop.eup %12724  ;;  %v7221_v1 = vsel %vm419_vm2, %v14326_v16, 0.0 }
 0x705   : > { %7222 = vadd.xlane.f32.xlu0 %v7221_v1  ;;  %v7224_v14 = vsel %vm419_vm2, %v14328_v58, 0.0  ;;  %v14416_v49 = vpop.permute.xlu0 %8885 }
 0x706   : > { %7225 = vadd.xlane.f32.xlu1 %v7224_v14 }
 0x707   : > { %v14334_v43 = vpop.eup %12726 }
 0x708   : > { %v14336_v42 = vpop.eup %12728  ;;  %v7227_v8 = vsel %vm419_vm2, %v14334_v43, 0.0 }
 0x709   : > { %7228 = vadd.xlane.f32.xlu0 %v7227_v8  ;;  %v7230_v11 = vsel %vm419_vm2, %v14336_v42, 0.0 }
 0x70a   : > { %7231 = vadd.xlane.f32.xlu1 %v7230_v11 }
 0x70b   : > { %v14342_v51 = vpop.eup %12730 }
 0x70c   : > { %v14344_v10 = vpop.eup %12732  ;;  %v7233_v20 = vsel %vm419_vm2, %v14342_v51, 0.0 }
 0x70d   : > { %7234 = vadd.xlane.f32.xlu0 %v7233_v20  ;;  %v7236_v0 = vsel %vm419_vm2, %v14344_v10, 0.0 }
 0x70e   : > { %7237 = vadd.xlane.f32.xlu1 %v7236_v0 }
 0x70f   : > { %v14350_v19 = vpop.eup %12734 }
 0x710   : > { %v7239_v2 = vsel %vm419_vm2, %v14350_v19, 0.0 }
 0x711   : > { %7240 = vadd.xlane.f32.xlu0 %v7239_v2 }
 0x71f   : > { %9119 = vrot.lane.b32.xlu1 %v12960_v26, %s12851_s10 }
 0x723   : > { %9277 = vrot.lane.b32.xlu1 %v12966_v28, %s12850_s9 }
 0x727   : > { %9275 = vrot.lane.b32.xlu1 %v12966_v28, %s12851_s10  ;;  %9041 = vrot.lane.b32.xlu0 %v12962_v27, %s12851_s10 }
 0x72b   : > { %9433 = vrot.lane.b32.xlu1 %v12972_v30, %s12850_s9  ;;  %9199 = vrot.lane.b32.xlu0 %v12968_v29, %s12850_s9 }
 0x72f   : > { %9431 = vrot.lane.b32.xlu1 %v12972_v30, %s12851_s10  ;;  %9197 = vrot.lane.b32.xlu0 %v12968_v29, %s12851_s10 }
 0x733   : > { %9589 = vrot.lane.b32.xlu1 %v12978_v32, %s12850_s9  ;;  %9355 = vrot.lane.b32.xlu0 %v12974_v31, %s12850_s9 }
 0x737   : > { %9587 = vrot.lane.b32.xlu1 %v12978_v32, %s12851_s10  ;;  %9353 = vrot.lane.b32.xlu0 %v12974_v31, %s12851_s10 }
 0x73b   : > { %9745 = vrot.lane.b32.xlu1 %v12984_v34, %s12850_s9  ;;  %9511 = vrot.lane.b32.xlu0 %v12980_v33, %s12850_s9 }
 0x73f   : > { %9743 = vrot.lane.b32.xlu1 %v12984_v34, %s12851_s10  ;;  %9509 = vrot.lane.b32.xlu0 %v12980_v33, %s12851_s10 }
 0x743   : > { %9997 = vrot.lane.b32.xlu1 %v12945_v21, %s12852_s11  ;;  %9667 = vrot.lane.b32.xlu0 %v15294_v38, %s12850_s9  ;;  %v15297_v21 = vld [vmem:[#allocation4_spill] sm:$0xff] }
 0x747   : > { %10149 = vrot.lane.b32.xlu1 %v15295_v62, %s12852_s11  ;;  %9665 = vrot.lane.b32.xlu0 %v15294_v38, %s12851_s10 }
 0x74b   : > { %10301 = vrot.lane.b32.xlu1 %v12956_v25, %s12852_s11  ;;  %10073 = vrot.lane.b32.xlu0 %v15296_v54, %s12852_s11  ;;  %v14410_v25 = vpop.permute.xlu1 %8965 }
 0x74f   : > { %10377 = vrot.lane.b32.xlu1 %v12954_v24, %s12852_s11  ;;  %10225 = vrot.lane.b32.xlu0 %v15297_v21, %s12852_s11  ;;  %v14414_v24 = vpop.permute.xlu1 %8963 }
 0x753   : > { %10529 = vrot.lane.b32.xlu1 %v12960_v26, %s12852_s11  ;;  %10453 = vrot.lane.b32.xlu0 %v12962_v27, %s12852_s11  ;;  %v14418_v52 = vpop.permute.xlu1 %9121  ;;  %v14420_v26 = vpop.permute.xlu0 %9043 }
 0x757   : > { %10681 = vrot.lane.b32.xlu1 %v12966_v28, %s12852_s11  ;;  %10605 = vrot.lane.b32.xlu0 %v12968_v29, %s12852_s11 }
 0x77a   : > { %v7196_v18 = vpop.xlane.xlu1 %7195 }
 0x77b   : > { %12736 = vrcp.f32 %v7196_v18 }
 0x77d   : > { %v7199_v27 = vpop.xlane.xlu0 %7198 }
 0x77e   : > { %12738 = vrcp.f32 %v7199_v27  ;;  %v7202_v28 = vpop.xlane.xlu1 %7201 }
 0x77f   : > { %12740 = vrcp.f32 %v7202_v28 }
 0x782   : > { %v7205_v1 = vpop.xlane.xlu0 %7204 }
 0x783   : > { %12742 = vrcp.f32 %v7205_v1  ;;  %v7208_v29 = vpop.xlane.xlu1 %7207 }
 0x784   : > { %12744 = vrcp.f32 %v7208_v29 }
 0x786   : > { %v7211_v14 = vpop.xlane.xlu0 %7210 }
 0x787   : > { %12746 = vrcp.f32 %v7211_v14  ;;  %v7214_v8 = vpop.xlane.xlu1 %7213 }
 0x788   : > { %v12737_v11 = vpop.eup %12736  ;;  %12748 = vrcp.f32 %v7214_v8 }
 0x789   : > { %v7258_v20 = vmul.f32 %v12737_v11, %v14283_v45 }
 0x78a   : > { %v7217_v0 = vpop.xlane.xlu0 %7216 }
 0x78b   : > { %v12739_v2 = vpop.eup %12738  ;;  %12750 = vrcp.f32 %v7217_v0  ;;  %v7220_v62 = vpop.xlane.xlu1 %7219  ;;  %12318 = vmatmul.mubr.msk.f32.vlgmr.msra.gmra.mxu0 %vm419_vm2, %v7258_v20 }
 0x78c   : > { %v12741_v54 = vpop.eup %12740  ;;  %12752 = vrcp.f32 %v7220_v62  ;;  %12326 = vmatpush3.msra.mxu0 %v14230_v41  ;;  %12327 = vmatprep.mubr.msk.f32.mxu0 %vm12841_vm1, %v15246_v22  ;;  %v7259_v21 = vmul.f32 %v12739_v2, %v14287_v44 }
 0x78d   : > { %12335 = vmatprep.subr.mxu0 %v15246_v22  ;;  %v7260_v18 = vmul.f32 %v12741_v54, %v14291_v3 }
 0x78e   : > { %v7223_v45 = vpop.xlane.xlu0 %7222  ;;  %12323 = vmatmul.mubr.msk.f32.vlgmr.msra.gmra.mxu1 %vm419_vm2, %v7259_v21 }
 0x78f   : > { %12754 = vrcp.f32 %v7223_v45  ;;  %v7226_v27 = vpop.xlane.xlu1 %7225  ;;  %12328 = vmatmul.mubr.msk.f32.vlgmr.msra.gmra.mxu0 %vm419_vm2, %v7260_v18  ;;  %12331 = vmatpush3.msra.mxu1 %v14234_v40 }
 0x790   : > { %v12743_v28 = vpop.eup %12742  ;;  %12756 = vrcp.f32 %v7226_v27  ;;  %12336 = vmatpush3.msra.mxu0 %v14232_v9  ;;  %12332 = vmatprep.mubr.msk.f32.mxu1 %vm12841_vm1, %v15246_v22 }
 0x791   : > { %v12745_v41 = vpop.eup %12744  ;;  %12340 = vmatprep.subr.mxu1 %v15246_v22  ;;  %12337 = vmatprep.mubr.msk.f32.mxu0 %vm12841_vm1, %v15246_v22  ;;  %v7261_v44 = vmul.f32 %v12743_v28, %v14299_v60 }
 0x792   : > { %v7229_v3 = vpop.xlane.xlu0 %7228  ;;  %12345 = vmatprep.subr.mxu0 %v15246_v22  ;;  %v7262_v40 = vmul.f32 %v12745_v41, %v14301_v17 }
 0x793   : > { %12758 = vrcp.f32 %v7229_v3  ;;  %v7232_v1 = vpop.xlane.xlu1 %7231  ;;  %12333 = vmatmul.mubr.msk.f32.vlgmr.msra.gmra.mxu1 %vm419_vm2, %v7261_v44 }
 0x794   : > { %v12747_v9 = vpop.eup %12746  ;;  %12760 = vrcp.f32 %v7232_v1  ;;  %12338 = vmatmul.mubr.msk.f32.vlgmr.msra.gmra.mxu0 %vm419_vm2, %v7262_v40  ;;  %12341 = vmatpush3.msra.mxu1 %v14236_v57 }
 0x795   : > { %v12749_v29 = vpop.eup %12748  ;;  %12346 = vmatpush3.msra.mxu0 %v14238_v13  ;;  %12342 = vmatprep.mubr.msk.f32.mxu1 %vm12841_vm1, %v15246_v22  ;;  %v7263_v60 = vmul.f32 %v12747_v9, %v14309_v53 }
 0x796   : > { %12350 = vmatprep.subr.mxu1 %v15246_v22  ;;  %v7235_v17 = vpop.xlane.xlu0 %7234  ;;  %12347 = vmatprep.mubr.msk.f32.mxu0 %vm12841_vm1, %v15246_v22  ;;  %v7264_v14 = vmul.f32 %v12749_v29, %v14311_v59 }
 0x797   : > { %12762 = vrcp.f32 %v7235_v17  ;;  %12355 = vmatprep.subr.mxu0 %v15246_v22  ;;  %v7238_v57 = vpop.xlane.xlu1 %7237  ;;  %12343 = vmatmul.mubr.msk.f32.vlgmr.msra.gmra.mxu1 %vm419_vm2, %v7263_v60 }
 0x798   : > { %v12751_v13 = vpop.eup %12750  ;;  %12764 = vrcp.f32 %v7238_v57  ;;  %12348 = vmatmul.mubr.msk.f32.vlgmr.msra.gmra.mxu0 %vm419_vm2, %v7264_v14  ;;  %12351 = vmatpush3.msra.mxu1 %v14240_v4 }
 0x799   : > { %v12753_v53 = vpop.eup %12752  ;;  %12356 = vmatpush3.msra.mxu0 %v14242_v46  ;;  %12352 = vmatprep.mubr.msk.f32.mxu1 %vm12841_vm1, %v15246_v22  ;;  %v7265_v59 = vmul.f32 %v12751_v13, %v14318_v63 }
 0x79a   : > { %12360 = vmatprep.subr.mxu1 %v15246_v22  ;;  %v7241_v8 = vpop.xlane.xlu0 %7240  ;;  %12357 = vmatprep.mubr.msk.f32.mxu0 %vm12841_vm1, %v15246_v22  ;;  %v7266_v11 = vmul.f32 %v12753_v53, %v14320_v6 }
 0x79b   : > { %12766 = vrcp.f32 %v7241_v8  ;;  %12365 = vmatprep.subr.mxu0 %v15246_v22  ;;  %v14466_v4 = vpop.permute.xlu1 %9119  ;;  %12353 = vmatmul.mubr.msk.f32.vlgmr.msra.gmra.mxu1 %vm419_vm2, %v7265_v59 }
 0x79c   : > { %v12755_v46 = vpop.eup %12754  ;;  %12358 = vmatmul.mubr.msk.f32.vlgmr.msra.gmra.mxu0 %vm419_vm2, %v7266_v11  ;;  %12361 = vmatpush3.msra.mxu1 %v14244_v56 }
 0x79d   : > { %v12757_v63 = vpop.eup %12756  ;;  %12366 = vmatpush3.msra.mxu0 %v14246_v55  ;;  %12362 = vmatprep.mubr.msk.f32.mxu1 %vm12841_vm1, %v15246_v22  ;;  %v7267_v6 = vmul.f32 %v12755_v46, %v14326_v16 }
 0x79e   : > { %12370 = vmatprep.subr.mxu1 %v15246_v22  ;;  %v14476_v20 = vpop.permute.xlu0 %9041  ;;  %12367 = vmatprep.mubr.msk.f32.mxu0 %vm12841_vm1, %v15246_v22  ;;  %v7268_v0 = vmul.f32 %v12757_v63, %v14328_v58 }
 0x79f   : > { %12375 = vmatprep.subr.mxu0 %v15246_v22  ;;  %v14482_v56 = vpop.permute.xlu1 %9277  ;;  %12363 = vmatmul.mubr.msk.f32.vlgmr.msra.gmra.mxu1 %vm419_vm2, %v7267_v6 }
 0x7a0   : > { %v12759_v55 = vpop.eup %12758  ;;  %12368 = vmatmul.mubr.msk.f32.vlgmr.msra.gmra.mxu0 %vm419_vm2, %v7268_v0  ;;  %12371 = vmatpush3.msra.mxu1 %v14248_v48 }
 0x7a1   : > { %v12761_v16 = vpop.eup %12760  ;;  %12376 = vmatpush3.msra.mxu0 %v14250_v61  ;;  %12372 = vmatprep.mubr.msk.f32.mxu1 %vm12841_vm1, %v15246_v22  ;;  %v7269_v2 = vmul.f32 %v12759_v55, %v14334_v43 }
 0x7a2   : > { %12380 = vmatprep.subr.mxu1 %v15246_v22  ;;  %v14492_v58 = vpop.permute.xlu0 %9199  ;;  %12377 = vmatprep.mubr.msk.f32.mxu0 %vm12841_vm1, %v15246_v22  ;;  %v7270_v62 = vmul.f32 %v12761_v16, %v14336_v42 }
 0x7a3   : > { %12385 = vmatprep.subr.mxu0 %v15246_v22  ;;  %v14498_v48 = vpop.permute.xlu1 %9275  ;;  %12373 = vmatmul.mubr.msk.f32.vlgmr.msra.gmra.mxu1 %vm419_vm2, %v7269_v2 }
 0x7a4   : > { %v12763_v61 = vpop.eup %12762  ;;  %12378 = vmatmul.mubr.msk.f32.vlgmr.msra.gmra.mxu0 %vm419_vm2, %v7270_v62  ;;  %12381 = vmatpush3.msra.mxu1 %v14252_v39 }
 0x7a5   : > { %v12765_v43 = vpop.eup %12764  ;;  %12386 = vmatpush3.msra.mxu0 %v14254_v36  ;;  %12382 = vmatprep.mubr.msk.f32.mxu1 %vm12841_vm1, %v15246_v22  ;;  %v7271_v54 = vmul.f32 %v12763_v61, %v14342_v51 }
 0x7a6   : > { %12390 = vmatprep.subr.mxu1 %v15246_v22  ;;  %v9198_v42 = vpop.permute.xlu0 %9197  ;;  %12387 = vmatprep.mubr.msk.f32.mxu0 %vm12841_vm1, %v15246_v22  ;;  %v7272_v21 = vmul.f32 %v12765_v43, %v14344_v10 }
 0x7a7   : > { %12395 = vmatprep.subr.mxu0 %v15246_v22  ;;  %v9434_v18 = vpop.permute.xlu1 %9433  ;;  %12383 = vmatmul.mubr.msk.f32.vlgmr.msra.gmra.mxu1 %vm419_vm2, %v7271_v54 }
 0x7a8   : > { %v12767_v39 = vpop.eup %12766  ;;  %12388 = vmatmul.mubr.msk.f32.vlgmr.msra.gmra.mxu0 %vm419_vm2, %v7272_v21  ;;  %12391 = vmatpush3.msra.mxu1 %v14256_v12 }
 0x7a9   : > { %12396 = vmatpush3.xpose.msk.msra.mxu0 %vm419_vm2, %v14258_v15  ;;  %12392 = vmatprep.mubr.msk.f32.mxu1 %vm12841_vm1, %v15246_v22  ;;  %v7273_v36 = vmul.f32 %v12767_v39, %v14350_v19 }
 0x7aa   : > { %12400 = vmatprep.subr.mxu1 %v15246_v22  ;;  %v9356_v51 = vpop.permute.xlu0 %9355  ;;  %12397 = vmatprep.mubr.msk.f32.mxu0 %vm12841_vm1, %v15246_v22 }
 0x7ab   : > { %12405 = vmatprep.subr.mxu0 %v15246_v22  ;;  %v9432_v10 = vpop.permute.xlu1 %9431  ;;  %12393 = vmatmul.mubr.msk.f32.vlgmr.msra.gmra.mxu1 %vm419_vm2, %v7273_v36 }
 0x7ac   : > { %12398 = vmatmul.mubr.msk.f32.vlgmr.msra.gmra.mxu0 %vm419_vm2, %v14262_v37  ;;  %12401 = vmatpush3.xpose.msk.msra.mxu1 %vm419_vm2, %v14260_v7  ;;  %v15298_v37 = vld [vmem:[#allocation39_spill] sm:$0xff] }
 0x7ad   : > { %12406 = vmatpush3.xpose.msk.msra.mxu0 %vm419_vm2, %v14266_v5  ;;  %12402 = vmatprep.mubr.msk.f32.mxu1 %vm12841_vm1, %v15246_v22 }
 0x7ae   : > { %12410 = vmatprep.subr.mxu1 %v15246_v22  ;;  %v9354_v12 = vpop.permute.xlu0 %9353  ;;  %12407 = vmatprep.mubr.msk.f32.mxu0 %vm12841_vm1, %v15246_v22 }
 0x7af   : > { %12415 = vmatprep.subr.mxu0 %v15246_v22  ;;  %12403 = vmatmul.mubr.msk.f32.vlgmr.msra.gmra.mxu1 %vm419_vm2, %v14264_v47  ;;  %v9590_v15 = vpop.permute.xlu1 %9589 }
 0x7b0   : > { %12408 = vmatmul.mubr.msk.f32.vlgmr.msra.gmra.mxu0 %vm419_vm2, %v14270_v50  ;;  %12411 = vmatpush3.xpose.msk.msra.mxu1 %vm419_vm2, %v14268_v23 }
 0x7b1   : > { %12416 = vmatpush3.xpose.msk.msra.mxu0 %vm419_vm2, %v14412_v35  ;;  %12412 = vmatprep.mubr.msk.f32.mxu1 %vm12841_vm1, %v15246_v22 }
 0x7b2   : > { %12420 = vmatprep.subr.mxu1 %v15246_v22  ;;  %12417 = vmatprep.mubr.msk.f32.mxu0 %vm12841_vm1, %v15246_v22  ;;  %v9512_v7 = vpop.permute.xlu0 %9511 }
 0x7b3   : > { %12425 = vmatprep.subr.mxu0 %v15246_v22  ;;  %12413 = vmatmul.mubr.msk.f32.vlgmr.msra.gmra.mxu1 %vm419_vm2, %v15298_v37  ;;  %v9588_v50 = vpop.permute.xlu1 %9587 }
 0x7b4   : > { %12418 = vmatmul.mubr.msk.f32.vlgmr.msra.gmra.mxu0 %vm419_vm2, %v14416_v49  ;;  %12421 = vmatpush3.xpose.msk.msra.mxu1 %vm419_vm2, %v14410_v25 }
 0x7b5   : > { %12426 = vmatpush3.xpose.msk.msra.mxu0 %vm419_vm2, %v14420_v26  ;;  %12422 = vmatprep.mubr.msk.f32.mxu1 %vm12841_vm1, %v15246_v22 }
 0x7b6   : > { %12427 = vmatprep.mubr.msk.f32.mxu0 %vm12841_vm1, %v15246_v22  ;;  %12430 = vmatprep.subr.mxu1 %v15246_v22  ;;  %v9510_v23 = vpop.permute.xlu0 %9509 }
 0x7b7   : > { %12435 = vmatprep.subr.mxu0 %v15246_v22  ;;  %12423 = vmatmul.mubr.msk.f32.vlgmr.msra.gmra.mxu1 %vm419_vm2, %v14414_v24  ;;  %v9746_v47 = vpop.permute.xlu1 %9745 }
 0x7b8   : > { %12428 = vmatmul.mubr.msk.f32.vlgmr.msra.gmra.mxu0 %vm419_vm2, %v14476_v20  ;;  %12431 = vmatpush3.xpose.msk.msra.mxu1 %vm419_vm2, %v14418_v52 }
 0x7b9   : > { %12436 = vmatpush3.xpose.msk.msra.mxu0 %vm419_vm2, %v14492_v58  ;;  %12432 = vmatprep.mubr.msk.f32.mxu1 %vm12841_vm1, %v15246_v22 }
 0x7ba   : > { %12437 = vmatprep.mubr.msk.f32.mxu0 %vm12841_vm1, %v15246_v22  ;;  %12440 = vmatprep.subr.mxu1 %v15246_v22  ;;  %v9668_v5 = vpop.permute.xlu0 %9667 }
 0x7bb   : > { %12445 = vmatprep.subr.mxu0 %v15246_v22  ;;  %12433 = vmatmul.mubr.msk.f32.vlgmr.msra.gmra.mxu1 %vm419_vm2, %v14466_v4  ;;  %v9744_v19 = vpop.permute.xlu1 %9743 }
 0x7bc   : > { %12438 = vmatmul.mubr.msk.f32.vlgmr.msra.gmra.mxu0 %vm419_vm2, %v9198_v42  ;;  %12441 = vmatpush3.xpose.msk.msra.mxu1 %vm419_vm2, %v14482_v56 }
 0x7bd   : > { %12446 = vmatpush3.xpose.msk.msra.mxu0 %vm419_vm2, %v9356_v51  ;;  %12442 = vmatprep.mubr.msk.f32.mxu1 %vm12841_vm1, %v15246_v22 }
 0x7be   : > { %12447 = vmatprep.mubr.msk.f32.mxu0 %vm12841_vm1, %v15246_v22  ;;  %12450 = vmatprep.subr.mxu1 %v15246_v22  ;;  %v9666_v25 = vpop.permute.xlu0 %9665 }
 0x7bf   : > { %12455 = vmatprep.subr.mxu0 %v15246_v22  ;;  %12443 = vmatmul.mubr.msk.f32.vlgmr.msra.gmra.mxu1 %vm419_vm2, %v14498_v48  ;;  %v9998_v35 = vpop.permute.xlu1 %9997 }
 0x7c0   : > { %12448 = vmatmul.mubr.msk.f32.vlgmr.msra.gmra.mxu0 %vm419_vm2, %v9354_v12  ;;  %12451 = vmatpush3.xpose.msk.msra.mxu1 %vm419_vm2, %v9434_v18 }
 0x7c1   : > { %12456 = vmatpush3.xpose.msk.msra.mxu0 %vm419_vm2, %v9512_v7  ;;  %12452 = vmatprep.mubr.msk.f32.mxu1 %vm12841_vm1, %v15246_v22 }
 0x7c2   : > { %12457 = vmatprep.mubr.msk.f32.mxu0 %vm12841_vm1, %v15246_v22  ;;  %12460 = vmatprep.subr.mxu1 %v15246_v22  ;;  %v10074_v24 = vpop.permute.xlu0 %10073 }
 0x7c3   : > { %12465 = vmatprep.subr.mxu0 %v15246_v22  ;;  %12453 = vmatmul.mubr.msk.f32.vlgmr.msra.gmra.mxu1 %vm419_vm2, %v9432_v10 }
 0x7c4   : > { %12458 = vmatmul.mubr.msk.f32.vlgmr.msra.gmra.mxu0 %vm419_vm2, %v9510_v23  ;;  %12461 = vmatpush3.xpose.msk.msra.mxu1 %vm419_vm2, %v9590_v15 }
 0x7c5   : > { %12466 = vmatpush3.xpose.msk.msra.mxu0 %vm419_vm2, %v9668_v5  ;;  %12462 = vmatprep.mubr.msk.f32.mxu1 %vm12841_vm1, %v15246_v22 }
 0x7c6   : > { %12467 = vmatprep.mubr.msk.f32.mxu0 %vm12841_vm1, %v15246_v22  ;;  %12470 = vmatprep.subr.mxu1 %v15246_v22 }
 0x7c7   : > { %12475 = vmatprep.subr.mxu0 %v15246_v22  ;;  %12463 = vmatmul.mubr.msk.f32.vlgmr.msra.gmra.mxu1 %vm419_vm2, %v9588_v50 }
 0x7c8   : > { %12468 = vmatmul.mubr.msk.f32.vlgmr.msra.gmra.mxu0 %vm419_vm2, %v9666_v25  ;;  %12471 = vmatpush3.xpose.msk.msra.mxu1 %vm419_vm2, %v9746_v47 }
 0x7c9   : > { %12476 = vmatpush3.msra.mxu0 %v9998_v35  ;;  %12472 = vmatprep.mubr.msk.f32.mxu1 %vm12841_vm1, %v15246_v22 }
 0x7ca   : > { %12480 = vmatprep.subr.mxu1 %v15246_v22  ;;  %12477 = vmatprep.mubr.msk.f32.mxu0 %vm12841_vm1, %v15246_v22 }
 0x7cb   : > { %12473 = vmatmul.mubr.msk.f32.vlgmr.msra.gmra.mxu1 %vm419_vm2, %v9744_v19  ;;  %12485 = vmatprep.subr.mxu0 %v15246_v22 }
 0x7cc   : > { %12481 = vmatpush3.msra.mxu1 %v10074_v24  ;;  %12482 = vmatprep.mubr.msk.f32.mxu1 %vm12841_vm1, %v15246_v22 }
 0x7cd   : > { %12490 = vmatprep.subr.mxu1 %v15246_v22 }
 0x84b   : > { %v14625_v49 = vpop.f32.mrf.mxu0 }
 0x84d   : > { %v12319_v52 = vpop.f32.mrf.mxu0 }
 0x84e   : > { %v14627_v26 = vpop.f32.mrf.mxu1 }
 0x84f   : > { %v14629_v45 = vpop.f32.mrf.mxu0 }
 0x850   : > { %v12324_v27 = vpop.f32.mrf.mxu1 }
 0x851   : > { %v12329_v28 = vpop.f32.mrf.mxu0 }
 0x853   : > { %v14631_v41 = vpop.f32.mrf.mxu1 }
 0x854   : > { %v14633_v44 = vpop.f32.mrf.mxu0 }
 0x855   : > { %v12334_v3 = vpop.f32.mrf.mxu1 }
 0x856   : > { %v12339_v40 = vpop.f32.mrf.mxu0 }
 0x857   : > { %v14635_v1 = vpop.f32.mrf.mxu1 }
 0x858   : > { %v14637_v9 = vpop.f32.mrf.mxu0 }
 0x859   : > { %v12344_v29 = vpop.f32.mrf.mxu1 }
 0x85a   : > { %v12349_v60 = vpop.f32.mrf.mxu0 }
 0x85b   : > { %v14639_v17 = vpop.f32.mrf.mxu1 }
 0x85c   : > { %v14641_v14 = vpop.f32.mrf.mxu0 }
 0x85d   : > { %v12354_v57 = vpop.f32.mrf.mxu1 }
 0x85e   : > { %v12359_v13 = vpop.f32.mrf.mxu0 }
 0x85f   : > { %v14643_v53 = vpop.f32.mrf.mxu1 }
 0x860   : > { %v14645_v59 = vpop.f32.mrf.mxu0 }
 0x861   : > { %v12364_v8 = vpop.f32.mrf.mxu1 }
 0x862   : > { %v12369_v11 = vpop.f32.mrf.mxu0 }
 0x863   : > { %v14647_v4 = vpop.f32.mrf.mxu1 }
 0x864   : > { %v14649_v46 = vpop.f32.mrf.mxu0 }
 0x865   : > { %v12374_v63 = vpop.f32.mrf.mxu1 }
 0x866   : > { %v12379_v6 = vpop.f32.mrf.mxu0 }
 0x867   : > { %v14651_v20 = vpop.f32.mrf.mxu1 }
 0x868   : > { %v14653_v0 = vpop.f32.mrf.mxu0 }
 0x869   : > { %v12384_v56 = vpop.f32.mrf.mxu1 }
 0x86a   : > { %v12389_v55 = vpop.f32.mrf.mxu0 }
 0x86b   : > { %v14655_v16 = vpop.f32.mrf.mxu1 }
 0x86c   : > { %v14657_v2 = vpop.f32.mrf.mxu0 }
 0x86d   : > { %v12394_v58 = vpop.f32.mrf.mxu1  ;;  %v9821_v62 = vsel %vm419_vm2, %v14657_v2, -inf }
 0x86e   : > { %9822 = vmax.xlane.f32.xlu0 %v9821_v62  ;;  %v12399_v48 = vpop.f32.mrf.mxu0 }
 0x86f   : > { %v14661_v61 = vpop.f32.mrf.mxu1 }
 0x870   : > { %v14663_v43 = vpop.f32.mrf.mxu0  ;;  %v9824_v54 = vsel %vm419_vm2, %v14661_v61, -inf }
 0x871   : > { %v12404_v42 = vpop.f32.mrf.mxu1  ;;  %9825 = vmax.xlane.f32.xlu1 %v9824_v54  ;;  %v9827_v21 = vsel %vm419_vm2, %v14663_v43, -inf }
 0x872   : > { %9828 = vmax.xlane.f32.xlu0 %v9827_v21  ;;  %v12409_v18 = vpop.f32.mrf.mxu0 }
 0x873   : > { %v14669_v39 = vpop.f32.mrf.mxu1 }
 0x874   : > { %v14671_v36 = vpop.f32.mrf.mxu0  ;;  %v9830_v51 = vsel %vm419_vm2, %v14669_v39, -inf }
 0x875   : > { %v12414_v10 = vpop.f32.mrf.mxu1  ;;  %v9833_v12 = vsel %vm419_vm2, %v14671_v36, -inf }
 0x876   : > { %9831 = vmax.xlane.f32.xlu0 %v9830_v51  ;;  %9834 = vmax.xlane.f32.xlu1 %v9833_v12  ;;  %v12419_v15 = vpop.f32.mrf.mxu0  ;;  %v14729_v10 = vpop.permute.xlu1 %10149 }
 0x877   : > { %v14677_v7 = vpop.f32.mrf.mxu1  ;;  %v14733_v15 = vpop.permute.xlu0 %10225 }
 0x878   : > { %v14679_v37 = vpop.f32.mrf.mxu0  ;;  %v9836_v50 = vsel %vm419_vm2, %v14677_v7, -inf }
 0x879   : > { %v12424_v23 = vpop.f32.mrf.mxu1  ;;  %v9839_v47 = vsel %vm419_vm2, %v14679_v37, -inf }
 0x87a   : > { %9837 = vmax.xlane.f32.xlu0 %v9836_v50  ;;  %9840 = vmax.xlane.f32.xlu1 %v9839_v47  ;;  %v12429_v5 = vpop.f32.mrf.mxu0  ;;  %v14731_v12 = vpop.permute.xlu1 %10301 }
 0x87b   : > { %v14685_v19 = vpop.f32.mrf.mxu1  ;;  %v14737_v23 = vpop.permute.xlu0 %10453 }
 0x87c   : > { %v14687_v25 = vpop.f32.mrf.mxu0  ;;  %v9842_v35 = vsel %vm419_vm2, %v14685_v19, -inf }
 0x87d   : > { %v12434_v24 = vpop.f32.mrf.mxu1  ;;  %v9845_v52 = vsel %vm419_vm2, %v14687_v25, -inf }
 0x87e   : > { %9843 = vmax.xlane.f32.xlu0 %v9842_v35  ;;  %9846 = vmax.xlane.f32.xlu1 %v9845_v52  ;;  %v12439_v27 = vpop.f32.mrf.mxu0  ;;  %v14735_v50 = vpop.permute.xlu1 %10377 }
 0x87f   : > { %v14693_v28 = vpop.f32.mrf.mxu1  ;;  %v14741_v47 = vpop.permute.xlu0 %10605 }
 0x880   : > { %v14695_v3 = vpop.f32.mrf.mxu0  ;;  %v9848_v40 = vsel %vm419_vm2, %v14693_v28, -inf }
 0x881   : > { %v12444_v29 = vpop.f32.mrf.mxu1  ;;  %v9851_v60 = vsel %vm419_vm2, %v14695_v3, -inf }
 0x882   : > { %9849 = vmax.xlane.f32.xlu0 %v9848_v40  ;;  %9852 = vmax.xlane.f32.xlu1 %v9851_v60  ;;  %v12449_v57 = vpop.f32.mrf.mxu0 }
 0x883   : > { %v14701_v13 = vpop.f32.mrf.mxu1 }
 0x884   : > { %v14703_v8 = vpop.f32.mrf.mxu0  ;;  %v9854_v11 = vsel %vm419_vm2, %v14701_v13, -inf }
 0x885   : > { %v12454_v63 = vpop.f32.mrf.mxu1  ;;  %v9857_v6 = vsel %vm419_vm2, %v14703_v8, -inf }
 0x886   : > { %9855 = vmax.xlane.f32.xlu0 %v9854_v11  ;;  %9858 = vmax.xlane.f32.xlu1 %v9857_v6  ;;  %v12459_v56 = vpop.f32.mrf.mxu0 }
 0x887   : > { %v14709_v55 = vpop.f32.mrf.mxu1 }
 0x888   : > { %v14711_v58 = vpop.f32.mrf.mxu0  ;;  %v9860_v62 = vsel %vm419_vm2, %v14709_v55, -inf }
 0x889   : > { %v12464_v48 = vpop.f32.mrf.mxu1  ;;  %v9863_v54 = vsel %vm419_vm2, %v14711_v58, -inf }
 0x88a   : > { %9861 = vmax.xlane.f32.xlu0 %v9860_v62  ;;  %9864 = vmax.xlane.f32.xlu1 %v9863_v54  ;;  %v12469_v42 = vpop.f32.mrf.mxu0 }
 0x88b   : > { %v14717_v21 = vpop.f32.mrf.mxu1 }
 0x88c   : > { %v9866_v18 = vsel %vm419_vm2, %v14717_v21, -inf }
 0x88d   : > { %v12474_v51 = vpop.f32.mrf.mxu1 }
 0x88e   : > { %9867 = vmax.xlane.f32.xlu0 %v9866_v18 }
 0x89b   : > { %10833 = vrot.lane.b32.xlu1 %v12972_v30, %s12852_s11  ;;  %v14739_v30 = vpop.permute.xlu1 %10529 }
 0x89f   : > { %10985 = vrot.lane.b32.xlu1 %v12978_v32, %s12852_s11  ;;  %v14743_v32 = vpop.permute.xlu1 %10681 }
 0x8a4   : > { %10757 = vrot.lane.b32.xlu0 %v12974_v31, %s12852_s11 }
 0x8a8   : > { %10909 = vrot.lane.b32.xlu0 %v12980_v33, %s12852_s11 }
 0x8f7   : > { %v9823_v31 = vpop.xlane.xlu0 %9822 }
 0x8f8   : > { %v9869_v5 = vsub.f32 %v14657_v2, %v9823_v31 }
 0x8fa   : > { %v9885_v33 = vmul.f32 1.442695, %v9869_v5  ;;  %v9826_v35 = vpop.xlane.xlu1 %9825 }
 0x8fb   : > { %v9870_v24 = vsub.f32 %v14661_v61, %v9826_v35  ;;  %v9829_v52 = vpop.xlane.xlu0 %9828 }
 0x8fc   : > { %12768 = vpow2.f32 %v9885_v33  ;;  %v9871_v27 = vsub.f32 %v14663_v43, %v9829_v52 }
 0x8fd   : > { %v9887_v40 = vmul.f32 1.442695, %v9870_v24 }
 0x8fe   : > { %v9889_v29 = vmul.f32 1.442695, %v9871_v27 }
 0x8ff   : > { %12770 = vpow2.f32 %v9887_v40  ;;  %v9832_v60 = vpop.xlane.xlu0 %9831  ;;  %v9835_v57 = vpop.xlane.xlu1 %9834 }
 0x900   : > { %12772 = vpow2.f32 %v9889_v29  ;;  %v9872_v11 = vsub.f32 %v14669_v39, %v9832_v60  ;;  %v9873_v63 = vsub.f32 %v14671_v36, %v9835_v57 }
 0x902   : > { %v9891_v6 = vmul.f32 1.442695, %v9872_v11  ;;  %v9893_v2 = vmul.f32 1.442695, %v9873_v63 }
 0x903   : > { %v9838_v56 = vpop.xlane.xlu0 %9837  ;;  %v9841_v62 = vpop.xlane.xlu1 %9840 }
 0x904   : > { %12774 = vpow2.f32 %v9891_v6  ;;  %v9874_v61 = vsub.f32 %v14677_v7, %v9838_v56  ;;  %v9875_v48 = vsub.f32 %v14679_v37, %v9841_v62 }
 0x905   : > { %12776 = vpow2.f32 %v9893_v2 }
 0x906   : > { %v9895_v43 = vmul.f32 1.442695, %v9874_v61  ;;  %v9897_v54 = vmul.f32 1.442695, %v9875_v48 }
 0x907   : > { %v9844_v42 = vpop.xlane.xlu0 %9843  ;;  %v9847_v18 = vpop.xlane.xlu1 %9846 }
 0x908   : > { %12778 = vpow2.f32 %v9895_v43  ;;  %v9876_v51 = vsub.f32 %v14685_v19, %v9844_v42  ;;  %v9877_v39 = vsub.f32 %v14687_v25, %v9847_v18 }
 0x909   : > { %v14754_v36 = vpop.eup %12768  ;;  %12780 = vpow2.f32 %v9897_v54 }
 0x90a   : > { %v9899_v31 = vmul.f32 1.442695, %v9876_v51  ;;  %v9901_v5 = vmul.f32 1.442695, %v9877_v39  ;;  %v9917_v7 = vsel %vm419_vm2, %v14754_v36, 0.0 }
 0x90b   : > { %v9850_v33 = vpop.xlane.xlu0 %9849  ;;  %v9853_v37 = vpop.xlane.xlu1 %9852  ;;  %9918 = vadd.xlane.f32.xlu1 %v9917_v7 }
 0x90c   : > { %v14758_v35 = vpop.eup %12770  ;;  %12782 = vpow2.f32 %v9899_v31  ;;  %v9878_v24 = vsub.f32 %v14693_v28, %v9850_v33  ;;  %v9879_v19 = vsub.f32 %v14695_v3, %v9853_v37 }
 0x90d   : > { %v14762_v52 = vpop.eup %12772  ;;  %12784 = vpow2.f32 %v9901_v5  ;;  %v9920_v25 = vsel %vm419_vm2, %v14758_v35, 0.0 }
 0x90e   : > { %v9903_v27 = vmul.f32 1.442695, %v9878_v24  ;;  %v9905_v40 = vmul.f32 1.442695, %v9879_v19  ;;  %9921 = vadd.xlane.f32.xlu0 %v9920_v25  ;;  %v9923_v29 = vsel %vm419_vm2, %v14762_v52, 0.0 }
 0x90f   : > { %v9856_v60 = vpop.xlane.xlu0 %9855  ;;  %v9859_v57 = vpop.xlane.xlu1 %9858  ;;  %9924 = vadd.xlane.f32.xlu1 %v9923_v29 }
 0x910   : > { %12786 = vpow2.f32 %v9903_v27  ;;  %v9880_v28 = vsub.f32 %v14701_v13, %v9856_v60  ;;  %v9881_v3 = vsub.f32 %v14703_v8, %v9859_v57 }
 0x911   : > { %v14770_v11 = vpop.eup %12774  ;;  %12788 = vpow2.f32 %v9905_v40 }
 0x912   : > { %v14772_v63 = vpop.eup %12776  ;;  %v9907_v6 = vmul.f32 1.442695, %v9880_v28  ;;  %v9909_v2 = vmul.f32 1.442695, %v9881_v3  ;;  %v9926_v56 = vsel %vm419_vm2, %v14770_v11, 0.0 }
 0x913   : > { %9927 = vadd.xlane.f32.xlu0 %v9926_v56  ;;  %v9862_v62 = vpop.xlane.xlu0 %9861  ;;  %v9929_v61 = vsel %vm419_vm2, %v14772_v63, 0.0  ;;  %v9865_v48 = vpop.xlane.xlu1 %9864 }
 0x914   : > { %12790 = vpow2.f32 %v9907_v6  ;;  %v9882_v13 = vsub.f32 %v14709_v55, %v9862_v62  ;;  %9930 = vadd.xlane.f32.xlu1 %v9929_v61  ;;  %v9883_v8 = vsub.f32 %v14711_v58, %v9865_v48  ;;  %v11465_v62 = vld [vmem:[%s15227_s2] ss:$0 sm:$0xff]  ;;  %v15299_v61 = vld [vmem:[#allocation7_spill] sm:$0xff] }
 0x915   : > { %v14780_v43 = vpop.eup %12778  ;;  %12792 = vpow2.f32 %v9909_v2  ;;  %v3047_v48 = vmul.f32 %v11465_v62, %v15299_v61  ;;  %v15307_v61 = vld [vmem:[#allocation14_spill] sm:$0xff] }
 0x916   : > { %v14782_v54 = vpop.eup %12780  ;;  %v9911_v42 = vmul.f32 1.442695, %v9882_v13  ;;  %v9913_v18 = vmul.f32 1.442695, %v9883_v8  ;;  %v9932_v51 = vsel %vm419_vm2, %v14780_v43, 0.0  ;;  %v15300_v13 = vld [vmem:[#allocation10_spill] sm:$0xff] }
 0x917   : > { %9933 = vadd.xlane.f32.xlu0 %v9932_v51  ;;  %v9868_v39 = vpop.xlane.xlu0 %9867  ;;  %v9935_v31 = vsel %vm419_vm2, %v14782_v54, 0.0  ;;  %v3050_v8 = vmul.f32 %v11465_v62, %v15300_v13  ;;  %v15302_v51 = vld [vmem:[#allocation12_spill] sm:$0xff] }
 0x918   : > { %12794 = vpow2.f32 %v9911_v42  ;;  %v9884_v55 = vsub.f32 %v14717_v21, %v9868_v39  ;;  %9936 = vadd.xlane.f32.xlu1 %v9935_v31  ;;  %v3063_v42 = vsel %vm419_vm2, %v3047_v48, 0.0  ;;  %v3052_v39 = vmul.f32 %v11465_v62, %v15302_v51 }
 0x919   : > { %v14789_v58 = vpop.eup %12782  ;;  %12796 = vpow2.f32 %v9913_v18  ;;  %v3072_v31 = vsel %vm419_vm2, %v3050_v8, 0.0  ;;  %v3053_v48 = vmul.f32 %v11465_v62, %v15307_v61  ;;  %v15308_v8 = vld [vmem:[#allocation17_spill] sm:$0xff]  ;;  %v15314_v61 = vld [vmem:[#allocation22_spill] sm:$0xff] }
 0x91a   : > { %v14791_v5 = vpop.eup %12784  ;;  %v9915_v7 = vmul.f32 1.442695, %v9884_v55  ;;  %v9938_v33 = vsel %vm419_vm2, %v14789_v58, 0.0  ;;  %v15303_v55 = vld [vmem:[#allocation8_spill] sm:$0xff] }
 0x91b   : > { %9939 = vadd.xlane.f32.xlu0 %v9938_v33  ;;  %v9941_v37 = vsel %vm419_vm2, %v14791_v5, 0.0  ;;  %v15304_v33 = vld [vmem:[#allocation13_spill] sm:$0xff] }
 0x91c   : > { %12798 = vpow2.f32 %v9915_v7  ;;  %9942 = vadd.xlane.f32.xlu1 %v9941_v37  ;;  %v3054_v37 = vmul.f32 %v11465_v62, %v15304_v33 }
 0x91d   : > { %v14797_v24 = vpop.eup %12786 }
 0x91e   : > { %v14799_v19 = vpop.eup %12788  ;;  %v9944_v21 = vsel %vm419_vm2, %v14797_v24, 0.0 }
 0x91f   : > { %9945 = vadd.xlane.f32.xlu0 %v9944_v21  ;;  %v9947_v25 = vsel %vm419_vm2, %v14799_v19, 0.0  ;;  %v3078_v21 = vsel %vm419_vm2, %v3052_v39, 0.0  ;;  %v3081_v39 = vsel %vm419_vm2, %v3053_v48, 0.0  ;;  %v3061_v48 = vmul.f32 %v11465_v62, %v15314_v61 }
 0x920   : > { %9948 = vadd.xlane.f32.xlu1 %v9947_v25  ;;  %v15305_v25 = vld [vmem:[#allocation11_spill] sm:$0xff] }
 0x921   : > { %v14805_v27 = vpop.eup %12790 }
 0x922   : > { %v14807_v40 = vpop.eup %12792  ;;  %v9950_v29 = vsel %vm419_vm2, %v14805_v27, 0.0 }
 0x923   : > { %9951 = vadd.xlane.f32.xlu0 %v9950_v29  ;;  %v9953_v60 = vsel %vm419_vm2, %v14807_v40, 0.0  ;;  %v3051_v29 = vmul.f32 %v11465_v62, %v15305_v25 }
 0x924   : > { %9954 = vadd.xlane.f32.xlu1 %v9953_v60 }
 0x925   : > { %v14813_v57 = vpop.eup %12794  ;;  %v3075_v13 = vsel %vm419_vm2, %v3051_v29, 0.0 }
 0x926   : > { %v14815_v28 = vpop.eup %12796  ;;  %v9956_v3 = vsel %vm419_vm2, %v14813_v57, 0.0 }
 0x927   : > { %9957 = vadd.xlane.f32.xlu0 %v9956_v3  ;;  %v9959_v6 = vsel %vm419_vm2, %v14815_v28, 0.0  ;;  %v15306_v3 = vld [vmem:[#allocation15_spill] sm:$0xff] }
 0x928   : > { %9960 = vadd.xlane.f32.xlu1 %v9959_v6  ;;  %v3056_v6 = vmul.f32 %v11465_v62, %v15306_v3 }
 0x929   : > { %v14821_v2 = vpop.eup %12798 }
 0x92a   : > { %v9962_v56 = vsel %vm419_vm2, %v14821_v2, 0.0 }
 0x92b   : > { %9963 = vadd.xlane.f32.xlu0 %v9962_v56  ;;  %v3084_v56 = vsel %vm419_vm2, %v3054_v37, 0.0 }
 0x939   : > { %11137 = vrot.lane.b32.xlu1 %v12984_v34, %s12852_s11  ;;  %v15301_v34 = vld [vmem:[#allocation9_spill] sm:$0xff] }
 0x93a   : > { %v3048_v18 = vmul.f32 %v11465_v62, %v15301_v34  ;;  %v3090_v34 = vsel %vm419_vm2, %v3056_v6, 0.0 }
 0x93c   : > { %v3066_v7 = vsel %vm419_vm2, %v3048_v18, 0.0  ;;  %v15309_v18 = vld [vmem:[#allocation16_spill] sm:$0xff] }
 0x93d   : > { %8490 = vrot.lane.b32.xlu1 %v11465_v62, %s12848_s7  ;;  %v3055_v51 = vmul.f32 %v11465_v62, %v15309_v18 }
 0x93f   : > { %v3087_v37 = vsel %vm419_vm2, %v3055_v51, 0.0 }
 0x941   : > { %11061 = vrot.lane.b32.xlu0 %v15294_v38, %s12852_s11  ;;  %v3049_v38 = vmul.f32 %v11465_v62, %v15303_v55 }
 0x943   : > { %v3069_v60 = vsel %vm419_vm2, %v3049_v38, 0.0 }
 0x945   : > { %5767 = vrot.lane.b32.xlu0 %v11465_v62, %s12845_s30 }
 0x949   : > { %11213 = vrot.lane.b32.xlu0 %v11465_v62, %s12851_s10 }
 0x961   : > { %3064 = vadd.xlane.f32.xlu1 %v3063_v42  ;;  %v3058_v42 = vmul.f32 %v11465_v62, %v15308_v8  ;;  %v3105_v8 = vsel %vm419_vm2, %v3061_v48, 0.0 }
 0x963   : > { %v3096_v38 = vsel %vm419_vm2, %v3058_v42, 0.0  ;;  %v14867_v42 = vpop.permute.xlu1 %10833 }
 0x965   : > { %3073 = vadd.xlane.f32.xlu1 %v3072_v31  ;;  %v15310_v31 = vld [vmem:[#allocation19_spill] sm:$0xff] }
 0x966   : > { %v3060_v55 = vmul.f32 %v11465_v62, %v15310_v31 }
 0x967   : > { %v14871_v18 = vpop.permute.xlu1 %10985 }
 0x968   : > { %3067 = vadd.xlane.f32.xlu0 %v3066_v7  ;;  %v15311_v7 = vld [vmem:[#allocation18_spill] sm:$0xff]  ;;  %v3102_v29 = vsel %vm419_vm2, %v3060_v55, 0.0 }
 0x969   : > { %3079 = vadd.xlane.f32.xlu1 %v3078_v21  ;;  %v3057_v33 = vmul.f32 %v11465_v62, %v15311_v7  ;;  %v15312_v21 = vld [vmem:[#allocation21_spill] sm:$0xff] }
 0x96a   : > { %v3062_v25 = vmul.f32 %v11465_v62, %v15312_v21 }
 0x96b   : > { %v3093_v6 = vsel %vm419_vm2, %v3057_v33, 0.0 }
 0x96c   : > { %3070 = vadd.xlane.f32.xlu0 %v3069_v60  ;;  %v15313_v60 = vld [vmem:[#allocation20_spill] sm:$0xff] }
 0x96d   : > { %3085 = vadd.xlane.f32.xlu1 %v3084_v56  ;;  %v3059_v3 = vmul.f32 %v11465_v62, %v15313_v60  ;;  %v3108_v56 = vsel %vm419_vm2, %v3062_v25, 0.0 }
 0x970   : > { %3076 = vadd.xlane.f32.xlu0 %v3075_v13  ;;  %v3099_v13 = vsel %vm419_vm2, %v3059_v3, 0.0 }
 0x971   : > { %3091 = vadd.xlane.f32.xlu1 %v3090_v34  ;;  %v14869_v34 = vpop.permute.xlu0 %10757 }
 0x974   : > { %3082 = vadd.xlane.f32.xlu0 %v3081_v39 }
 0x975   : > { %3097 = vadd.xlane.f32.xlu1 %v3096_v38  ;;  %v14873_v51 = vpop.permute.xlu0 %10909 }
 0x978   : > { %3088 = vadd.xlane.f32.xlu0 %v3087_v37 }
 0x979   : > { %3103 = vadd.xlane.f32.xlu1 %v3102_v29 }
 0x97c   : > { %3094 = vadd.xlane.f32.xlu0 %v3093_v6 }
 0x97d   : > { %3109 = vadd.xlane.f32.xlu1 %v3108_v56 }
 0x980   : > { %3100 = vadd.xlane.f32.xlu0 %v3099_v13 }
 0x984   : > { %3106 = vadd.xlane.f32.xlu0 %v3105_v8 }
 0x994   : > { %v9919_v39 = vpop.xlane.xlu1 %9918 }
 0x995   : > { %12800 = vrcp.f32 %v9919_v39 }
 0x997   : > { %v9922_v31 = vpop.xlane.xlu0 %9921 }
 0x998   : > { %12802 = vrcp.f32 %v9922_v31  ;;  %v9925_v55 = vpop.xlane.xlu1 %9924 }
 0x999   : > { %12804 = vrcp.f32 %v9925_v55 }
 0x99c   : > { %v9928_v62 = vpop.xlane.xlu0 %9927 }
 0x99d   : > { %12806 = vrcp.f32 %v9928_v62  ;;  %v9931_v38 = vpop.xlane.xlu1 %9930 }
 0x99e   : > { %12808 = vrcp.f32 %v9931_v38 }
 0x9a0   : > { %v9934_v7 = vpop.xlane.xlu0 %9933 }
 0x9a1   : > { %12810 = vrcp.f32 %v9934_v7  ;;  %v9937_v33 = vpop.xlane.xlu1 %9936 }
 0x9a2   : > { %v12801_v37 = vpop.eup %12800  ;;  %12812 = vrcp.f32 %v9937_v33 }
 0x9a3   : > { %v9981_v21 = vmul.f32 %v12801_v37, %v14754_v36 }
 0x9a4   : > { %v9940_v25 = vpop.xlane.xlu0 %9939 }
 0x9a5   : > { %v12803_v29 = vpop.eup %12802  ;;  %12814 = vrcp.f32 %v9940_v25  ;;  %v9943_v60 = vpop.xlane.xlu1 %9942  ;;  %12478 = vmatmul.mubr.msk.f32.vlgmr.msra.gmra.mxu0 %vm419_vm2, %v9981_v21 }
 0x9a6   : > { %v12805_v3 = vpop.eup %12804  ;;  %v9982_v6 = vmul.f32 %v12803_v29, %v14758_v35  ;;  %12816 = vrcp.f32 %v9943_v60  ;;  %12486 = vmatpush3.msra.mxu0 %v14729_v10  ;;  %12487 = vmatprep.mubr.msk.f32.mxu0 %vm12841_vm1, %v15246_v22 }
 0x9a7   : > { %v9983_v56 = vmul.f32 %v12805_v3, %v14762_v52  ;;  %12495 = vmatprep.subr.mxu0 %v15246_v22  ;;  %v15318_v3 = vld [vmem:[#allocation24_spill] sm:$0xff] }
 0x9a8   : > { %v9946_v36 = vpop.xlane.xlu0 %9945  ;;  %12483 = vmatmul.mubr.msk.f32.vlgmr.msra.gmra.mxu1 %vm419_vm2, %v9982_v6 }
 0x9a9   : > { %12818 = vrcp.f32 %v9946_v36  ;;  %v9949_v61 = vpop.xlane.xlu1 %9948  ;;  %12488 = vmatmul.mubr.msk.f32.vlgmr.msra.gmra.mxu0 %vm419_vm2, %v9983_v56  ;;  %12491 = vmatpush3.msra.mxu1 %v14733_v15  ;;  %v15319_v36 = vld [vmem:[#allocation26_spill] sm:$0xff] }
 0x9aa   : > { %v12807_v35 = vpop.eup %12806  ;;  %12820 = vrcp.f32 %v9949_v61  ;;  %12496 = vmatpush3.msra.mxu0 %v14731_v12  ;;  %12492 = vmatprep.mubr.msk.f32.mxu1 %vm12841_vm1, %v15246_v22 }
 0x9ab   : > { %v12809_v10 = vpop.eup %12808  ;;  %v9984_v52 = vmul.f32 %v12807_v35, %v14770_v11  ;;  %12500 = vmatprep.subr.mxu1 %v15246_v22  ;;  %12497 = vmatprep.mubr.msk.f32.mxu0 %vm12841_vm1, %v15246_v22 }
 0x9ac   : > { %v9985_v48 = vmul.f32 %v12809_v10, %v14772_v63  ;;  %v9952_v13 = vpop.xlane.xlu0 %9951  ;;  %12505 = vmatprep.subr.mxu0 %v15246_v22 }
 0x9ad   : > { %12822 = vrcp.f32 %v9952_v13  ;;  %v9955_v15 = vpop.xlane.xlu1 %9954  ;;  %12493 = vmatmul.mubr.msk.f32.vlgmr.msra.gmra.mxu1 %vm419_vm2, %v9984_v52  ;;  %v15320_v52 = vld [vmem:[#allocation28_spill] sm:$0xff] }
 0x9ae   : > { %v12811_v12 = vpop.eup %12810  ;;  %12824 = vrcp.f32 %v9955_v15  ;;  %12498 = vmatmul.mubr.msk.f32.vlgmr.msra.gmra.mxu0 %vm419_vm2, %v9985_v48  ;;  %12501 = vmatpush3.msra.mxu1 %v14735_v50 }
 0x9af   : > { %v12813_v11 = vpop.eup %12812  ;;  %v9986_v8 = vmul.f32 %v12811_v12, %v14780_v43  ;;  %12506 = vmatpush3.msra.mxu0 %v14737_v23  ;;  %12502 = vmatprep.mubr.msk.f32.mxu1 %vm12841_vm1, %v15246_v22 }
 0x9b0   : > { %v9987_v63 = vmul.f32 %v12813_v11, %v14782_v54  ;;  %12510 = vmatprep.subr.mxu1 %v15246_v22  ;;  %v9958_v39 = vpop.xlane.xlu0 %9957  ;;  %12507 = vmatprep.mubr.msk.f32.mxu0 %vm12841_vm1, %v15246_v22  ;;  %v15322_v11 = vld [vmem:[#allocation30_spill] sm:$0xff] }
 0x9b1   : > { %12826 = vrcp.f32 %v9958_v39  ;;  %12515 = vmatprep.subr.mxu0 %v15246_v22  ;;  %v9961_v50 = vpop.xlane.xlu1 %9960  ;;  %12503 = vmatmul.mubr.msk.f32.vlgmr.msra.gmra.mxu1 %vm419_vm2, %v9986_v8  ;;  %v15323_v39 = vld [vmem:[#allocation31_spill] sm:$0xff] }
 0x9b2   : > { %v12815_v43 = vpop.eup %12814  ;;  %12828 = vrcp.f32 %v9961_v50  ;;  %12508 = vmatmul.mubr.msk.f32.vlgmr.msra.gmra.mxu0 %vm419_vm2, %v9987_v63  ;;  %12511 = vmatpush3.msra.mxu1 %v14739_v30 }
 0x9b3   : > { %v12817_v23 = vpop.eup %12816  ;;  %v9988_v54 = vmul.f32 %v12815_v43, %v14789_v58  ;;  %12516 = vmatpush3.msra.mxu0 %v14741_v47  ;;  %12512 = vmatprep.mubr.msk.f32.mxu1 %vm12841_vm1, %v15246_v22  ;;  %v15324_v43 = vld [vmem:[#allocation32_spill] sm:$0xff] }
 0x9b4   : > { %v9989_v31 = vmul.f32 %v12817_v23, %v14791_v5  ;;  %12520 = vmatprep.subr.mxu1 %v15246_v22  ;;  %v9964_v55 = vpop.xlane.xlu0 %9963  ;;  %12517 = vmatprep.mubr.msk.f32.mxu0 %vm12841_vm1, %v15246_v22 }
 0x9b5   : > { %12830 = vrcp.f32 %v9964_v55  ;;  %12525 = vmatprep.subr.mxu0 %v15246_v22  ;;  %12513 = vmatmul.mubr.msk.f32.vlgmr.msra.gmra.mxu1 %vm419_vm2, %v9988_v54  ;;  %v15325_v55 = vld [vmem:[#allocation33_spill] sm:$0xff] }
 0x9b6   : > { %v12819_v30 = vpop.eup %12818  ;;  %12518 = vmatmul.mubr.msk.f32.vlgmr.msra.gmra.mxu0 %vm419_vm2, %v9989_v31  ;;  %12521 = vmatpush3.msra.mxu1 %v14743_v32 }
 0x9b7   : > { %v12821_v47 = vpop.eup %12820  ;;  %v9990_v58 = vmul.f32 %v12819_v30, %v14797_v24  ;;  %12526 = vmatpush3.msra.mxu0 %v14869_v34  ;;  %12522 = vmatprep.mubr.msk.f32.mxu1 %vm12841_vm1, %v15246_v22 }
 0x9b8   : > { %v9991_v5 = vmul.f32 %v12821_v47, %v14799_v19  ;;  %12530 = vmatprep.subr.mxu1 %v15246_v22  ;;  %v11062_v62 = vpop.permute.xlu0 %11061  ;;  %12527 = vmatprep.mubr.msk.f32.mxu0 %vm12841_vm1, %v15246_v22  ;;  %v15326_v47 = vld [vmem:[#allocation34_spill] sm:$0xff] }
 0x9b9   : > { %12535 = vmatprep.subr.mxu0 %v15246_v22  ;;  %12523 = vmatmul.mubr.msk.f32.vlgmr.msra.gmra.mxu1 %vm419_vm2, %v9990_v58 }
 0x9ba   : > { %v12823_v32 = vpop.eup %12822  ;;  %12528 = vmatmul.mubr.msk.f32.vlgmr.msra.gmra.mxu0 %vm419_vm2, %v9991_v5  ;;  %12531 = vmatpush3.msra.mxu1 %v14867_v42  ;;  %v15315_v42 = vld [vmem:[#allocation23_spill] sm:$0xff] }
 0x9bb   : > { %v12825_v24 = vpop.eup %12824  ;;  %v9992_v34 = vmul.f32 %v12823_v32, %v14805_v27  ;;  %12536 = vmatpush3.msra.mxu0 %v14873_v51  ;;  %12532 = vmatprep.mubr.msk.f32.mxu1 %vm12841_vm1, %v15246_v22  ;;  %v15316_v51 = vld [vmem:[#allocation25_spill] sm:$0xff]  ;;  %v15327_v32 = vld [vmem:[#allocation35_spill] sm:$0xff] }
 0x9bc   : > { %v9993_v19 = vmul.f32 %v12825_v24, %v14807_v40  ;;  %v14939_v38 = vpop.permute.xlu0 %5767  ;;  %12537 = vmatprep.mubr.msk.f32.mxu0 %vm12841_vm1, %v15246_v22  ;;  %12540 = vmatprep.subr.mxu1 %v15246_v22  ;;  %v15317_v40 = vld [vmem:[#allocation27_spill] sm:$0xff] }
 0x9bd   : > { %12545 = vmatprep.subr.mxu0 %v15246_v22  ;;  %12533 = vmatmul.mubr.msk.f32.vlgmr.msra.gmra.mxu1 %vm419_vm2, %v9992_v34  ;;  %v5770_v27 = vmul.f32 %v14939_v38, %v15315_v42  ;;  %v5771_v7 = vmul.f32 %v14939_v38, %v15316_v51  ;;  %v5772_v37 = vmul.f32 %v14939_v38, %v15317_v40  ;;  %v15328_v34 = vld [vmem:[#allocation36_spill] sm:$0xff]  ;;  %v15329_v51 = vld [vmem:[#allocation37_spill] sm:$0xff] }
 0x9be   : > { %v12827_v33 = vpop.eup %12826  ;;  %12538 = vmatmul.mubr.msk.f32.vlgmr.msra.gmra.mxu0 %vm419_vm2, %v9993_v19  ;;  %12541 = vmatpush3.msra.mxu1 %v14871_v18  ;;  %v5773_v6 = vmul.f32 %v14939_v38, %v15318_v3  ;;  %v11138_v18 = vpop.permute.xlu1 %11137  ;;  %v5774_v61 = vmul.f32 %v14939_v38, %v15319_v36  ;;  %v5775_v48 = vmul.f32 %v14939_v38, %v15320_v52 }
 0x9bf   : > { %v12829_v21 = vpop.eup %12828  ;;  %v9994_v25 = vmul.f32 %v12827_v33, %v14813_v57  ;;  %12546 = vmatpush3.msra.mxu0 %v11062_v62  ;;  %v5786_v29 = vsel %vm419_vm2, %v5770_v27, 0.0  ;;  %v5789_v60 = vsel %vm419_vm2, %v5771_v7, 0.0  ;;  %12542 = vmatprep.mubr.msk.f32.mxu1 %vm12841_vm1, %v15246_v22  ;;  %v5777_v8 = vmul.f32 %v14939_v38, %v15322_v11  ;;  %v15330_v33 = vld [vmem:[#allocation38_spill] sm:$0xff] }
 0x9c0   : > { %v9995_v56 = vmul.f32 %v12829_v21, %v14815_v28  ;;  %5787 = vadd.xlane.f32.xlu0 %v5786_v29  ;;  %5790 = vadd.xlane.f32.xlu1 %v5789_v60  ;;  %v5792_v28 = vsel %vm419_vm2, %v5772_v37, 0.0  ;;  %v5795_v10 = vsel %vm419_vm2, %v5773_v6, 0.0  ;;  %v5798_v13 = vsel %vm419_vm2, %v5774_v61, 0.0 }
 0x9c1   : > { %12547 = vmatprep.mubr.msk.f32.mxu0 %vm12841_vm1, %v15246_v22  ;;  %12550 = vmatprep.subr.mxu1 %v15246_v22  ;;  %v5801_v15 = vsel %vm419_vm2, %v5775_v48, 0.0  ;;  %v5807_v63 = vsel %vm419_vm2, %v5777_v8, 0.0  ;;  %v5778_v50 = vmul.f32 %v14939_v38, %v15323_v39  ;;  %v5779_v23 = vmul.f32 %v14939_v38, %v15324_v43 }
 0x9c2   : > { %v12831_v57 = vpop.eup %12830  ;;  %12543 = vmatmul.mubr.msk.f32.vlgmr.msra.gmra.mxu1 %vm419_vm2, %v9994_v25  ;;  %12548 = vmatmul.mubr.msk.f32.vlgmr.msra.gmra.mxu0 %vm419_vm2, %v9995_v56  ;;  %v5780_v30 = vmul.f32 %v14939_v38, %v15325_v55  ;;  %v5781_v58 = vmul.f32 %v14939_v38, %v15326_v47  ;;  %v5782_v24 = vmul.f32 %v14939_v38, %v15327_v32  ;;  %v8491_v37 = vpop.permute.xlu1 %8490 }
 0x9c3   : > { %v9996_v35 = vmul.f32 %v12831_v57, %v14821_v2  ;;  %12551 = vmatpush3.msra.mxu1 %v11138_v18  ;;  %12552 = vmatprep.mubr.msk.f32.mxu1 %vm12841_vm1, %v15246_v22  ;;  %v15321_v2 = vld [vmem:[#allocation29_spill] sm:$0xff]  ;;  %v5810_v54 = vsel %vm419_vm2, %v5778_v50, 0.0  ;;  %v5813_v31 = vsel %vm419_vm2, %v5779_v23, 0.0  ;;  %v5783_v19 = vmul.f32 %v14939_v38, %v15328_v34 }
 0x9c4   : > { %5793 = vadd.xlane.f32.xlu0 %v5792_v28  ;;  %5796 = vadd.xlane.f32.xlu1 %v5795_v10  ;;  %v5776_v12 = vmul.f32 %v14939_v38, %v15321_v2  ;;  %v5816_v5 = vsel %vm419_vm2, %v5780_v30, 0.0  ;;  %v5819_v62 = vsel %vm419_vm2, %v5781_v58, 0.0  ;;  %v5822_v42 = vsel %vm419_vm2, %v5782_v24, 0.0 }
 0x9c5   : > { %v5825_v27 = vsel %vm419_vm2, %v5783_v19, 0.0  ;;  %v5784_v7 = vmul.f32 %v14939_v38, %v15329_v51  ;;  %v5785_v40 = vmul.f32 %v14939_v38, %v15330_v33  ;;  %v8494_v29 = vmul.f32 %v8491_v37, %v14627_v26 }
 0x9c6   : > { %12553 = vmatmul.mubr.msk.f32.vlgmr.msra.gmra.mxu1 %vm419_vm2, %v9996_v35  ;;  %v5804_v22 = vsel %vm419_vm2, %v5776_v12, 0.0  ;;  %v8493_v60 = vmul.f32 %v8491_v37, %v14625_v49  ;;  %v8496_v56 = vmul.f32 %v8491_v37, %v14631_v41  ;;  %v8495_v38 = vmul.f32 %v8491_v37, %v14629_v45 }
 0x9c7   : > { %v5828_v21 = vsel %vm419_vm2, %v5784_v7, 0.0  ;;  %v5831_v25 = vsel %vm419_vm2, %v5785_v40, 0.0  ;;  %v8512_v3 = vsel %vm419_vm2, %v8494_v29, 0.0  ;;  %v8498_v26 = vmul.f32 %v8491_v37, %v14635_v1 }
 0x9c8   : > { %5799 = vadd.xlane.f32.xlu0 %v5798_v13  ;;  %5802 = vadd.xlane.f32.xlu1 %v5801_v15  ;;  %v8509_v6 = vsel %vm419_vm2, %v8493_v60, 0.0  ;;  %v8518_v57 = vsel %vm419_vm2, %v8496_v56, 0.0  ;;  %v8515_v18 = vsel %vm419_vm2, %v8495_v38, 0.0  ;;  %v8497_v49 = vmul.f32 %v8491_v37, %v14633_v44 }
 0x9c9   : > { %v8524_v36 = vsel %vm419_vm2, %v8498_v26, 0.0  ;;  %v8500_v41 = vmul.f32 %v8491_v37, %v14639_v17  ;;  %v8499_v45 = vmul.f32 %v8491_v37, %v14637_v9  ;;  %v8502_v1 = vmul.f32 %v8491_v37, %v14643_v53 }
 0x9ca   : > { %v8521_v61 = vsel %vm419_vm2, %v8497_v49, 0.0  ;;  %v8501_v44 = vmul.f32 %v8491_v37, %v14641_v14  ;;  %v8504_v17 = vmul.f32 %v8491_v37, %v14647_v4  ;;  %v8503_v9 = vmul.f32 %v8491_v37, %v14645_v59 }
 0x9cb   : > { %v8530_v35 = vsel %vm419_vm2, %v8500_v41, 0.0  ;;  %v8527_v28 = vsel %vm419_vm2, %v8499_v45, 0.0  ;;  %v8536_v10 = vsel %vm419_vm2, %v8502_v1, 0.0  ;;  %v8506_v53 = vmul.f32 %v8491_v37, %v14651_v20  ;;  %v15041_v20 = vpop.permute.xlu0 %11213 }
 0x9cc   : > { %5805 = vadd.xlane.f32.xlu0 %v5804_v22  ;;  %5808 = vadd.xlane.f32.xlu1 %v5807_v63  ;;  %v8533_v52 = vsel %vm419_vm2, %v8501_v44, 0.0  ;;  %v8542_v48 = vsel %vm419_vm2, %v8504_v17, 0.0  ;;  %v8539_v13 = vsel %vm419_vm2, %v8503_v9, 0.0  ;;  %v8505_v14 = vmul.f32 %v8491_v37, %v14649_v46 }
 0x9cd   : > { %v8548_v15 = vsel %vm419_vm2, %v8506_v53, 0.0  ;;  %v8508_v4 = vmul.f32 %v8491_v37, %v14655_v16  ;;  %v8507_v59 = vmul.f32 %v8491_v37, %v14653_v0 }
 0x9ce   : > { %v8545_v2 = vsel %vm419_vm2, %v8505_v14, 0.0 }
 0x9cf   : > { %v8554_v12 = vsel %vm419_vm2, %v8508_v4, 0.0  ;;  %v8551_v11 = vsel %vm419_vm2, %v8507_v59, 0.0 }
 0x9d0   : > { %5811 = vadd.xlane.f32.xlu0 %v5810_v54  ;;  %5814 = vadd.xlane.f32.xlu1 %v5813_v31 }
 0x9d4   : > { %5817 = vadd.xlane.f32.xlu0 %v5816_v5  ;;  %5820 = vadd.xlane.f32.xlu1 %v5819_v62 }
 0x9d8   : > { %5823 = vadd.xlane.f32.xlu0 %v5822_v42  ;;  %5826 = vadd.xlane.f32.xlu1 %v5825_v27 }
 0x9dc   : > { %5829 = vadd.xlane.f32.xlu0 %v5828_v21  ;;  %5832 = vadd.xlane.f32.xlu1 %v5831_v25 }
 0x9e0   : > { %8513 = vadd.xlane.f32.xlu1 %v8512_v3  ;;  %8510 = vadd.xlane.f32.xlu0 %v8509_v6 }
 0x9e4   : > { %8519 = vadd.xlane.f32.xlu1 %v8518_v57  ;;  %8516 = vadd.xlane.f32.xlu0 %v8515_v18 }
 0x9e8   : > { %8525 = vadd.xlane.f32.xlu1 %v8524_v36  ;;  %8522 = vadd.xlane.f32.xlu0 %v8521_v61 }
 0x9ea   : > { %v15046_v16 = vpop.xlane.xlu1 %3064 }
 0x9ec   : > { %8531 = vadd.xlane.f32.xlu1 %v8530_v35  ;;  %8528 = vadd.xlane.f32.xlu0 %v8527_v28 }
 0x9ee   : > { %v15056_v32 = vpop.xlane.xlu1 %3073 }
 0x9f0   : > { %8537 = vadd.xlane.f32.xlu1 %v8536_v10  ;;  %8534 = vadd.xlane.f32.xlu0 %v8533_v52 }
 0x9f1   : > { %v15043_v8 = vpop.xlane.xlu0 %3067 }
 0x9f2   : > { %v15066_v60 = vpop.xlane.xlu1 %3079 }
 0x9f4   : > { %8543 = vadd.xlane.f32.xlu1 %v8542_v48  ;;  %8540 = vadd.xlane.f32.xlu0 %v8539_v13 }
 0x9f5   : > { %v15052_v30 = vpop.xlane.xlu0 %3070 }
 0x9f6   : > { %v15076_v28 = vpop.xlane.xlu1 %3085 }
 0x9f8   : > { %8549 = vadd.xlane.f32.xlu1 %v8548_v15  ;;  %8546 = vadd.xlane.f32.xlu0 %v8545_v2 }
 0x9f9   : > { %v15062_v40 = vpop.xlane.xlu0 %3076 }
 0x9fa   : > { %v15086_v59 = vpop.xlane.xlu1 %3091 }
 0x9fc   : > { %8555 = vadd.xlane.f32.xlu1 %v8554_v12  ;;  %8552 = vadd.xlane.f32.xlu0 %v8551_v11 }
 0x9fd   : > { %v15072_v36 = vpop.xlane.xlu0 %3082 }
 0xa01   : > { %v15082_v53 = vpop.xlane.xlu0 %3088 }
 0xa65   : > { %v10069_v46 = vpop.f32.mrf.mxu0 }
 0xa66   : > { %v11216_v22 = vmul.f32 %v15041_v20, %v10069_v46 }
 0xa67   : > { %v12479_v63 = vpop.f32.mrf.mxu0 }
 0xa68   : > { %v10145_v39 = vpop.f32.mrf.mxu1  ;;  %v11232_v50 = vsel %vm419_vm2, %v11216_v22, 0.0 }
 0xa69   : > { %v11217_v0 = vmul.f32 %v15041_v20, %v10145_v39  ;;  %11233 = vadd.xlane.f32.xlu0 %v11232_v50  ;;  %v10221_v43 = vpop.f32.mrf.mxu0 }
 0xa6a   : > { %v12484_v23 = vpop.f32.mrf.mxu1  ;;  %v11218_v54 = vmul.f32 %v15041_v20, %v10221_v43 }
 0xa6b   : > { %v11235_v31 = vsel %vm419_vm2, %v11217_v0, 0.0  ;;  %v12489_v55 = vpop.f32.mrf.mxu0  ;;  %v15091_v0 = vpop.xlane.xlu0 %3094 }
 0xa6c   : > { %11236 = vadd.xlane.f32.xlu1 %v11235_v31  ;;  %v11238_v58 = vsel %vm419_vm2, %v11218_v54, 0.0  ;;  %v15095_v31 = vpop.xlane.xlu1 %3097 }
 0xa6d   : > { %v10297_v47 = vpop.f32.mrf.mxu1  ;;  %11239 = vadd.xlane.f32.xlu0 %v11238_v58 }
 0xa6e   : > { %v11219_v5 = vmul.f32 %v15041_v20, %v10297_v47  ;;  %v10373_v62 = vpop.f32.mrf.mxu0 }
 0xa6f   : > { %v11220_v24 = vmul.f32 %v15041_v20, %v10373_v62  ;;  %v12494_v34 = vpop.f32.mrf.mxu1 }
 0xa70   : > { %v12499_v19 = vpop.f32.mrf.mxu0  ;;  %v11241_v42 = vsel %vm419_vm2, %v11219_v5, 0.0  ;;  %v15099_v5 = vpop.xlane.xlu0 %3100 }
 0xa71   : > { %v10449_v27 = vpop.f32.mrf.mxu1  ;;  %11242 = vadd.xlane.f32.xlu1 %v11241_v42  ;;  %v11244_v51 = vsel %vm419_vm2, %v11220_v24, 0.0  ;;  %v15101_v62 = vpop.xlane.xlu1 %3103 }
 0xa72   : > { %v11221_v7 = vmul.f32 %v15041_v20, %v10449_v27  ;;  %11245 = vadd.xlane.f32.xlu0 %v11244_v51  ;;  %v10525_v33 = vpop.f32.mrf.mxu0 }
 0xa73   : > { %v11222_v37 = vmul.f32 %v15041_v20, %v10525_v33  ;;  %v12504_v21 = vpop.f32.mrf.mxu1 }
 0xa74   : > { %v12509_v25 = vpop.f32.mrf.mxu0  ;;  %v11247_v29 = vsel %vm419_vm2, %v11221_v7, 0.0  ;;  %v15103_v24 = vpop.xlane.xlu0 %3106 }
 0xa75   : > { %v10601_v3 = vpop.f32.mrf.mxu1  ;;  %11248 = vadd.xlane.f32.xlu1 %v11247_v29  ;;  %v11250_v6 = vsel %vm419_vm2, %v11222_v37, 0.0  ;;  %v15105_v34 = vpop.xlane.xlu1 %3109 }
 0xa76   : > { %v11223_v56 = vmul.f32 %v15041_v20, %v10601_v3  ;;  %11251 = vadd.xlane.f32.xlu0 %v11250_v6  ;;  %v10677_v38 = vpop.f32.mrf.mxu0 }
 0xa77   : > { %v11224_v57 = vmul.f32 %v15041_v20, %v10677_v38  ;;  %v12514_v18 = vpop.f32.mrf.mxu1 }
 0xa78   : > { %v12519_v26 = vpop.f32.mrf.mxu0  ;;  %v11253_v49 = vsel %vm419_vm2, %v11223_v56, 0.0  ;;  %v5788_v19 = vpop.xlane.xlu0 %5787 }
 0xa79   : > { %v10753_v61 = vpop.f32.mrf.mxu1  ;;  %11254 = vadd.xlane.f32.xlu1 %v11253_v49  ;;  %v11256_v41 = vsel %vm419_vm2, %v11224_v57, 0.0  ;;  %v5791_v42 = vpop.xlane.xlu1 %5790 }
 0xa7a   : > { %v11225_v45 = vmul.f32 %v15041_v20, %v10753_v61  ;;  %11257 = vadd.xlane.f32.xlu0 %v11256_v41  ;;  %v10829_v35 = vpop.f32.mrf.mxu0 }
 0xa7b   : > { %v11226_v1 = vmul.f32 %v15041_v20, %v10829_v35  ;;  %v12524_v44 = vpop.f32.mrf.mxu1 }
 0xa7c   : > { %v12529_v10 = vpop.f32.mrf.mxu0  ;;  %v11259_v52 = vsel %vm419_vm2, %v11225_v45, 0.0  ;;  %v5794_v27 = vpop.xlane.xlu0 %5793 }
 0xa7d   : > { %v10905_v17 = vpop.f32.mrf.mxu1  ;;  %11260 = vadd.xlane.f32.xlu1 %v11259_v52  ;;  %v11262_v9 = vsel %vm419_vm2, %v11226_v1, 0.0  ;;  %v5797_v51 = vpop.xlane.xlu1 %5796 }
 0xa7e   : > { %v11227_v48 = vmul.f32 %v15041_v20, %v10905_v17  ;;  %11263 = vadd.xlane.f32.xlu0 %v11262_v9  ;;  %v10981_v13 = vpop.f32.mrf.mxu0 }
 0xa7f   : > { %v11228_v14 = vmul.f32 %v15041_v20, %v10981_v13  ;;  %v12534_v15 = vpop.f32.mrf.mxu1 }
 0xa80   : > { %v12539_v2 = vpop.f32.mrf.mxu0  ;;  %v11265_v4 = vsel %vm419_vm2, %v11227_v48, 0.0  ;;  %v5800_v7 = vpop.xlane.xlu0 %5799 }
 0xa81   : > { %11266 = vadd.xlane.f32.xlu1 %v11265_v4  ;;  %v11268_v12 = vsel %vm419_vm2, %v11228_v14, 0.0  ;;  %v5803_v33 = vpop.xlane.xlu1 %5802  ;;  %v5834_v14 = vadd.f32 %v5788_v19, %v15046_v16  ;;  %v5835_v2 = vadd.f32 %v5791_v42, %v15043_v8 }
 0xa82   : > { %v11057_v11 = vpop.f32.mrf.mxu1  ;;  %11269 = vadd.xlane.f32.xlu0 %v11268_v12  ;;  %v11133_v22 = vpop.f32.mrf.mxu0  ;;  %v15137_v12 = vld [vmem:[#allocation2] ss:$0 sm:$0xff] }
 0xa83   : > { %v11229_v46 = vmul.f32 %v15041_v20, %v11057_v11  ;;  %v11230_v63 = vmul.f32 %v15041_v20, %v11133_v22 }
 0xa84   : > { %v12544_v39 = vpop.f32.mrf.mxu1  ;;  %v12549_v50 = vpop.f32.mrf.mxu0 }
 0xa85   : > { %v11271_v43 = vsel %vm419_vm2, %v11229_v46, 0.0  ;;  %v11274_v54 = vsel %vm419_vm2, %v11230_v63, 0.0  ;;  %v5809_v37 = vpop.xlane.xlu1 %5808  ;;  %v5836_v46 = vadd.f32 %v5794_v27, %v15052_v30  ;;  %v5839_v27 = vadd.f32 %v5803_v33, %v15066_v60 }
 0xa86   : > { %v11209_v23 = vpop.f32.mrf.mxu1  ;;  %11272 = vadd.xlane.f32.xlu1 %v11271_v43  ;;  %11275 = vadd.xlane.f32.xlu0 %v11274_v54  ;;  %v5837_v43 = vadd.f32 %v5797_v51, %v15056_v32 }
 0xa87   : > { %v11231_v55 = vmul.f32 %v15041_v20, %v11209_v23  ;;  %v5806_v20 = vpop.xlane.xlu0 %5805  ;;  %v5838_v23 = vadd.f32 %v5800_v7, %v15062_v40 }
 0xa88   : > { %v12554_v47 = vpop.f32.mrf.mxu1  ;;  %v5840_v40 = vadd.f32 %v5806_v20, %v15072_v36 }
 0xa89   : > { %v11277_v58 = vsel %vm419_vm2, %v11231_v55, 0.0  ;;  %v15109_v25 = vpop.xlane.xlu1 %5814 }
 0xa8a   : > { %11278 = vadd.xlane.f32.xlu1 %v11277_v58 }
 0xa8b   : > { %v15107_v21 = vpop.xlane.xlu0 %5811 }
 0xa8c   : > { %v5842_v36 = vadd.f32 %v15107_v21, %v15082_v53 }
 0xa8d   : > { %v15113_v3 = vpop.xlane.xlu1 %5820 }
 0xa8f   : > { %v15111_v29 = vpop.xlane.xlu0 %5817 }
 0xa90   : > { %v5844_v53 = vadd.f32 %v15111_v29, %v15091_v0 }
 0xa91   : > { %v15117_v56 = vpop.xlane.xlu1 %5826 }
 0xa93   : > { %v15115_v6 = vpop.xlane.xlu0 %5823 }
 0xa94   : > { %v5846_v29 = vadd.f32 %v15115_v6, %v15099_v5  ;;  %v5847_v5 = vadd.f32 %v15117_v56, %v15101_v62 }
 0xa95   : > { %v15121_v57 = vpop.xlane.xlu1 %5832 }
 0xa96   : > { %v5849_v56 = vadd.f32 %v15121_v57, %v15105_v34 }
 0xa97   : > { %v15119_v38 = vpop.xlane.xlu0 %5829 }
 0xa99   : > { %v8514_v26 = vpop.xlane.xlu1 %8513 }
 0xa9a   : > { %v8558_v22 = vadd.f32 %v8514_v26, %v5835_v2 }
 0xa9b   : > { %v8511_v18 = vpop.xlane.xlu0 %8510 }
 0xa9c   : > { %v8557_v4 = vadd.f32 %v8511_v18, %v5834_v14  ;;  %v5841_v14 = vadd.f32 %v5809_v37, %v15076_v28  ;;  %v5843_v28 = vadd.f32 %v15109_v25, %v15086_v59  ;;  %v5845_v25 = vadd.f32 %v15113_v3, %v15095_v31 }
 0xa9d   : > { %v8520_v61 = vpop.xlane.xlu1 %8519 }
 0xa9e   : > { %v8560_v47 = vadd.f32 %v8520_v61, %v5837_v43 }
 0xa9f   : > { %v8517_v49 = vpop.xlane.xlu0 %8516 }
 0xaa0   : > { %v8559_v39 = vadd.f32 %v8517_v49, %v5836_v46 }
 0xaa1   : > { %v8526_v45 = vpop.xlane.xlu1 %8525 }
 0xaa2   : > { %v8562_v18 = vadd.f32 %v8526_v45, %v5839_v27 }
 0xaa3   : > { %v8523_v41 = vpop.xlane.xlu0 %8522 }
 0xaa4   : > { %v8561_v58 = vadd.f32 %v8523_v41, %v5838_v23 }
 0xaa5   : > { %v8532_v1 = vpop.xlane.xlu1 %8531 }
 0xaa6   : > { %v8564_v45 = vadd.f32 %v8532_v1, %v5841_v14 }
 0xaa7   : > { %v8529_v35 = vpop.xlane.xlu0 %8528 }
 0xaa8   : > { %v8563_v49 = vadd.f32 %v8529_v35, %v5840_v40 }
 0xaa9   : > { %v8538_v10 = vpop.xlane.xlu1 %8537 }
 0xaaa   : > { %v8566_v1 = vadd.f32 %v8538_v10, %v5843_v28 }
 0xaab   : > { %v8535_v44 = vpop.xlane.xlu0 %8534 }
 0xaac   : > { %v8565_v2 = vadd.f32 %v8535_v44, %v5842_v36 }
 0xaad   : > { %v15125_v17 = vpop.xlane.xlu1 %8543 }
 0xaaf   : > { %v15123_v52 = vpop.xlane.xlu0 %8540 }
 0xab1   : > { %v15129_v48 = vpop.xlane.xlu1 %8549 }
 0xab3   : > { %v15127_v9 = vpop.xlane.xlu0 %8546 }
 0xab5   : > { %v15134_v15 = vpop.xlane.xlu1 %8555 }
 0xab7   : > { %v15131_v13 = vpop.xlane.xlu0 %8552 }
 0xaf2   : > { %v11234_v11 = vpop.xlane.xlu0 %11233 }
 0xaf3   : > { %v11280_v63 = vadd.f32 %v11234_v11, %v8557_v4 }
 0xaf5   : > { %v11237_v16 = vpop.xlane.xlu1 %11236  ;;  %v11303_v8 = vadd.f32 %v15137_v12, %v11280_v63 }
 0xaf6   : > { %v11281_v50 = vadd.f32 %v11237_v16, %v8558_v22  ;;  %v11240_v30 = vpop.xlane.xlu0 %11239  ;;  %v8567_v22 = vadd.f32 %v15123_v52, %v5844_v53 }
 0xaf7   : > { %11320 = vst.msk [vmem:[%s15145_s16] sm:$0xff] %vm11319_vm3, %v11303_v8  ;;  %v11282_v55 = vadd.f32 %v11240_v30, %v8559_v39  ;;  %v8568_v39 = vadd.f32 %v15125_v17, %v5845_v25  ;;  %v8569_v8 = vadd.f32 %v15127_v9, %v5846_v29  ;;  %v5848_v17 = vadd.f32 %v15119_v38, %v15103_v24 }
 0xaf8   : > { %v11304_v54 = vadd.f32 %v15137_v12, %v11281_v50  ;;  %v8570_v30 = vadd.f32 %v15129_v48, %v5847_v5 }
 0xaf9   : > { %v11305_v19 = vadd.f32 %v15137_v12, %v11282_v55 }
 0xafa   : > { %11321 = vst.msk [vmem:[%s15145_s16 + $0x8] sm:$0xff] %vm11319_vm3, %v11304_v54  ;;  %v11243_v42 = vpop.xlane.xlu1 %11242  ;;  %v8571_v54 = vadd.f32 %v15131_v13, %v5848_v17 }
 0xafb   : > { %v11283_v32 = vadd.f32 %v11243_v42, %v8560_v47  ;;  %v11246_v51 = vpop.xlane.xlu0 %11245  ;;  %11322 = vst.msk [vmem:[%s15145_s16 + $0x10] sm:$0xff] %vm11319_vm3, %v11305_v19  ;;  %v8572_v47 = vadd.f32 %v15134_v15, %v5849_v56 }
 0xafc   : > { %v11284_v7 = vadd.f32 %v11246_v51, %v8561_v58 }
 0xafd   : > { %v11306_v26 = vadd.f32 %v15137_v12, %v11283_v32 }
 0xafe   : > { %v11307_v61 = vadd.f32 %v15137_v12, %v11284_v7  ;;  %v11249_v41 = vpop.xlane.xlu1 %11248 }
 0xaff   : > { %11323 = vst.msk [vmem:[%s15145_s16 + $0x18] sm:$0xff] %vm11319_vm3, %v11306_v26  ;;  %v11285_v60 = vadd.f32 %v11249_v41, %v8562_v18  ;;  %v11252_v33 = vpop.xlane.xlu0 %11251 }
 0xb00   : > { %11324 = vst.msk [vmem:[%s15145_s16 + $0x20] sm:$0xff] %vm11319_vm3, %v11307_v61  ;;  %v11286_v20 = vadd.f32 %v11252_v33, %v8563_v49 }
 0xb01   : > { %v11308_v35 = vadd.f32 %v15137_v12, %v11285_v60 }
 0xb02   : > { %v11309_v4 = vadd.f32 %v15137_v12, %v11286_v20  ;;  %v11255_v11 = vpop.xlane.xlu1 %11254 }
 0xb03   : > { %11325 = vst.msk [vmem:[%s15145_s16 + $0x28] sm:$0xff] %vm11319_vm3, %v11308_v35  ;;  %v11287_v37 = vadd.f32 %v11255_v11, %v8564_v45  ;;  %v11258_v46 = vpop.xlane.xlu0 %11257 }
 0xb04   : > { %11326 = vst.msk [vmem:[%s15145_s16 + $0x30] sm:$0xff] %vm11319_vm3, %v11309_v4  ;;  %v11288_v21 = vadd.f32 %v11258_v46, %v8565_v2 }
 0xb05   : > { %v11310_v44 = vadd.f32 %v15137_v12, %v11287_v37 }
 0xb06   : > { %v11311_v63 = vadd.f32 %v15137_v12, %v11288_v21  ;;  %v11261_v59 = vpop.xlane.xlu1 %11260 }
 0xb07   : > { %11327 = vst.msk [vmem:[%s15145_s16 + $0x38] sm:$0xff] %vm11319_vm3, %v11310_v44  ;;  %v11289_v16 = vadd.f32 %v11261_v59, %v8566_v1  ;;  %v11264_v0 = vpop.xlane.xlu0 %11263 }
 0xb08   : > { %11328 = vst.msk [vmem:[%s15145_s16 + $0x40] sm:$0xff] %vm11319_vm3, %v11311_v63  ;;  %v11290_v10 = vadd.f32 %v11264_v0, %v8567_v22 }
 0xb09   : > { %v11312_v52 = vadd.f32 %v15137_v12, %v11289_v16 }
 0xb0a   : > { %v11313_v31 = vadd.f32 %v15137_v12, %v11290_v10  ;;  %v11267_v3 = vpop.xlane.xlu1 %11266 }
 0xb0b   : > { %11329 = vst.msk [vmem:[%s15145_s16 + $0x48] sm:$0xff] %vm11319_vm3, %v11312_v52  ;;  %v11291_v50 = vadd.f32 %v11267_v3, %v8568_v39  ;;  %v11270_v43 = vpop.xlane.xlu0 %11269 }
 0xb0c   : > { %11330 = vst.msk [vmem:[%s15145_s16 + $0x50] sm:$0xff] %vm11319_vm3, %v11313_v31  ;;  %v11292_v6 = vadd.f32 %v11270_v43, %v8569_v8 }
 0xb0d   : > { %v11314_v9 = vadd.f32 %v15137_v12, %v11291_v50 }
 0xb0e   : > { %v11315_v23 = vadd.f32 %v15137_v12, %v11292_v6 }
 0xb0f   : > { %11331 = vst.msk [vmem:[%s15145_s16 + $0x58] sm:$0xff] %vm11319_vm3, %v11314_v9  ;;  %v11273_v62 = vpop.xlane.xlu1 %11272  ;;  %v11276_v38 = vpop.xlane.xlu0 %11275 }
 0xb10   : > { %11332 = vst.msk [vmem:[%s15145_s16 + $0x60] sm:$0xff] %vm11319_vm3, %v11315_v23  ;;  %v11293_v24 = vadd.f32 %v11273_v62, %v8570_v30  ;;  %v11294_v55 = vadd.f32 %v11276_v38, %v8571_v54 }
 0xb12   : > { %v11316_v48 = vadd.f32 %v15137_v12, %v11293_v24  ;;  %v11317_v58 = vadd.f32 %v15137_v12, %v11294_v55 }
 0xb13   : > { %v11279_v19 = vpop.xlane.xlu1 %11278 }
 0xb14   : > { %11333 = vst.msk [vmem:[%s15145_s16 + $0x68] sm:$0xff] %vm11319_vm3, %v11316_v48  ;;  %v11295_v13 = vadd.f32 %v11279_v19, %v8572_v47  ;;  %11334 = vst.msk [vmem:[%s15145_s16 + $0x70] sm:$0xff] %vm11319_vm3, %v11317_v58 }
 0xb16   : > { %v11318_v42 = vadd.f32 %v15137_v12, %v11295_v13 }
 0xb18   : > { %11335 = vst.msk [vmem:[%s15145_s16 + $0x78] sm:$0xff] %vm11319_vm3, %v11318_v42 }
 0xb19 PF: > { %s16_s17 = sadd.s32 1, %s12838_s17  }
 0xb1a   : > { %p13_p4 = scmp.ge.s32.totalorder %s16_s17, 4  }
 0xb1c   :  { %15 = sbr.rel (!%p13_p4) target bundleno = 3 (0x3), region = 66 }

</bundles_post_ra>
